<compile_context>
chip_gen: v5e
topology: v5e:2x2
jax: 0.10.0
libtpu: 0.0.40
codegen_flags: <defaults>
</compile_context>

<pallas_src>
import jax
import jax.numpy as jnp
from jax.experimental import pallas as pl
from jax.experimental.pallas import tpu as pltpu

REAL_MIN = 1e-30
WEI_SHAPE_MAX = 10.0
EULER_GAMMA = 0.5772          # matches the truncated constant in the PyTorch source
SAMPLE_NUM = 50

_LANCZOS_COEF = (0.99999999999980993, 676.5203681218851, -1259.1392167224028,
                 771.32342877765313, -176.61502916214059, 12.507343278686905,
                 -0.13857109526572012, 9.9843695780195716e-6, 1.5056327351493116e-7)

_COMPILER_PARAMS = pltpu.CompilerParams(
    dimension_semantics=("arbitrary",),
    vmem_limit_bytes=32 * 1024 * 1024,
)


# ----------------------------------------------------------------------------
# helpers usable inside kernels
# ----------------------------------------------------------------------------
def _log_max(x):
    return jnp.log(jnp.maximum(x, REAL_MIN))


def _softplus(x):
    # numerically-stable softplus (matches F.softplus within f32 tolerance)
    return jnp.maximum(x, 0.0) + jnp.log(1.0 + jnp.exp(-jnp.abs(x)))


def _gamma_1p(k):
    # Gamma(1 + k) for k in [1e-30, 10] via Lanczos (g=7, 9 coeffs); replaces exp(lgamma(1+k)).
    x = jnp.full_like(k, _LANCZOS_COEF[0])
    for i in range(1, 9):
        x = x + _LANCZOS_COEF[i] / (k + float(i))
    t = k + 7.5
    return jnp.sqrt(2.0 * jnp.pi) * jnp.exp((k + 0.5) * jnp.log(t) - t) * x


def _fullspec(shape):
    zeros = (0,) * len(shape)
    return pl.BlockSpec(shape, lambda *_, zeros=zeros: zeros)


# ----------------------------------------------------------------------------
# Kernel 1: fused upward pass  (all layers of tanh(masked-linear) in ONE launch)
# ----------------------------------------------------------------------------
def _make_upward_kernel(layer_num):
    def kernel(*refs):
        # refs: x, w_0..w_{L-1} (bf16, mask pre-folded), b_0..b_{L-1}, out: h_0..h_{L-1}
        x_ref = refs[0]
        w_refs = refs[1:1 + layer_num]
        b_refs = refs[1 + layer_num:1 + 2 * layer_num]
        h_refs = refs[1 + 2 * layer_num:]
        h = x_ref[...]
        for t in range(layer_num):
            y = jnp.dot(h.astype(jnp.bfloat16), w_refs[t][...],
                        preferred_element_type=jnp.float32) + b_refs[t][...]
            h = jnp.tanh(y)
            h_refs[t][...] = h
    return kernel


def upward_pass(x, h_wm, h_b):
    layer_num = len(h_wm)
    batch = x.shape[0]
    in_specs = ([_fullspec(x.shape)]
                + [_fullspec(w.shape) for w in h_wm]
                + [_fullspec(b.shape) for b in h_b])
    out_specs = tuple(_fullspec((batch, w.shape[1])) for w in h_wm)
    out_shape = tuple(jax.ShapeDtypeStruct((batch, w.shape[1]), jnp.float32) for w in h_wm)
    return pl.pallas_call(
        _make_upward_kernel(layer_num),
        grid=(1,),
        in_specs=in_specs,
        out_specs=out_specs,
        out_shape=out_shape,
        compiler_params=_COMPILER_PARAMS,
    )(x, *h_wm, *h_b)


# ----------------------------------------------------------------------------
# Kernel 2: all decoder distributions phi_t^T = softmax_V(alphas_t @ rho_t^T)
# (parameter-only; hoisted out of the per-batch path, ONE launch for all layers)
# ----------------------------------------------------------------------------
def _make_phi_kernel(layer_num):
    def kernel(*refs):
        # refs: rho_0, alphas_0..alphas_{L-1}, out: phi_0..phi_{L-1}
        a_refs = refs[1:1 + layer_num]
        phi_refs = refs[1 + layer_num:]
        prev = refs[0][...]                      # rho_0
        for t in range(layer_num):
            a = a_refs[t][...]                   # (K_t, emb) bf16
            logits = jax.lax.dot_general(a, prev, (((1,), (1,)), ((), ())),
                                         preferred_element_type=jnp.float32)   # (K_t, V_t)
            logits = logits - jnp.max(logits, axis=-1, keepdims=True)
            e = jnp.exp(logits)
            phi_refs[t][...] = e / jnp.sum(e, axis=-1, keepdims=True)           # f32
            prev = a                             # rho_{t+1} is tied to alphas_t
    return kernel


def phi_all(rho0, alphas):
    layer_num = len(alphas)
    v_dims = [rho0.shape[0]] + [a.shape[0] for a in alphas[:-1]]
    k_dims = [a.shape[0] for a in alphas]
    in_specs = [_fullspec(rho0.shape)] + [_fullspec(a.shape) for a in alphas]
    out_specs = tuple(_fullspec((k_dims[t], v_dims[t])) for t in range(layer_num))
    out_shape = tuple(jax.ShapeDtypeStruct((k_dims[t], v_dims[t]), jnp.float32)
                      for t in range(layer_num))
    return pl.pallas_call(
        _make_phi_kernel(layer_num),
        grid=(1,),
        in_specs=in_specs,
        out_specs=out_specs,
        out_shape=out_shape,
        compiler_params=_COMPILER_PARAMS,
    )(rho0, *alphas)


# ----------------------------------------------------------------------------
# Kernel 3: fused downward layer step
#   shape/scale heads -> clamps -> Gamma(1+k) correction -> Weibull MC mean -> ETM decode
# ----------------------------------------------------------------------------
def _down_tail(zs, zl, u, phi_t, k_ref, l_ref, theta_ref, pt_ref):
    k = jnp.clip(_softplus(zs), REAL_MIN, WEI_SHAPE_MAX)                 # (B, K)
    l = jnp.maximum(_softplus(zl), REAL_MIN) / _gamma_1p(k)              # (B, K)
    k_ref[...] = k
    l_ref[...] = l

    # Weibull reparameterization, fully vectorized over the pre-drawn (B, S, K) uniforms.
    base = -_log_max(1.0 - u)                                            # (B, S, K), >= 0
    # u == 0 -> base == 0 -> 0^k = 0 exactly (matches torch.pow); the 1e-38 clamp only
    # protects the discarded exp/log branch from -inf * 0. Intentional, do not "fix".
    powed = jnp.where(base > 0.0,
                      jnp.exp(k[:, None, :] * jnp.log(jnp.maximum(base, 1e-38))),
                      jnp.zeros_like(base))
    theta = l * jnp.mean(powed, axis=1)                                  # (B, K)
    theta_ref[...] = theta

    # ETM decode in f32 (phi_theta feeds log-based Poisson likelihood / KL terms).
    pt_ref[...] = jnp.dot(theta, phi_t, preferred_element_type=jnp.float32)  # (B, V)


def _down_top_kernel(h_ref, w_ref, b_ref, u_ref, phi_ref,
                     k_ref, l_ref, theta_ref, pt_ref):
    # topmost layer: encoder heads see only the hidden activation
    h16 = h_ref[...].astype(jnp.bfloat16)
    zs = jnp.dot(h16, w_ref[0], preferred_element_type=jnp.float32) + b_ref[0]
    zl = jnp.dot(h16, w_ref[1], preferred_element_type=jnp.float32) + b_ref[1]
    _down_tail(zs, zl, u_ref[...], phi_ref[...], k_ref, l_ref, theta_ref, pt_ref)


def _down_mid_kernel(h_ref, ptp_ref, wh_ref, wp_ref, b_ref, u_ref, phi_ref,
                     k_ref, l_ref, theta_ref, pt_ref):
    # lower layers: the torch concat([hidden, phi_theta_{t+1}]) @ W is fused as two summed dots
    h16 = h_ref[...].astype(jnp.bfloat16)
    p16 = ptp_ref[...].astype(jnp.bfloat16)
    zs = (jnp.dot(h16, wh_ref[0], preferred_element_type=jnp.float32)
          + jnp.dot(p16, wp_ref[0], preferred_element_type=jnp.float32) + b_ref[0])
    zl = (jnp.dot(h16, wh_ref[1], preferred_element_type=jnp.float32)
          + jnp.dot(p16, wp_ref[1], preferred_element_type=jnp.float32) + b_ref[1])
    _down_tail(zs, zl, u_ref[...], phi_ref[...], k_ref, l_ref, theta_ref, pt_ref)


def _down_out(batch, K, V):
    out_specs = (_fullspec((batch, K)), _fullspec((batch, K)),
                 _fullspec((batch, K)), _fullspec((batch, V)))
    out_shape = (jax.ShapeDtypeStruct((batch, K), jnp.float32),
                 jax.ShapeDtypeStruct((batch, K), jnp.float32),
                 jax.ShapeDtypeStruct((batch, K), jnp.float32),
                 jax.ShapeDtypeStruct((batch, V), jnp.float32))
    return out_specs, out_shape


def down_layer_top(h, wh, b, u, phi_t):
    batch, K, V = h.shape[0], wh.shape[2], phi_t.shape[1]
    out_specs, out_shape = _down_out(batch, K, V)
    return pl.pallas_call(
        _down_top_kernel,
        grid=(1,),
        in_specs=[_fullspec(h.shape), _fullspec(wh.shape), _fullspec(b.shape),
                  _fullspec(u.shape), _fullspec(phi_t.shape)],
        out_specs=out_specs,
        out_shape=out_shape,
        compiler_params=_COMPILER_PARAMS,
    )(h, wh, b, u, phi_t)


def down_layer_mid(h, pt_prev, wh, wp, b, u, phi_t):
    batch, K, V = h.shape[0], wh.shape[2], phi_t.shape[1]
    out_specs, out_shape = _down_out(batch, K, V)
    return pl.pallas_call(
        _down_mid_kernel,
        grid=(1,),
        in_specs=[_fullspec(h.shape), _fullspec(pt_prev.shape), _fullspec(wh.shape),
                  _fullspec(wp.shape), _fullspec(b.shape), _fullspec(u.shape),
                  _fullspec(phi_t.shape)],
        out_specs=out_specs,
        out_shape=out_shape,
        compiler_params=_COMPILER_PARAMS,
    )(h, pt_prev, wh, wp, b, u, phi_t)


# ----------------------------------------------------------------------------
# Losses (plain JAX glue; lgamma has no Mosaic lowering).
# All inputs are batch-major (B, F); original divides by batch (= shape[1] of (F, B)).
# ----------------------------------------------------------------------------
def log_max(x):
    return jnp.log(jnp.maximum(x, REAL_MIN))


def compute_loss(x_bm, re_x_bm):
    likelihood = jnp.sum(x_bm * log_max(re_x_bm) - re_x_bm - jax.lax.lgamma(x_bm + 1.0))
    return -likelihood / x_bm.shape[0]


def kl_gamwei(gam_shape, gam_scale, wei_shape_res, wei_scale):
    part1 = (gam_shape * log_max(wei_scale)
             - EULER_GAMMA * gam_shape * wei_shape_res + log_max(wei_shape_res))
    part2 = -gam_scale * wei_scale * jnp.exp(jax.lax.lgamma(1.0 + wei_shape_res))
    part3 = (EULER_GAMMA + 1.0 + gam_shape * log_max(gam_scale)
             - jax.lax.lgamma(gam_shape))
    kl = part1 + part2 + part3
    return -jnp.sum(kl) / wei_scale.shape[0]


# ----------------------------------------------------------------------------
# Parameter init (deterministic synthetic stand-in for the file-based masks).
# The static binary mask is folded into the weight once, and all matmul weights
# are pre-cast to bf16 (half the weight DMA, no in-kernel cast).
# ----------------------------------------------------------------------------
def init_params(key, cfg):
    vocab = cfg["vocab_size"]
    hidden = list(cfg["hidden_size"])
    topics = [vocab] + list(cfg["topic_size"])
    emb = cfg["embed_size"]
    layer_num = len(topics) - 1
    keys = iter(jax.random.split(key, 8 * layer_num + 8))

    p = {}
    in_dims = [vocab] + hidden[:-1]
    h_wm, h_b = [], []
    for t in range(layer_num):
        din, dout = in_dims[t], hidden[t]
        w = 0.1 * jax.random.normal(next(keys), (din, dout), jnp.float32)
        m = jax.random.bernoulli(next(keys), 0.7, (din, dout)).astype(jnp.float32)
        h_wm.append((w * m).astype(jnp.bfloat16))        # pre-masked, pre-cast weight
        h_b.append(jnp.zeros((1, dout), jnp.float32))
    p["h_wm"], p["h_b"] = h_wm, h_b

    # shape + scale encoders: hidden-rows block (2, hidden, K) and, for non-top layers,
    # phi_theta-rows block (2, topics[t+1], K)  (torch concat order: [hidden | phi_theta])
    enc_wh, enc_wp, enc_b = [], [], []
    for t in range(layer_num):
        dout = topics[t + 1]
        ws_h = 0.1 * jax.random.normal(next(keys), (hidden[t], dout), jnp.float32)
        wl_h = 0.1 * jax.random.normal(next(keys), (hidden[t], dout), jnp.float32)
        enc_wh.append(jnp.stack([ws_h, wl_h], axis=0).astype(jnp.bfloat16))
        if t < layer_num - 1:
            dp = topics[t + 1]
            ws_p = 0.1 * jax.random.normal(next(keys), (dp, dout), jnp.float32)
            wl_p = 0.1 * jax.random.normal(next(keys), (dp, dout), jnp.float32)
            enc_wp.append(jnp.stack([ws_p, wl_p], axis=0).astype(jnp.bfloat16))
        else:
            enc_wp.append(None)
        enc_b.append(jnp.zeros((2, 1, dout), jnp.float32))
    p["enc_wh"], p["enc_wp"], p["enc_b"] = enc_wh, enc_wp, enc_b

    # decoders (Conv1DSoftmaxEtm): rho[t+1] tied to alphas[t] as in the module
    alphas = [(0.02 * jax.random.normal(next(keys), (topics[t + 1], emb), jnp.float32)
               ).astype(jnp.bfloat16) for t in range(layer_num)]
    rho0 = (0.02 * jax.random.normal(next(keys), (vocab, emb), jnp.float32)).astype(jnp.bfloat16)
    p["alphas"], p["rho0"] = alphas, rho0
    return p


# ----------------------------------------------------------------------------
# Forward pass (mirrors GBN_model.forward)
# ----------------------------------------------------------------------------
def gbn_forward(params, x, key, cfg):
    topics = [cfg["vocab_size"]] + list(cfg["topic_size"])
    layer_num = len(topics) - 1
    batch = x.shape[0]

    # upward pass: all tanh(masked-linear) layers in one fused launch
    hidden_list = upward_pass(x, params["h_wm"], params["h_b"])

    # parameter-only decoder distributions, hoisted out of the per-batch path
    phis = phi_all(params["rho0"], params["alphas"])

    # pre-drawn U[0,1) samples for the Weibull reparameterization (jax.random;
    # pltpu.prng_* has no interpret/CPU lowering)
    u_keys = jax.random.split(key, layer_num)
    uniforms = [jax.random.uniform(u_keys[t], (batch, SAMPLE_NUM, topics[t + 1]), jnp.float32)
                for t in range(layer_num)]

    k_rec = [None] * layer_num
    l = [None] * layer_num
    theta = [None] * layer_num
    phi_theta = [None] * layer_num

    # downward pass: one fused kernel per layer (sequential dependency across layers)
    for t in range(layer_num - 1, -1, -1):
        if t == layer_num - 1:
            k_t, l_t, th_t, pt_t = down_layer_top(
                hidden_list[t], params["enc_wh"][t], params["enc_b"][t],
                uniforms[t], phis[t])
        else:
            k_t, l_t, th_t, pt_t = down_layer_mid(
                hidden_list[t], phi_theta[t + 1], params["enc_wh"][t], params["enc_wp"][t],
                params["enc_b"][t], uniforms[t], phis[t])
        k_rec[t], l[t], theta[t], phi_theta[t] = k_t, l_t, th_t, pt_t

    # losses / likelihoods (all batch-major; normalization by batch matches the original)
    one = jnp.float32(1.0)
    loss = [None] * (layer_num + 1)
    likelihood = [None] * (layer_num + 1)
    for t in range(layer_num + 1):
        if t == 0:
            loss[t] = compute_loss(x, phi_theta[0])
            likelihood[t] = loss[t]
        elif t == layer_num:
            loss[t] = kl_gamwei(one, one, k_rec[t - 1], l[t - 1])
            likelihood[t] = loss[t]
        else:
            loss[t] = kl_gamwei(phi_theta[t], one, k_rec[t - 1], l[t - 1])
            likelihood[t] = compute_loss(theta[t - 1], phi_theta[t])

    # return in the original (features, batch) layout
    phi_theta_out = [pt.T for pt in phi_theta]
    theta_out = [th.T for th in theta]
    rho0_f32 = params["rho0"].astype(jnp.float32)
    alphas0_f32 = params["alphas"][0].astype(jnp.float32)
    topic_gene = jnp.dot(rho0_f32, alphas0_f32.T)
    gene_embedding = alphas0_f32
    topic_embedding = rho0_f32
    return (phi_theta_out, theta_out, loss, likelihood,
            topic_gene, gene_embedding, topic_embedding)


# ----------------------------------------------------------------------------
# main
# ----------------------------------------------------------------------------
if __name__ == "__main__":
    cfg = dict(vocab_size=32, hidden_size=[32, 16], topic_size=[16, 8], embed_size=16)
    batch = 8

    key = jax.random.PRNGKey(0)
    pkey, xkey, ekey = jax.random.split(key, 3)
    params = init_params(pkey, cfg)
    # gene-count style input (batch, vocab)
    x = jax.random.poisson(xkey, 3.0, (batch, cfg["vocab_size"])).astype(jnp.float32)

    fwd = jax.jit(lambda p, xx, kk: gbn_forward(p, xx, kk, cfg))
    out = fwd(params, x, ekey)
    jax.block_until_ready(out)
    print("KERNEL_OK")
</pallas_src>

<mosaic_0001>
module attributes {stable_mosaic.version = 11 : i64} {
  func.func @kernel(%arg0: i32, %arg1: memref<8x32xf32, #tpu.memory_space<vmem>>, %arg2: memref<32x32xbf16, #tpu.memory_space<vmem>>, %arg3: memref<32x16xbf16, #tpu.memory_space<vmem>>, %arg4: memref<1x32xf32, #tpu.memory_space<vmem>>, %arg5: memref<1x16xf32, #tpu.memory_space<vmem>>, %arg6: memref<8x32xf32, #tpu.memory_space<vmem>>, %arg7: memref<8x16xf32, #tpu.memory_space<vmem>>) attributes {dimension_semantics = [#tpu.dimension_semantics<arbitrary>], iteration_bounds = array<i64: 1>, scalar_prefetch = 0 : i64, scratch_operands = 0 : i64, tpu.core_type = #tpu.core_type<tc>, window_params = [{pipeline_mode = #tpu.pipeline_mode<synchronous>, transform_indices = @transform_0, window_bounds = array<i64: 8, 32>}, {pipeline_mode = #tpu.pipeline_mode<synchronous>, transform_indices = @transform_1, window_bounds = array<i64: 32, 32>}, {pipeline_mode = #tpu.pipeline_mode<synchronous>, transform_indices = @transform_2, window_bounds = array<i64: 32, 16>}, {pipeline_mode = #tpu.pipeline_mode<synchronous>, transform_indices = @transform_3, window_bounds = array<i64: 1, 32>}, {pipeline_mode = #tpu.pipeline_mode<synchronous>, transform_indices = @transform_4, window_bounds = array<i64: 1, 16>}, {pipeline_mode = #tpu.pipeline_mode<synchronous>, transform_indices = @transform_5, window_bounds = array<i64: 8, 32>}, {pipeline_mode = #tpu.pipeline_mode<synchronous>, transform_indices = @transform_6, window_bounds = array<i64: 8, 16>}]} {
    %c0 = arith.constant 0 : index
    %c0_0 = arith.constant 0 : index
    %0 = vector.load %arg1[%c0, %c0_0] : memref<8x32xf32, #tpu.memory_space<vmem>>, vector<8x32xf32>
    %1 = arith.truncf %0 : vector<8x32xf32> to vector<8x32xbf16>
    %c0_1 = arith.constant 0 : index
    %c0_2 = arith.constant 0 : index
    %2 = vector.load %arg2[%c0_1, %c0_2] : memref<32x32xbf16, #tpu.memory_space<vmem>>, vector<32x32xbf16>
    %cst = arith.constant dense<0.000000e+00> : vector<8x32xf32>
    %3 = tpu.matmul %1, %2, %cst {dimension_numbers = #tpu.dot_dimension_numbers<[1], [0], [0], [1], [0, 0, 1, 1], [], []>} : vector<8x32xbf16>, vector<32x32xbf16>, vector<8x32xf32> -> vector<8x32xf32>
    %c0_3 = arith.constant 0 : index
    %c0_4 = arith.constant 0 : index
    %4 = vector.load %arg4[%c0_3, %c0_4] : memref<1x32xf32, #tpu.memory_space<vmem>>, vector<1x32xf32>
    %5 = vector.broadcast %4 : vector<1x32xf32> to vector<8x32xf32>
    %6 = arith.addf %3, %5 : vector<8x32xf32>
    %7 = math.tanh %6 : vector<8x32xf32>
    %c0_5 = arith.constant 0 : index
    %c0_6 = arith.constant 0 : index
    %8 = vector.load %arg6[%c0_5, %c0_6] : memref<8x32xf32, #tpu.memory_space<vmem>>, vector<8x32xf32>
    tpu.vector_store %arg6[%c0_5, %c0_6], %7 {strides = array<i32>} : memref<8x32xf32, #tpu.memory_space<vmem>>, vector<8x32xf32>,
    %9 = arith.truncf %7 : vector<8x32xf32> to vector<8x32xbf16>
    %c0_7 = arith.constant 0 : index
    %c0_8 = arith.constant 0 : index
    %10 = vector.load %arg3[%c0_7, %c0_8] : memref<32x16xbf16, #tpu.memory_space<vmem>>, vector<32x16xbf16>
    %cst_9 = arith.constant dense<0.000000e+00> : vector<8x16xf32>
    %11 = tpu.matmul %9, %10, %cst_9 {dimension_numbers = #tpu.dot_dimension_numbers<[1], [0], [0], [1], [0, 0, 1, 1], [], []>} : vector<8x32xbf16>, vector<32x16xbf16>, vector<8x16xf32> -> vector<8x16xf32>
    %c0_10 = arith.constant 0 : index
    %c0_11 = arith.constant 0 : index
    %12 = vector.load %arg5[%c0_10, %c0_11] : memref<1x16xf32, #tpu.memory_space<vmem>>, vector<1x16xf32>
    %13 = vector.broadcast %12 : vector<1x16xf32> to vector<8x16xf32>
    %14 = arith.addf %11, %13 : vector<8x16xf32>
    %15 = math.tanh %14 : vector<8x16xf32>
    %c0_12 = arith.constant 0 : index
    %c0_13 = arith.constant 0 : index
    %16 = vector.load %arg7[%c0_12, %c0_13] : memref<8x16xf32, #tpu.memory_space<vmem>>, vector<8x16xf32>
    tpu.vector_store %arg7[%c0_12, %c0_13], %15 {strides = array<i32>} : memref<8x16xf32, #tpu.memory_space<vmem>>, vector<8x16xf32>,
    return
  }
  func.func @transform_0(%arg0: i32) -> (i32, i32) {
    %c0_i32 = arith.constant 0 : i32
    %c0_i32_0 = arith.constant 0 : i32
    %c0_i32_1 = arith.constant 0 : i32
    return %c0_i32, %c0_i32_0 : i32, i32
  }
  func.func @transform_1(%arg0: i32) -> (i32, i32) {
    %c0_i32 = arith.constant 0 : i32
    %c0_i32_0 = arith.constant 0 : i32
    %c0_i32_1 = arith.constant 0 : i32
    return %c0_i32, %c0_i32_0 : i32, i32
  }
  func.func @transform_2(%arg0: i32) -> (i32, i32) {
    %c0_i32 = arith.constant 0 : i32
    %c0_i32_0 = arith.constant 0 : i32
    %c0_i32_1 = arith.constant 0 : i32
    return %c0_i32, %c0_i32_0 : i32, i32
  }
  func.func @transform_3(%arg0: i32) -> (i32, i32) {
    %c0_i32 = arith.constant 0 : i32
    %c0_i32_0 = arith.constant 0 : i32
    %c0_i32_1 = arith.constant 0 : i32
    return %c0_i32, %c0_i32_0 : i32, i32
  }
  func.func @transform_4(%arg0: i32) -> (i32, i32) {
    %c0_i32 = arith.constant 0 : i32
    %c0_i32_0 = arith.constant 0 : i32
    %c0_i32_1 = arith.constant 0 : i32
    return %c0_i32, %c0_i32_0 : i32, i32
  }
  func.func @transform_5(%arg0: i32) -> (i32, i32) {
    %c0_i32 = arith.constant 0 : i32
    %c0_i32_0 = arith.constant 0 : i32
    %c0_i32_1 = arith.constant 0 : i32
    return %c0_i32, %c0_i32_0 : i32, i32
  }
  func.func @transform_6(%arg0: i32) -> (i32, i32) {
    %c0_i32 = arith.constant 0 : i32
    %c0_i32_0 = arith.constant 0 : i32
    %c0_i32_1 = arith.constant 0 : i32
    return %c0_i32, %c0_i32_0 : i32, i32
  }
}

module attributes {stable_mosaic.version = 11 : i64} {
  func.func @kernel(%arg0: i32, %arg1: memref<32x16xbf16, #tpu.memory_space<vmem>>, %arg2: memref<16x16xbf16, #tpu.memory_space<vmem>>, %arg3: memref<8x16xbf16, #tpu.memory_space<vmem>>, %arg4: memref<16x32xf32, #tpu.memory_space<vmem>>, %arg5: memref<8x16xf32, #tpu.memory_space<vmem>>) attributes {dimension_semantics = [#tpu.dimension_semantics<arbitrary>], iteration_bounds = array<i64: 1>, scalar_prefetch = 0 : i64, scratch_operands = 0 : i64, tpu.core_type = #tpu.core_type<tc>, window_params = [{pipeline_mode = #tpu.pipeline_mode<synchronous>, transform_indices = @transform_0, window_bounds = array<i64: 32, 16>}, {pipeline_mode = #tpu.pipeline_mode<synchronous>, transform_indices = @transform_1, window_bounds = array<i64: 16, 16>}, {pipeline_mode = #tpu.pipeline_mode<synchronous>, transform_indices = @transform_2, window_bounds = array<i64: 8, 16>}, {pipeline_mode = #tpu.pipeline_mode<synchronous>, transform_indices = @transform_3, window_bounds = array<i64: 16, 32>}, {pipeline_mode = #tpu.pipeline_mode<synchronous>, transform_indices = @transform_4, window_bounds = array<i64: 8, 16>}]} {
    %c0 = arith.constant 0 : index
    %c0_0 = arith.constant 0 : index
    %0 = vector.load %arg1[%c0, %c0_0] : memref<32x16xbf16, #tpu.memory_space<vmem>>, vector<32x16xbf16>
    %c0_1 = arith.constant 0 : index
    %c0_2 = arith.constant 0 : index
    %1 = vector.load %arg2[%c0_1, %c0_2] : memref<16x16xbf16, #tpu.memory_space<vmem>>, vector<16x16xbf16>
    %cst = arith.constant dense<0.000000e+00> : vector<16x32xf32>
    %2 = tpu.matmul %1, %0, %cst {dimension_numbers = #tpu.dot_dimension_numbers<[1], [1], [0], [0], [0, 0, 1, 0], [], []>} : vector<16x16xbf16>, vector<32x16xbf16>, vector<16x32xf32> -> vector<16x32xf32>
    %cst_3 = arith.constant dense<0xFF800000> : vector<16xf32>
    %3 = vector.multi_reduction <maximumf>, %2, %cst_3 [1] : vector<16x32xf32> to vector<16xf32>
    %4 = vector.shape_cast %3 : vector<16xf32> to vector<16x1xf32>
    %5 = vector.broadcast %4 : vector<16x1xf32> to vector<16x32xf32>
    %6 = arith.subf %2, %5 : vector<16x32xf32>
    %7 = math.exp %6 : vector<16x32xf32>
    %cst_4 = arith.constant dense<0.000000e+00> : vector<16xf32>
    %8 = vector.multi_reduction <add>, %7, %cst_4 [1] : vector<16x32xf32> to vector<16xf32>
    %9 = vector.shape_cast %8 : vector<16xf32> to vector<16x1xf32>
    %10 = vector.broadcast %9 : vector<16x1xf32> to vector<16x32xf32>
    %11 = arith.divf %7, %10 : vector<16x32xf32>
    %c0_5 = arith.constant 0 : index
    %c0_6 = arith.constant 0 : index
    %12 = vector.load %arg4[%c0_5, %c0_6] : memref<16x32xf32, #tpu.memory_space<vmem>>, vector<16x32xf32>
    tpu.vector_store %arg4[%c0_5, %c0_6], %11 {strides = array<i32>} : memref<16x32xf32, #tpu.memory_space<vmem>>, vector<16x32xf32>,
    %c0_7 = arith.constant 0 : index
    %c0_8 = arith.constant 0 : index
    %13 = vector.load %arg3[%c0_7, %c0_8] : memref<8x16xbf16, #tpu.memory_space<vmem>>, vector<8x16xbf16>
    %cst_9 = arith.constant dense<0.000000e+00> : vector<8x16xf32>
    %14 = tpu.matmul %13, %1, %cst_9 {dimension_numbers = #tpu.dot_dimension_numbers<[1], [1], [0], [0], [0, 0, 1, 0], [], []>} : vector<8x16xbf16>, vector<16x16xbf16>, vector<8x16xf32> -> vector<8x16xf32>
    %cst_10 = arith.constant dense<0xFF800000> : vector<8xf32>
    %15 = vector.multi_reduction <maximumf>, %14, %cst_10 [1] : vector<8x16xf32> to vector<8xf32>
    %16 = vector.shape_cast %15 : vector<8xf32> to vector<8x1xf32>
    %17 = vector.broadcast %16 : vector<8x1xf32> to vector<8x16xf32>
    %18 = arith.subf %14, %17 : vector<8x16xf32>
    %19 = math.exp %18 : vector<8x16xf32>
    %cst_11 = arith.constant dense<0.000000e+00> : vector<8xf32>
    %20 = vector.multi_reduction <add>, %19, %cst_11 [1] : vector<8x16xf32> to vector<8xf32>
    %21 = vector.shape_cast %20 : vector<8xf32> to vector<8x1xf32>
    %22 = vector.broadcast %21 : vector<8x1xf32> to vector<8x16xf32>
    %23 = arith.divf %19, %22 : vector<8x16xf32>
    %c0_12 = arith.constant 0 : index
    %c0_13 = arith.constant 0 : index
    %24 = vector.load %arg5[%c0_12, %c0_13] : memref<8x16xf32, #tpu.memory_space<vmem>>, vector<8x16xf32>
    tpu.vector_store %arg5[%c0_12, %c0_13], %23 {strides = array<i32>} : memref<8x16xf32, #tpu.memory_space<vmem>>, vector<8x16xf32>,
    return
  }
  func.func @transform_0(%arg0: i32) -> (i32, i32) {
    %c0_i32 = arith.constant 0 : i32
    %c0_i32_0 = arith.constant 0 : i32
    %c0_i32_1 = arith.constant 0 : i32
    return %c0_i32, %c0_i32_0 : i32, i32
  }
  func.func @transform_1(%arg0: i32) -> (i32, i32) {
    %c0_i32 = arith.constant 0 : i32
    %c0_i32_0 = arith.constant 0 : i32
    %c0_i32_1 = arith.constant 0 : i32
    return %c0_i32, %c0_i32_0 : i32, i32
  }
  func.func @transform_2(%arg0: i32) -> (i32, i32) {
    %c0_i32 = arith.constant 0 : i32
    %c0_i32_0 = arith.constant 0 : i32
    %c0_i32_1 = arith.constant 0 : i32
    return %c0_i32, %c0_i32_0 : i32, i32
  }
  func.func @transform_3(%arg0: i32) -> (i32, i32) {
    %c0_i32 = arith.constant 0 : i32
    %c0_i32_0 = arith.constant 0 : i32
    %c0_i32_1 = arith.constant 0 : i32
    return %c0_i32, %c0_i32_0 : i32, i32
  }
  func.func @transform_4(%arg0: i32) -> (i32, i32) {
    %c0_i32 = arith.constant 0 : i32
    %c0_i32_0 = arith.constant 0 : i32
    %c0_i32_1 = arith.constant 0 : i32
    return %c0_i32, %c0_i32_0 : i32, i32
  }
}

module attributes {stable_mosaic.version = 11 : i64} {
  func.func @_down_top_kernel(%arg0: i32, %arg1: memref<8x16xf32, #tpu.memory_space<vmem>>, %arg2: memref<2x16x8xbf16, #tpu.memory_space<vmem>>, %arg3: memref<2x1x8xf32, #tpu.memory_space<vmem>>, %arg4: memref<8x50x8xf32, #tpu.memory_space<vmem>>, %arg5: memref<8x16xf32, #tpu.memory_space<vmem>>, %arg6: memref<8x8xf32, #tpu.memory_space<vmem>>, %arg7: memref<8x8xf32, #tpu.memory_space<vmem>>, %arg8: memref<8x8xf32, #tpu.memory_space<vmem>>, %arg9: memref<8x16xf32, #tpu.memory_space<vmem>>) attributes {dimension_semantics = [#tpu.dimension_semantics<arbitrary>], iteration_bounds = array<i64: 1>, scalar_prefetch = 0 : i64, scratch_operands = 0 : i64, tpu.core_type = #tpu.core_type<tc>, window_params = [{pipeline_mode = #tpu.pipeline_mode<synchronous>, transform_indices = @transform_0, window_bounds = array<i64: 8, 16>}, {pipeline_mode = #tpu.pipeline_mode<synchronous>, transform_indices = @transform_1, window_bounds = array<i64: 2, 16, 8>}, {pipeline_mode = #tpu.pipeline_mode<synchronous>, transform_indices = @transform_2, window_bounds = array<i64: 2, 1, 8>}, {pipeline_mode = #tpu.pipeline_mode<synchronous>, transform_indices = @transform_3, window_bounds = array<i64: 8, 50, 8>}, {pipeline_mode = #tpu.pipeline_mode<synchronous>, transform_indices = @transform_4, window_bounds = array<i64: 8, 16>}, {pipeline_mode = #tpu.pipeline_mode<synchronous>, transform_indices = @transform_5, window_bounds = array<i64: 8, 8>}, {pipeline_mode = #tpu.pipeline_mode<synchronous>, transform_indices = @transform_6, window_bounds = array<i64: 8, 8>}, {pipeline_mode = #tpu.pipeline_mode<synchronous>, transform_indices = @transform_7, window_bounds = array<i64: 8, 8>}, {pipeline_mode = #tpu.pipeline_mode<synchronous>, transform_indices = @transform_8, window_bounds = array<i64: 8, 16>}]} {
    %c0 = arith.constant 0 : index
    %c0_0 = arith.constant 0 : index
    %0 = vector.load %arg1[%c0, %c0_0] : memref<8x16xf32, #tpu.memory_space<vmem>>, vector<8x16xf32>
    %1 = arith.truncf %0 : vector<8x16xf32> to vector<8x16xbf16>
    %c0_1 = arith.constant 0 : index
    %c0_2 = arith.constant 0 : index
    %c0_3 = arith.constant 0 : index
    %2 = vector.load %arg2[%c0_1, %c0_2, %c0_3] : memref<2x16x8xbf16, #tpu.memory_space<vmem>>, vector<1x16x8xbf16>
    %3 = vector.shape_cast %2 : vector<1x16x8xbf16> to vector<16x8xbf16>
    %cst = arith.constant dense<0.000000e+00> : vector<8x8xf32>
    %4 = tpu.matmul %1, %3, %cst {dimension_numbers = #tpu.dot_dimension_numbers<[1], [0], [0], [1], [0, 0, 1, 1], [], []>} : vector<8x16xbf16>, vector<16x8xbf16>, vector<8x8xf32> -> vector<8x8xf32>
    %c0_4 = arith.constant 0 : index
    %c0_5 = arith.constant 0 : index
    %c0_6 = arith.constant 0 : index
    %5 = vector.load %arg3[%c0_4, %c0_5, %c0_6] : memref<2x1x8xf32, #tpu.memory_space<vmem>>, vector<1x1x8xf32>
    %6 = vector.shape_cast %5 : vector<1x1x8xf32> to vector<1x8xf32>
    %7 = vector.broadcast %6 : vector<1x8xf32> to vector<8x8xf32>
    %8 = arith.addf %4, %7 : vector<8x8xf32>
    %c1 = arith.constant 1 : index
    %c0_7 = arith.constant 0 : index
    %c0_8 = arith.constant 0 : index
    %9 = vector.load %arg2[%c1, %c0_7, %c0_8] : memref<2x16x8xbf16, #tpu.memory_space<vmem>>, vector<1x16x8xbf16>
    %10 = vector.shape_cast %9 : vector<1x16x8xbf16> to vector<16x8xbf16>
    %cst_9 = arith.constant dense<0.000000e+00> : vector<8x8xf32>
    %11 = tpu.matmul %1, %10, %cst_9 {dimension_numbers = #tpu.dot_dimension_numbers<[1], [0], [0], [1], [0, 0, 1, 1], [], []>} : vector<8x16xbf16>, vector<16x8xbf16>, vector<8x8xf32> -> vector<8x8xf32>
    %c1_10 = arith.constant 1 : index
    %c0_11 = arith.constant 0 : index
    %c0_12 = arith.constant 0 : index
    %12 = vector.load %arg3[%c1_10, %c0_11, %c0_12] : memref<2x1x8xf32, #tpu.memory_space<vmem>>, vector<1x1x8xf32>
    %13 = vector.shape_cast %12 : vector<1x1x8xf32> to vector<1x8xf32>
    %14 = vector.broadcast %13 : vector<1x8xf32> to vector<8x8xf32>
    %15 = arith.addf %11, %14 : vector<8x8xf32>
    %c0_13 = arith.constant 0 : index
    %c0_14 = arith.constant 0 : index
    %c0_15 = arith.constant 0 : index
    %16 = vector.load %arg4[%c0_13, %c0_14, %c0_15] : memref<8x50x8xf32, #tpu.memory_space<vmem>>, vector<8x50x8xf32>
    %c0_16 = arith.constant 0 : index
    %c0_17 = arith.constant 0 : index
    %17 = vector.load %arg5[%c0_16, %c0_17] : memref<8x16xf32, #tpu.memory_space<vmem>>, vector<8x16xf32>
    %cst_18 = arith.constant 0.000000e+00 : f32
    %18 = vector.broadcast %cst_18 : f32 to vector<8x8xf32>
    %19 = arith.maximumf %8, %18 : vector<8x8xf32>
    %20 = math.absf %8 : vector<8x8xf32>
    %cst_19 = arith.constant 0.000000e+00 : f32
    %21 = vector.broadcast %cst_19 : f32 to vector<8x8xf32>
    %22 = arith.subf %21, %20 : vector<8x8xf32>
    %23 = math.exp %22 : vector<8x8xf32>
    %cst_20 = arith.constant 1.000000e+00 : f32
    %24 = vector.broadcast %cst_20 : f32 to vector<8x8xf32>
    %25 = arith.addf %24, %23 : vector<8x8xf32>
    %26 = math.log %25 : vector<8x8xf32>
    %27 = arith.addf %19, %26 : vector<8x8xf32>
    %cst_21 = arith.constant 1.000000e-30 : f32
    %cst_22 = arith.constant 1.000000e+01 : f32
    %28 = vector.broadcast %cst_21 : f32 to vector<8x8xf32>
    %29 = arith.maximumf %28, %27 : vector<8x8xf32>
    %30 = vector.broadcast %cst_22 : f32 to vector<8x8xf32>
    %31 = arith.minimumf %30, %29 : vector<8x8xf32>
    %cst_23 = arith.constant 0.000000e+00 : f32
    %32 = vector.broadcast %cst_23 : f32 to vector<8x8xf32>
    %33 = arith.maximumf %15, %32 : vector<8x8xf32>
    %34 = math.absf %15 : vector<8x8xf32>
    %cst_24 = arith.constant 0.000000e+00 : f32
    %35 = vector.broadcast %cst_24 : f32 to vector<8x8xf32>
    %36 = arith.subf %35, %34 : vector<8x8xf32>
    %37 = math.exp %36 : vector<8x8xf32>
    %cst_25 = arith.constant 1.000000e+00 : f32
    %38 = vector.broadcast %cst_25 : f32 to vector<8x8xf32>
    %39 = arith.addf %38, %37 : vector<8x8xf32>
    %40 = math.log %39 : vector<8x8xf32>
    %41 = arith.addf %33, %40 : vector<8x8xf32>
    %cst_26 = arith.constant 1.000000e-30 : f32
    %42 = vector.broadcast %cst_26 : f32 to vector<8x8xf32>
    %43 = arith.maximumf %41, %42 : vector<8x8xf32>
    %cst_27 = arith.constant 1.000000e+00 : f32
    %44 = vector.broadcast %cst_27 : f32 to vector<8x8xf32>
    %cst_28 = arith.constant 1.000000e+00 : f32
    %45 = vector.broadcast %cst_28 : f32 to vector<8x8xf32>
    %46 = arith.addf %31, %45 : vector<8x8xf32>
    %cst_29 = arith.constant 676.520386 : f32
    %47 = vector.broadcast %cst_29 : f32 to vector<8x8xf32>
    %48 = arith.divf %47, %46 : vector<8x8xf32>
    %49 = arith.addf %44, %48 : vector<8x8xf32>
    %cst_30 = arith.constant 2.000000e+00 : f32
    %50 = vector.broadcast %cst_30 : f32 to vector<8x8xf32>
    %51 = arith.addf %31, %50 : vector<8x8xf32>
    %cst_31 = arith.constant -1259.13916 : f32
    %52 = vector.broadcast %cst_31 : f32 to vector<8x8xf32>
    %53 = arith.divf %52, %51 : vector<8x8xf32>
    %54 = arith.addf %49, %53 : vector<8x8xf32>
    %cst_32 = arith.constant 3.000000e+00 : f32
    %55 = vector.broadcast %cst_32 : f32 to vector<8x8xf32>
    %56 = arith.addf %31, %55 : vector<8x8xf32>
    %cst_33 = arith.constant 771.323425 : f32
    %57 = vector.broadcast %cst_33 : f32 to vector<8x8xf32>
    %58 = arith.divf %57, %56 : vector<8x8xf32>
    %59 = arith.addf %54, %58 : vector<8x8xf32>
    %cst_34 = arith.constant 4.000000e+00 : f32
    %60 = vector.broadcast %cst_34 : f32 to vector<8x8xf32>
    %61 = arith.addf %31, %60 : vector<8x8xf32>
    %cst_35 = arith.constant -176.615036 : f32
    %62 = vector.broadcast %cst_35 : f32 to vector<8x8xf32>
    %63 = arith.divf %62, %61 : vector<8x8xf32>
    %64 = arith.addf %59, %63 : vector<8x8xf32>
    %cst_36 = arith.constant 5.000000e+00 : f32
    %65 = vector.broadcast %cst_36 : f32 to vector<8x8xf32>
    %66 = arith.addf %31, %65 : vector<8x8xf32>
    %cst_37 = arith.constant 12.5073433 : f32
    %67 = vector.broadcast %cst_37 : f32 to vector<8x8xf32>
    %68 = arith.divf %67, %66 : vector<8x8xf32>
    %69 = arith.addf %64, %68 : vector<8x8xf32>
    %cst_38 = arith.constant 6.000000e+00 : f32
    %70 = vector.broadcast %cst_38 : f32 to vector<8x8xf32>
    %71 = arith.addf %31, %70 : vector<8x8xf32>
    %cst_39 = arith.constant -0.138571098 : f32
    %72 = vector.broadcast %cst_39 : f32 to vector<8x8xf32>
    %73 = arith.divf %72, %71 : vector<8x8xf32>
    %74 = arith.addf %69, %73 : vector<8x8xf32>
    %cst_40 = arith.constant 7.000000e+00 : f32
    %75 = vector.broadcast %cst_40 : f32 to vector<8x8xf32>
    %76 = arith.addf %31, %75 : vector<8x8xf32>
    %cst_41 = arith.constant 9.98436917E-6 : f32
    %77 = vector.broadcast %cst_41 : f32 to vector<8x8xf32>
    %78 = arith.divf %77, %76 : vector<8x8xf32>
    %79 = arith.addf %74, %78 : vector<8x8xf32>
    %cst_42 = arith.constant 8.000000e+00 : f32
    %80 = vector.broadcast %cst_42 : f32 to vector<8x8xf32>
    %81 = arith.addf %31, %80 : vector<8x8xf32>
    %cst_43 = arith.constant 1.50563267E-7 : f32
    %82 = vector.broadcast %cst_43 : f32 to vector<8x8xf32>
    %83 = arith.divf %82, %81 : vector<8x8xf32>
    %84 = arith.addf %79, %83 : vector<8x8xf32>
    %cst_44 = arith.constant 7.500000e+00 : f32
    %85 = vector.broadcast %cst_44 : f32 to vector<8x8xf32>
    %86 = arith.addf %31, %85 : vector<8x8xf32>
    %cst_45 = arith.constant 6.28318548 : f32
    %87 = math.sqrt %cst_45 : f32
    %cst_46 = arith.constant 5.000000e-01 : f32
    %88 = vector.broadcast %cst_46 : f32 to vector<8x8xf32>
    %89 = arith.addf %31, %88 : vector<8x8xf32>
    %90 = math.log %86 : vector<8x8xf32>
    %91 = arith.mulf %89, %90 : vector<8x8xf32>
    %92 = arith.subf %91, %86 : vector<8x8xf32>
    %93 = math.exp %92 : vector<8x8xf32>
    %94 = vector.broadcast %87 : f32 to vector<8x8xf32>
    %95 = arith.mulf %94, %93 : vector<8x8xf32>
    %96 = arith.mulf %95, %84 : vector<8x8xf32>
    %97 = arith.divf %43, %96 : vector<8x8xf32>
    %c0_47 = arith.constant 0 : index
    %c0_48 = arith.constant 0 : index
    %98 = vector.load %arg6[%c0_47, %c0_48] : memref<8x8xf32, #tpu.memory_space<vmem>>, vector<8x8xf32>
    tpu.vector_store %arg6[%c0_47, %c0_48], %31 {strides = array<i32>} : memref<8x8xf32, #tpu.memory_space<vmem>>, vector<8x8xf32>,
    %c0_49 = arith.constant 0 : index
    %c0_50 = arith.constant 0 : index
    %99 = vector.load %arg7[%c0_49, %c0_50] : memref<8x8xf32, #tpu.memory_space<vmem>>, vector<8x8xf32>
    tpu.vector_store %arg7[%c0_49, %c0_50], %97 {strides = array<i32>} : memref<8x8xf32, #tpu.memory_space<vmem>>, vector<8x8xf32>,
    %cst_51 = arith.constant 1.000000e+00 : f32
    %100 = vector.broadcast %cst_51 : f32 to vector<8x50x8xf32>
    %101 = arith.subf %100, %16 : vector<8x50x8xf32>
    %cst_52 = arith.constant 1.000000e-30 : f32
    %102 = vector.broadcast %cst_52 : f32 to vector<8x50x8xf32>
    %103 = arith.maximumf %101, %102 : vector<8x50x8xf32>
    %104 = math.log %103 : vector<8x50x8xf32>
    %cst_53 = arith.constant 0.000000e+00 : f32
    %105 = vector.broadcast %cst_53 : f32 to vector<8x50x8xf32>
    %106 = arith.subf %105, %104 : vector<8x50x8xf32>
    %cst_54 = arith.constant 0.000000e+00 : f32
    %107 = vector.broadcast %cst_54 : f32 to vector<8x50x8xf32>
    %108 = arith.cmpf ogt, %106, %107 : vector<8x50x8xf32>
    %109 = vector.shape_cast %31 : vector<8x8xf32> to vector<8x1x8xf32>
    %cst_55 = arith.constant 9.99999935E-39 : f32
    %110 = vector.broadcast %cst_55 : f32 to vector<8x50x8xf32>
    %111 = arith.maximumf %106, %110 : vector<8x50x8xf32>
    %112 = math.log %111 : vector<8x50x8xf32>
    %113 = vector.broadcast %109 : vector<8x1x8xf32> to vector<8x50x8xf32>
    %114 = arith.mulf %113, %112 : vector<8x50x8xf32>
    %115 = math.exp %114 : vector<8x50x8xf32>
    %cst_56 = arith.constant 0.000000e+00 : f32
    %116 = vector.broadcast %cst_56 : f32 to vector<8x50x8xf32>
    %117 = arith.select %108, %115, %116 : vector<8x50x8xi1>, vector<8x50x8xf32>
    %cst_57 = arith.constant dense<0.000000e+00> : vector<8x8xf32>
    %118 = vector.multi_reduction <add>, %117, %cst_57 [1] : vector<8x50x8xf32> to vector<8x8xf32>
    %cst_58 = arith.constant 5.000000e+01 : f32
    %119 = vector.broadcast %cst_58 : f32 to vector<8x8xf32>
    %120 = arith.divf %118, %119 : vector<8x8xf32>
    %121 = arith.mulf %97, %120 : vector<8x8xf32>
    %c0_59 = arith.constant 0 : index
    %c0_60 = arith.constant 0 : index
    %122 = vector.load %arg8[%c0_59, %c0_60] : memref<8x8xf32, #tpu.memory_space<vmem>>, vector<8x8xf32>
    tpu.vector_store %arg8[%c0_59, %c0_60], %121 {strides = array<i32>} : memref<8x8xf32, #tpu.memory_space<vmem>>, vector<8x8xf32>,
    %cst_61 = arith.constant dense<0.000000e+00> : vector<8x16xf32>
    %123 = tpu.matmul %121, %17, %cst_61 {dimension_numbers = #tpu.dot_dimension_numbers<[1], [0], [0], [1], [0, 0, 1, 1], [], []>} : vector<8x8xf32>, vector<8x16xf32>, vector<8x16xf32> -> vector<8x16xf32>
    %c0_62 = arith.constant 0 : index
    %c0_63 = arith.constant 0 : index
    %124 = vector.load %arg9[%c0_62, %c0_63] : memref<8x16xf32, #tpu.memory_space<vmem>>, vector<8x16xf32>
    tpu.vector_store %arg9[%c0_62, %c0_63], %123 {strides = array<i32>} : memref<8x16xf32, #tpu.memory_space<vmem>>, vector<8x16xf32>,
    return
  }
  func.func @transform_0(%arg0: i32) -> (i32, i32) {
    %c0_i32 = arith.constant 0 : i32
    %c0_i32_0 = arith.constant 0 : i32
    %c0_i32_1 = arith.constant 0 : i32
    return %c0_i32, %c0_i32_0 : i32, i32
  }
  func.func @transform_1(%arg0: i32) -> (i32, i32, i32) {
    %c0_i32 = arith.constant 0 : i32
    %c0_i32_0 = arith.constant 0 : i32
    %c0_i32_1 = arith.constant 0 : i32
    %c0_i32_2 = arith.constant 0 : i32
    return %c0_i32, %c0_i32_0, %c0_i32_1 : i32, i32, i32
  }
  func.func @transform_2(%arg0: i32) -> (i32, i32, i32) {
    %c0_i32 = arith.constant 0 : i32
    %c0_i32_0 = arith.constant 0 : i32
    %c0_i32_1 = arith.constant 0 : i32
    %c0_i32_2 = arith.constant 0 : i32
    return %c0_i32, %c0_i32_0, %c0_i32_1 : i32, i32, i32
  }
  func.func @transform_3(%arg0: i32) -> (i32, i32, i32) {
    %c0_i32 = arith.constant 0 : i32
    %c0_i32_0 = arith.constant 0 : i32
    %c0_i32_1 = arith.constant 0 : i32
    %c0_i32_2 = arith.constant 0 : i32
    return %c0_i32, %c0_i32_0, %c0_i32_1 : i32, i32, i32
  }
  func.func @transform_4(%arg0: i32) -> (i32, i32) {
    %c0_i32 = arith.constant 0 : i32
    %c0_i32_0 = arith.constant 0 : i32
    %c0_i32_1 = arith.constant 0 : i32
    return %c0_i32, %c0_i32_0 : i32, i32
  }
  func.func @transform_5(%arg0: i32) -> (i32, i32) {
    %c0_i32 = arith.constant 0 : i32
    %c0_i32_0 = arith.constant 0 : i32
    %c0_i32_1 = arith.constant 0 : i32
    return %c0_i32, %c0_i32_0 : i32, i32
  }
  func.func @transform_6(%arg0: i32) -> (i32, i32) {
    %c0_i32 = arith.constant 0 : i32
    %c0_i32_0 = arith.constant 0 : i32
    %c0_i32_1 = arith.constant 0 : i32
    return %c0_i32, %c0_i32_0 : i32, i32
  }
  func.func @transform_7(%arg0: i32) -> (i32, i32) {
    %c0_i32 = arith.constant 0 : i32
    %c0_i32_0 = arith.constant 0 : i32
    %c0_i32_1 = arith.constant 0 : i32
    return %c0_i32, %c0_i32_0 : i32, i32
  }
  func.func @transform_8(%arg0: i32) -> (i32, i32) {
    %c0_i32 = arith.constant 0 : i32
    %c0_i32_0 = arith.constant 0 : i32
    %c0_i32_1 = arith.constant 0 : i32
    return %c0_i32, %c0_i32_0 : i32, i32
  }
}

module attributes {stable_mosaic.version = 11 : i64} {
  func.func @_down_mid_kernel(%arg0: i32, %arg1: memref<8x32xf32, #tpu.memory_space<vmem>>, %arg2: memref<8x16xf32, #tpu.memory_space<vmem>>, %arg3: memref<2x32x16xbf16, #tpu.memory_space<vmem>>, %arg4: memref<2x16x16xbf16, #tpu.memory_space<vmem>>, %arg5: memref<2x1x16xf32, #tpu.memory_space<vmem>>, %arg6: memref<8x50x16xf32, #tpu.memory_space<vmem>>, %arg7: memref<16x32xf32, #tpu.memory_space<vmem>>, %arg8: memref<8x16xf32, #tpu.memory_space<vmem>>, %arg9: memref<8x16xf32, #tpu.memory_space<vmem>>, %arg10: memref<8x16xf32, #tpu.memory_space<vmem>>, %arg11: memref<8x32xf32, #tpu.memory_space<vmem>>) attributes {dimension_semantics = [#tpu.dimension_semantics<arbitrary>], iteration_bounds = array<i64: 1>, scalar_prefetch = 0 : i64, scratch_operands = 0 : i64, tpu.core_type = #tpu.core_type<tc>, window_params = [{pipeline_mode = #tpu.pipeline_mode<synchronous>, transform_indices = @transform_0, window_bounds = array<i64: 8, 32>}, {pipeline_mode = #tpu.pipeline_mode<synchronous>, transform_indices = @transform_1, window_bounds = array<i64: 8, 16>}, {pipeline_mode = #tpu.pipeline_mode<synchronous>, transform_indices = @transform_2, window_bounds = array<i64: 2, 32, 16>}, {pipeline_mode = #tpu.pipeline_mode<synchronous>, transform_indices = @transform_3, window_bounds = array<i64: 2, 16, 16>}, {pipeline_mode = #tpu.pipeline_mode<synchronous>, transform_indices = @transform_4, window_bounds = array<i64: 2, 1, 16>}, {pipeline_mode = #tpu.pipeline_mode<synchronous>, transform_indices = @transform_5, window_bounds = array<i64: 8, 50, 16>}, {pipeline_mode = #tpu.pipeline_mode<synchronous>, transform_indices = @transform_6, window_bounds = array<i64: 16, 32>}, {pipeline_mode = #tpu.pipeline_mode<synchronous>, transform_indices = @transform_7, window_bounds = array<i64: 8, 16>}, {pipeline_mode = #tpu.pipeline_mode<synchronous>, transform_indices = @transform_8, window_bounds = array<i64: 8, 16>}, {pipeline_mode = #tpu.pipeline_mode<synchronous>, transform_indices = @transform_9, window_bounds = array<i64: 8, 16>}, {pipeline_mode = #tpu.pipeline_mode<synchronous>, transform_indices = @transform_10, window_bounds = array<i64: 8, 32>}]} {
    %c0 = arith.constant 0 : index
    %c0_0 = arith.constant 0 : index
    %0 = vector.load %arg1[%c0, %c0_0] : memref<8x32xf32, #tpu.memory_space<vmem>>, vector<8x32xf32>
    %1 = arith.truncf %0 : vector<8x32xf32> to vector<8x32xbf16>
    %c0_1 = arith.constant 0 : index
    %c0_2 = arith.constant 0 : index
    %2 = vector.load %arg2[%c0_1, %c0_2] : memref<8x16xf32, #tpu.memory_space<vmem>>, vector<8x16xf32>
    %3 = arith.truncf %2 : vector<8x16xf32> to vector<8x16xbf16>
    %c0_3 = arith.constant 0 : index
    %c0_4 = arith.constant 0 : index
    %c0_5 = arith.constant 0 : index
    %4 = vector.load %arg3[%c0_3, %c0_4, %c0_5] : memref<2x32x16xbf16, #tpu.memory_space<vmem>>, vector<1x32x16xbf16>
    %5 = vector.shape_cast %4 : vector<1x32x16xbf16> to vector<32x16xbf16>
    %cst = arith.constant dense<0.000000e+00> : vector<8x16xf32>
    %6 = tpu.matmul %1, %5, %cst {dimension_numbers = #tpu.dot_dimension_numbers<[1], [0], [0], [1], [0, 0, 1, 1], [], []>} : vector<8x32xbf16>, vector<32x16xbf16>, vector<8x16xf32> -> vector<8x16xf32>
    %c0_6 = arith.constant 0 : index
    %c0_7 = arith.constant 0 : index
    %c0_8 = arith.constant 0 : index
    %7 = vector.load %arg4[%c0_6, %c0_7, %c0_8] : memref<2x16x16xbf16, #tpu.memory_space<vmem>>, vector<1x16x16xbf16>
    %8 = vector.shape_cast %7 : vector<1x16x16xbf16> to vector<16x16xbf16>
    %cst_9 = arith.constant dense<0.000000e+00> : vector<8x16xf32>
    %9 = tpu.matmul %3, %8, %cst_9 {dimension_numbers = #tpu.dot_dimension_numbers<[1], [0], [0], [1], [0, 0, 1, 1], [], []>} : vector<8x16xbf16>, vector<16x16xbf16>, vector<8x16xf32> -> vector<8x16xf32>
    %10 = arith.addf %6, %9 : vector<8x16xf32>
    %c0_10 = arith.constant 0 : index
    %c0_11 = arith.constant 0 : index
    %c0_12 = arith.constant 0 : index
    %11 = vector.load %arg5[%c0_10, %c0_11, %c0_12] : memref<2x1x16xf32, #tpu.memory_space<vmem>>, vector<1x1x16xf32>
    %12 = vector.shape_cast %11 : vector<1x1x16xf32> to vector<1x16xf32>
    %13 = vector.broadcast %12 : vector<1x16xf32> to vector<8x16xf32>
    %14 = arith.addf %10, %13 : vector<8x16xf32>
    %c1 = arith.constant 1 : index
    %c0_13 = arith.constant 0 : index
    %c0_14 = arith.constant 0 : index
    %15 = vector.load %arg3[%c1, %c0_13, %c0_14] : memref<2x32x16xbf16, #tpu.memory_space<vmem>>, vector<1x32x16xbf16>
    %16 = vector.shape_cast %15 : vector<1x32x16xbf16> to vector<32x16xbf16>
    %cst_15 = arith.constant dense<0.000000e+00> : vector<8x16xf32>
    %17 = tpu.matmul %1, %16, %cst_15 {dimension_numbers = #tpu.dot_dimension_numbers<[1], [0], [0], [1], [0, 0, 1, 1], [], []>} : vector<8x32xbf16>, vector<32x16xbf16>, vector<8x16xf32> -> vector<8x16xf32>
    %c1_16 = arith.constant 1 : index
    %c0_17 = arith.constant 0 : index
    %c0_18 = arith.constant 0 : index
    %18 = vector.load %arg4[%c1_16, %c0_17, %c0_18] : memref<2x16x16xbf16, #tpu.memory_space<vmem>>, vector<1x16x16xbf16>
    %19 = vector.shape_cast %18 : vector<1x16x16xbf16> to vector<16x16xbf16>
    %cst_19 = arith.constant dense<0.000000e+00> : vector<8x16xf32>
    %20 = tpu.matmul %3, %19, %cst_19 {dimension_numbers = #tpu.dot_dimension_numbers<[1], [0], [0], [1], [0, 0, 1, 1], [], []>} : vector<8x16xbf16>, vector<16x16xbf16>, vector<8x16xf32> -> vector<8x16xf32>
    %21 = arith.addf %17, %20 : vector<8x16xf32>
    %c1_20 = arith.constant 1 : index
    %c0_21 = arith.constant 0 : index
    %c0_22 = arith.constant 0 : index
    %22 = vector.load %arg5[%c1_20, %c0_21, %c0_22] : memref<2x1x16xf32, #tpu.memory_space<vmem>>, vector<1x1x16xf32>
    %23 = vector.shape_cast %22 : vector<1x1x16xf32> to vector<1x16xf32>
    %24 = vector.broadcast %23 : vector<1x16xf32> to vector<8x16xf32>
    %25 = arith.addf %21, %24 : vector<8x16xf32>
    %c0_23 = arith.constant 0 : index
    %c0_24 = arith.constant 0 : index
    %c0_25 = arith.constant 0 : index
    %26 = vector.load %arg6[%c0_23, %c0_24, %c0_25] : memref<8x50x16xf32, #tpu.memory_space<vmem>>, vector<8x50x16xf32>
    %c0_26 = arith.constant 0 : index
    %c0_27 = arith.constant 0 : index
    %27 = vector.load %arg7[%c0_26, %c0_27] : memref<16x32xf32, #tpu.memory_space<vmem>>, vector<16x32xf32>
    %cst_28 = arith.constant 0.000000e+00 : f32
    %28 = vector.broadcast %cst_28 : f32 to vector<8x16xf32>
    %29 = arith.maximumf %14, %28 : vector<8x16xf32>
    %30 = math.absf %14 : vector<8x16xf32>
    %cst_29 = arith.constant 0.000000e+00 : f32
    %31 = vector.broadcast %cst_29 : f32 to vector<8x16xf32>
    %32 = arith.subf %31, %30 : vector<8x16xf32>
    %33 = math.exp %32 : vector<8x16xf32>
    %cst_30 = arith.constant 1.000000e+00 : f32
    %34 = vector.broadcast %cst_30 : f32 to vector<8x16xf32>
    %35 = arith.addf %34, %33 : vector<8x16xf32>
    %36 = math.log %35 : vector<8x16xf32>
    %37 = arith.addf %29, %36 : vector<8x16xf32>
    %cst_31 = arith.constant 1.000000e-30 : f32
    %cst_32 = arith.constant 1.000000e+01 : f32
    %38 = vector.broadcast %cst_31 : f32 to vector<8x16xf32>
    %39 = arith.maximumf %38, %37 : vector<8x16xf32>
    %40 = vector.broadcast %cst_32 : f32 to vector<8x16xf32>
    %41 = arith.minimumf %40, %39 : vector<8x16xf32>
    %cst_33 = arith.constant 0.000000e+00 : f32
    %42 = vector.broadcast %cst_33 : f32 to vector<8x16xf32>
    %43 = arith.maximumf %25, %42 : vector<8x16xf32>
    %44 = math.absf %25 : vector<8x16xf32>
    %cst_34 = arith.constant 0.000000e+00 : f32
    %45 = vector.broadcast %cst_34 : f32 to vector<8x16xf32>
    %46 = arith.subf %45, %44 : vector<8x16xf32>
    %47 = math.exp %46 : vector<8x16xf32>
    %cst_35 = arith.constant 1.000000e+00 : f32
    %48 = vector.broadcast %cst_35 : f32 to vector<8x16xf32>
    %49 = arith.addf %48, %47 : vector<8x16xf32>
    %50 = math.log %49 : vector<8x16xf32>
    %51 = arith.addf %43, %50 : vector<8x16xf32>
    %cst_36 = arith.constant 1.000000e-30 : f32
    %52 = vector.broadcast %cst_36 : f32 to vector<8x16xf32>
    %53 = arith.maximumf %51, %52 : vector<8x16xf32>
    %cst_37 = arith.constant 1.000000e+00 : f32
    %54 = vector.broadcast %cst_37 : f32 to vector<8x16xf32>
    %cst_38 = arith.constant 1.000000e+00 : f32
    %55 = vector.broadcast %cst_38 : f32 to vector<8x16xf32>
    %56 = arith.addf %41, %55 : vector<8x16xf32>
    %cst_39 = arith.constant 676.520386 : f32
    %57 = vector.broadcast %cst_39 : f32 to vector<8x16xf32>
    %58 = arith.divf %57, %56 : vector<8x16xf32>
    %59 = arith.addf %54, %58 : vector<8x16xf32>
    %cst_40 = arith.constant 2.000000e+00 : f32
    %60 = vector.broadcast %cst_40 : f32 to vector<8x16xf32>
    %61 = arith.addf %41, %60 : vector<8x16xf32>
    %cst_41 = arith.constant -1259.13916 : f32
    %62 = vector.broadcast %cst_41 : f32 to vector<8x16xf32>
    %63 = arith.divf %62, %61 : vector<8x16xf32>
    %64 = arith.addf %59, %63 : vector<8x16xf32>
    %cst_42 = arith.constant 3.000000e+00 : f32
    %65 = vector.broadcast %cst_42 : f32 to vector<8x16xf32>
    %66 = arith.addf %41, %65 : vector<8x16xf32>
    %cst_43 = arith.constant 771.323425 : f32
    %67 = vector.broadcast %cst_43 : f32 to vector<8x16xf32>
    %68 = arith.divf %67, %66 : vector<8x16xf32>
    %69 = arith.addf %64, %68 : vector<8x16xf32>
    %cst_44 = arith.constant 4.000000e+00 : f32
    %70 = vector.broadcast %cst_44 : f32 to vector<8x16xf32>
    %71 = arith.addf %41, %70 : vector<8x16xf32>
    %cst_45 = arith.constant -176.615036 : f32
    %72 = vector.broadcast %cst_45 : f32 to vector<8x16xf32>
    %73 = arith.divf %72, %71 : vector<8x16xf32>
    %74 = arith.addf %69, %73 : vector<8x16xf32>
    %cst_46 = arith.constant 5.000000e+00 : f32
    %75 = vector.broadcast %cst_46 : f32 to vector<8x16xf32>
    %76 = arith.addf %41, %75 : vector<8x16xf32>
    %cst_47 = arith.constant 12.5073433 : f32
    %77 = vector.broadcast %cst_47 : f32 to vector<8x16xf32>
    %78 = arith.divf %77, %76 : vector<8x16xf32>
    %79 = arith.addf %74, %78 : vector<8x16xf32>
    %cst_48 = arith.constant 6.000000e+00 : f32
    %80 = vector.broadcast %cst_48 : f32 to vector<8x16xf32>
    %81 = arith.addf %41, %80 : vector<8x16xf32>
    %cst_49 = arith.constant -0.138571098 : f32
    %82 = vector.broadcast %cst_49 : f32 to vector<8x16xf32>
    %83 = arith.divf %82, %81 : vector<8x16xf32>
    %84 = arith.addf %79, %83 : vector<8x16xf32>
    %cst_50 = arith.constant 7.000000e+00 : f32
    %85 = vector.broadcast %cst_50 : f32 to vector<8x16xf32>
    %86 = arith.addf %41, %85 : vector<8x16xf32>
    %cst_51 = arith.constant 9.98436917E-6 : f32
    %87 = vector.broadcast %cst_51 : f32 to vector<8x16xf32>
    %88 = arith.divf %87, %86 : vector<8x16xf32>
    %89 = arith.addf %84, %88 : vector<8x16xf32>
    %cst_52 = arith.constant 8.000000e+00 : f32
    %90 = vector.broadcast %cst_52 : f32 to vector<8x16xf32>
    %91 = arith.addf %41, %90 : vector<8x16xf32>
    %cst_53 = arith.constant 1.50563267E-7 : f32
    %92 = vector.broadcast %cst_53 : f32 to vector<8x16xf32>
    %93 = arith.divf %92, %91 : vector<8x16xf32>
    %94 = arith.addf %89, %93 : vector<8x16xf32>
    %cst_54 = arith.constant 7.500000e+00 : f32
    %95 = vector.broadcast %cst_54 : f32 to vector<8x16xf32>
    %96 = arith.addf %41, %95 : vector<8x16xf32>
    %cst_55 = arith.constant 6.28318548 : f32
    %97 = math.sqrt %cst_55 : f32
    %cst_56 = arith.constant 5.000000e-01 : f32
    %98 = vector.broadcast %cst_56 : f32 to vector<8x16xf32>
    %99 = arith.addf %41, %98 : vector<8x16xf32>
    %100 = math.log %96 : vector<8x16xf32>
    %101 = arith.mulf %99, %100 : vector<8x16xf32>
    %102 = arith.subf %101, %96 : vector<8x16xf32>
    %103 = math.exp %102 : vector<8x16xf32>
    %104 = vector.broadcast %97 : f32 to vector<8x16xf32>
    %105 = arith.mulf %104, %103 : vector<8x16xf32>
    %106 = arith.mulf %105, %94 : vector<8x16xf32>
    %107 = arith.divf %53, %106 : vector<8x16xf32>
    %c0_57 = arith.constant 0 : index
    %c0_58 = arith.constant 0 : index
    %108 = vector.load %arg8[%c0_57, %c0_58] : memref<8x16xf32, #tpu.memory_space<vmem>>, vector<8x16xf32>
    tpu.vector_store %arg8[%c0_57, %c0_58], %41 {strides = array<i32>} : memref<8x16xf32, #tpu.memory_space<vmem>>, vector<8x16xf32>,
    %c0_59 = arith.constant 0 : index
    %c0_60 = arith.constant 0 : index
    %109 = vector.load %arg9[%c0_59, %c0_60] : memref<8x16xf32, #tpu.memory_space<vmem>>, vector<8x16xf32>
    tpu.vector_store %arg9[%c0_59, %c0_60], %107 {strides = array<i32>} : memref<8x16xf32, #tpu.memory_space<vmem>>, vector<8x16xf32>,
    %cst_61 = arith.constant 1.000000e+00 : f32
    %110 = vector.broadcast %cst_61 : f32 to vector<8x50x16xf32>
    %111 = arith.subf %110, %26 : vector<8x50x16xf32>
    %cst_62 = arith.constant 1.000000e-30 : f32
    %112 = vector.broadcast %cst_62 : f32 to vector<8x50x16xf32>
    %113 = arith.maximumf %111, %112 : vector<8x50x16xf32>
    %114 = math.log %113 : vector<8x50x16xf32>
    %cst_63 = arith.constant 0.000000e+00 : f32
    %115 = vector.broadcast %cst_63 : f32 to vector<8x50x16xf32>
    %116 = arith.subf %115, %114 : vector<8x50x16xf32>
    %cst_64 = arith.constant 0.000000e+00 : f32
    %117 = vector.broadcast %cst_64 : f32 to vector<8x50x16xf32>
    %118 = arith.cmpf ogt, %116, %117 : vector<8x50x16xf32>
    %119 = vector.shape_cast %41 : vector<8x16xf32> to vector<8x1x16xf32>
    %cst_65 = arith.constant 9.99999935E-39 : f32
    %120 = vector.broadcast %cst_65 : f32 to vector<8x50x16xf32>
    %121 = arith.maximumf %116, %120 : vector<8x50x16xf32>
    %122 = math.log %121 : vector<8x50x16xf32>
    %123 = vector.broadcast %119 : vector<8x1x16xf32> to vector<8x50x16xf32>
    %124 = arith.mulf %123, %122 : vector<8x50x16xf32>
    %125 = math.exp %124 : vector<8x50x16xf32>
    %cst_66 = arith.constant 0.000000e+00 : f32
    %126 = vector.broadcast %cst_66 : f32 to vector<8x50x16xf32>
    %127 = arith.select %118, %125, %126 : vector<8x50x16xi1>, vector<8x50x16xf32>
    %cst_67 = arith.constant dense<0.000000e+00> : vector<8x16xf32>
    %128 = vector.multi_reduction <add>, %127, %cst_67 [1] : vector<8x50x16xf32> to vector<8x16xf32>
    %cst_68 = arith.constant 5.000000e+01 : f32
    %129 = vector.broadcast %cst_68 : f32 to vector<8x16xf32>
    %130 = arith.divf %128, %129 : vector<8x16xf32>
    %131 = arith.mulf %107, %130 : vector<8x16xf32>
    %c0_69 = arith.constant 0 : index
    %c0_70 = arith.constant 0 : index
    %132 = vector.load %arg10[%c0_69, %c0_70] : memref<8x16xf32, #tpu.memory_space<vmem>>, vector<8x16xf32>
    tpu.vector_store %arg10[%c0_69, %c0_70], %131 {strides = array<i32>} : memref<8x16xf32, #tpu.memory_space<vmem>>, vector<8x16xf32>,
    %cst_71 = arith.constant dense<0.000000e+00> : vector<8x32xf32>
    %133 = tpu.matmul %131, %27, %cst_71 {dimension_numbers = #tpu.dot_dimension_numbers<[1], [0], [0], [1], [0, 0, 1, 1], [], []>} : vector<8x16xf32>, vector<16x32xf32>, vector<8x32xf32> -> vector<8x32xf32>
    %c0_72 = arith.constant 0 : index
    %c0_73 = arith.constant 0 : index
    %134 = vector.load %arg11[%c0_72, %c0_73] : memref<8x32xf32, #tpu.memory_space<vmem>>, vector<8x32xf32>
    tpu.vector_store %arg11[%c0_72, %c0_73], %133 {strides = array<i32>} : memref<8x32xf32, #tpu.memory_space<vmem>>, vector<8x32xf32>,
    return
  }
  func.func @transform_0(%arg0: i32) -> (i32, i32) {
    %c0_i32 = arith.constant 0 : i32
    %c0_i32_0 = arith.constant 0 : i32
    %c0_i32_1 = arith.constant 0 : i32
    return %c0_i32, %c0_i32_0 : i32, i32
  }
  func.func @transform_1(%arg0: i32) -> (i32, i32) {
    %c0_i32 = arith.constant 0 : i32
    %c0_i32_0 = arith.constant 0 : i32
    %c0_i32_1 = arith.constant 0 : i32
    return %c0_i32, %c0_i32_0 : i32, i32
  }
  func.func @transform_2(%arg0: i32) -> (i32, i32, i32) {
    %c0_i32 = arith.constant 0 : i32
    %c0_i32_0 = arith.constant 0 : i32
    %c0_i32_1 = arith.constant 0 : i32
    %c0_i32_2 = arith.constant 0 : i32
    return %c0_i32, %c0_i32_0, %c0_i32_1 : i32, i32, i32
  }
  func.func @transform_3(%arg0: i32) -> (i32, i32, i32) {
    %c0_i32 = arith.constant 0 : i32
    %c0_i32_0 = arith.constant 0 : i32
    %c0_i32_1 = arith.constant 0 : i32
    %c0_i32_2 = arith.constant 0 : i32
    return %c0_i32, %c0_i32_0, %c0_i32_1 : i32, i32, i32
  }
  func.func @transform_4(%arg0: i32) -> (i32, i32, i32) {
    %c0_i32 = arith.constant 0 : i32
    %c0_i32_0 = arith.constant 0 : i32
    %c0_i32_1 = arith.constant 0 : i32
    %c0_i32_2 = arith.constant 0 : i32
    return %c0_i32, %c0_i32_0, %c0_i32_1 : i32, i32, i32
  }
  func.func @transform_5(%arg0: i32) -> (i32, i32, i32) {
    %c0_i32 = arith.constant 0 : i32
    %c0_i32_0 = arith.constant 0 : i32
    %c0_i32_1 = arith.constant 0 : i32
    %c0_i32_2 = arith.constant 0 : i32
    return %c0_i32, %c0_i32_0, %c0_i32_1 : i32, i32, i32
  }
  func.func @transform_6(%arg0: i32) -> (i32, i32) {
    %c0_i32 = arith.constant 0 : i32
    %c0_i32_0 = arith.constant 0 : i32
    %c0_i32_1 = arith.constant 0 : i32
    return %c0_i32, %c0_i32_0 : i32, i32
  }
  func.func @transform_7(%arg0: i32) -> (i32, i32) {
    %c0_i32 = arith.constant 0 : i32
    %c0_i32_0 = arith.constant 0 : i32
    %c0_i32_1 = arith.constant 0 : i32
    return %c0_i32, %c0_i32_0 : i32, i32
  }
  func.func @transform_8(%arg0: i32) -> (i32, i32) {
    %c0_i32 = arith.constant 0 : i32
    %c0_i32_0 = arith.constant 0 : i32
    %c0_i32_1 = arith.constant 0 : i32
    return %c0_i32, %c0_i32_0 : i32, i32
  }
  func.func @transform_9(%arg0: i32) -> (i32, i32) {
    %c0_i32 = arith.constant 0 : i32
    %c0_i32_0 = arith.constant 0 : i32
    %c0_i32_1 = arith.constant 0 : i32
    return %c0_i32, %c0_i32_0 : i32, i32
  }
  func.func @transform_10(%arg0: i32) -> (i32, i32) {
    %c0_i32 = arith.constant 0 : i32
    %c0_i32_0 = arith.constant 0 : i32
    %c0_i32_1 = arith.constant 0 : i32
    return %c0_i32, %c0_i32_0 : i32, i32
  }
}

</mosaic_0001>

<bundles_post_ra>
// kernel: _lambda_.5
= control target key start
LH: loop header
LB: loop body
LE: loop exit
PB: predicated region body
PF: predicated region fallthrough
CT: control target
= control target key end

     0   :  { %vm38_vm0 = vcmask 130048   ;;  %vm62_vm1 = vcmask 261120   ;;  %s252_s0 = inlined_call_operand.vmem [shape: bf16[32,16], index: 0, kind: input, shape index: {}]   ;;  %s253_s1 = inlined_call_operand.vmem [shape: bf16[16,16], index: 1, kind: input, shape index: {}]   ;;  %s254_s2 = inlined_call_operand.vmem [shape: bf16[8,16], index: 2, kind: input, shape index: {}]   ;;  %s255_s3 = inlined_call_operand.vmem [shape: f32[16,32], index: 3, kind: output, shape index: {0}]   ;;  %s256_s4 = inlined_call_operand.vmem [shape: f32[8,16], index: 4, kind: output, shape index: {1}]  }
   0x1   :  { %v178_v0 = vld [vmem:[%s252_s0 + $0x8] sm:$0xff]  ;;  %v179_v1 = vld [vmem:[%s253_s1] sm:$0xff] }
   0x2   :  { %v46_v2 = vsel %vm38_vm0, %v178_v0, 0  ;;  %v40_v3 = vsel %vm38_vm0, %v179_v1, 0  ;;  %v177_v4 = vld [vmem:[%s252_s0] sm:$0xff] }
   0x3   :  { %54 = vmatpush.bf16.xpose.msra.mxu0 %v46_v2  ;;  %124 = vmatpush.bf16.xpose.msra.mxu1 %v40_v3  ;;  %v113_v5 = vld [vmem:[%s254_s2] sm:$0xf]  ;;  %v43_v6 = vsel %vm38_vm0, %v177_v4, 0 }
   0xa   :  { %176 = vmatmul.msk.bf16.vlgmr.msra.gmra.mxu1 %vm38_vm0, %v113_v5 }
   0xb   :  { %55 = vmatpush.bf16.xpose.msra.mxu0 %v43_v6 }
  0x12   :  { %175 = vmatmul.msk.bf16.vlgmr.msra.gmra.mxu0 %vm38_vm0, %v179_v1 }
  0x87   :  { %v126_v7 = vpop.f32.mrf.mxu1 }
  0x88   :  { %v130_v8 = vsel %vm38_vm0, %v126_v7, -inf }
  0x89   :  { %131 = vmax.xlane.f32.xlu1 %v130_v8 }
  0x8f   :  { %v57_v9 = vpop.f32.mrf.mxu0  ;;  %v128_v10 = vpop.f32.mrf.mxu1 }
  0x90   :  { %v63_v11 = vsel %vm62_vm1, %v57_v9, -inf }
  0x91   :  { %64 = vmax.xlane.f32.xlu0 %v63_v11 }
  0x97   :  { %v59_v12 = vpop.f32.mrf.mxu0 }
  0x98   :  { %v66_v13 = vsel %vm62_vm1, %v59_v12, -inf }
  0x99   :  { %67 = vmax.xlane.f32.xlu0 %v66_v13 }
  0xfc   :  { %v132_v17 = vpop.xlane.xlu1 %131 }
  0xfd   :  { %v133_v21 = vsub.f32 %v126_v7, %v132_v17 }
  0xff   :  { %v134_v24 = vmul.f32 1.442695, %v133_v21 }
 0x104   :  { %v65_v14 = vpop.xlane.xlu0 %64 }
 0x105   :  { %v69_v15 = vsub.f32 %v57_v9, %v65_v14 }
 0x107   :  { %v71_v16 = vmul.f32 1.442695, %v69_v15 }
 0x109   :  { %180 = vpow2.f32 %v71_v16 }
 0x10c   :  { %v68_v18 = vpop.xlane.xlu0 %67 }
 0x10d   :  { %v70_v19 = vsub.f32 %v59_v12, %v68_v18 }
 0x10f   :  { %v181_v20 = vpop.eup %180  ;;  %v73_v22 = vmul.f32 1.442695, %v70_v19 }
 0x110   :  { %v75_v23 = vsel %vm62_vm1, %v181_v20, 0.0 }
 0x111   :  { %182 = vpow2.f32 %v73_v22  ;;  %76 = vadd.xlane.f32.xlu1 %v75_v23 }
 0x112   :  { %184 = vpow2.f32 %v134_v24 }
 0x117   :  { %v183_v25 = vpop.eup %182 }
 0x118   :  { %v78_v26 = vsel %vm62_vm1, %v183_v25, 0.0  ;;  %v185_v27 = vpop.eup %184 }
 0x119   :  { %79 = vadd.xlane.f32.xlu2 %v78_v26  ;;  %v136_v28 = vsel %vm38_vm0, %v185_v27, 0.0 }
 0x121   :  { %137 = vadd.xlane.f32.xlu2 %v136_v28 }
 0x184   :  { %v77_v29 = vpop.xlane.xlu1 %76 }
 0x185   :  { %186 = vrcp.f32 %v77_v29  ;;  %v92_v34 = vand.u32 2147483648, %v77_v29  ;;  %v90_v36 = vand.u32 2147483647, %v77_v29  ;;  %vm86_vm3 = vweird.f32 %v77_v29 }
 0x187   :  { %v93_v39 = vor.u32 1.1754944e-38, %v92_v34  ;;  %vm91_vm5 = vcmp.eq.f32.partialorder %v90_v36, 8.507059e+37 }
 0x18b   :  { %v187_v30 = vpop.eup %186 }
 0x18c   :  { %v82_v31 = vmul.f32 %v187_v30, %v77_v29  ;;  %v80_v32 = vpop.xlane.xlu2 %79  ;;  %vm87_vm2 = vweird.f32 %v187_v30 }
 0x18d   :  { %188 = vrcp.f32 %v80_v32  ;;  %vm88_vm4 = vmor %vm86_vm3, %vm87_vm2  ;;  %v107_v46 = vand.u32 2147483648, %v80_v32  ;;  %v105_v48 = vand.u32 2147483647, %v80_v32  ;;  %vm101_vm7 = vweird.f32 %v80_v32 }
 0x18e   :  { %v83_v33 = vsub.f32 1.0, %v82_v31 }
 0x18f   :  { %v108_v51 = vor.u32 1.1754944e-38, %v107_v46  ;;  %vm106_vm9 = vcmp.eq.f32.partialorder %v105_v48, 8.507059e+37 }
 0x190   :  { %v84_v35 = vmul.f32 %v187_v30, %v83_v33 }
 0x192   :  { %v85_v37 = vadd.f32 %v187_v30, %v84_v35 }
 0x193   :  { %v189_v38 = vpop.eup %188 }
 0x194   :  { %v89_v40 = vsel %vm88_vm4, %v187_v30, %v85_v37  ;;  %v97_v41 = vmul.f32 %v189_v38, %v80_v32  ;;  %v138_v42 = vpop.xlane.xlu2 %137  ;;  %vm102_vm6 = vweird.f32 %v189_v38 }
 0x195   :  { %v94_v43 = vsel %vm91_vm5, %v93_v39, %v89_v40  ;;  %190 = vrcp.f32 %v138_v42  ;;  %vm103_vm8 = vmor %vm101_vm7, %vm102_vm6  ;;  %v150_v57 = vand.u32 2147483648, %v138_v42  ;;  %v148_v59 = vand.u32 2147483647, %v138_v42 }
 0x196   :  { %v95_v44 = vmul.f32 %v181_v20, %v94_v43  ;;  %v98_v45 = vsub.f32 1.0, %v97_v41  ;;  %vm144_vm11 = vweird.f32 %v138_v42 }
 0x197   :  { %v151_v61 = vor.u32 1.1754944e-38, %v150_v57  ;;  %vm149_vm13 = vcmp.eq.f32.partialorder %v148_v59, 8.507059e+37 }
 0x198   :  { %111 = vst.msk [vmem:[%s255_s3] sm:$0xff] %vm62_vm1, %v95_v44  ;;  %v99_v47 = vmul.f32 %v189_v38, %v98_v45 }
 0x19a   :  { %v100_v49 = vadd.f32 %v189_v38, %v99_v47 }
 0x19b   :  { %v191_v50 = vpop.eup %190 }
 0x19c   :  { %v104_v52 = vsel %vm103_vm8, %v189_v38, %v100_v49  ;;  %v140_v53 = vmul.f32 %v191_v50, %v138_v42  ;;  %vm145_vm10 = vweird.f32 %v191_v50 }
 0x19d   :  { %v109_v54 = vsel %vm106_vm9, %v108_v51, %v104_v52  ;;  %vm146_vm12 = vmor %vm144_vm11, %vm145_vm10 }
 0x19e   :  { %v110_v55 = vmul.f32 %v183_v25, %v109_v54  ;;  %v141_v56 = vsub.f32 1.0, %v140_v53 }
 0x1a0   :  { %112 = vst.msk [vmem:[%s255_s3 + $0x8] sm:$0xff] %vm62_vm1, %v110_v55  ;;  %v142_v58 = vmul.f32 %v191_v50, %v141_v56 }
 0x1a2   :  { %v143_v60 = vadd.f32 %v191_v50, %v142_v58 }
 0x1a4   :  { %v147_v62 = vsel %vm146_vm12, %v191_v50, %v143_v60 }
 0x1a5   :  { %v152_v63 = vsel %vm149_vm13, %v151_v61, %v147_v62 }
 0x1a6   :  { %v153_v0 = vmul.f32 %v185_v27, %v152_v63 }
 0x1a8   :  { %154 = vst.msk [vmem:[%s256_s4] sm:$0xff] %vm38_vm0, %v153_v0 }

// kernel: _lambda_.4
= control target key start
LH: loop header
LB: loop body
LE: loop exit
PB: predicated region body
PF: predicated region fallthrough
CT: control target
= control target key end

     0   :  { %vm45_vm0 = vcmask 261120   ;;  %vm102_vm1 = vcmask 130048   ;;  %s205_s1 = inlined_call_operand.vmem [shape: bf16[32,32], index: 1, kind: input, shape index: {}]   ;;  %s206_s0 = inlined_call_operand.vmem [shape: f32[8,32], index: 0, kind: input, shape index: {}]   ;;  %s207_s3 = inlined_call_operand.vmem [shape: f32[1,32], index: 3, kind: input, shape index: {}]   ;;  %s208_s4 = inlined_call_operand.vmem [shape: f32[1,16], index: 4, kind: input, shape index: {}]   ;;  %s209_s2 = inlined_call_operand.vmem [shape: bf16[32,16], index: 2, kind: input, shape index: {}]   ;;  %s210_s5 = inlined_call_operand.vmem [shape: f32[8,32], index: 5, kind: output, shape index: {0}]   ;;  %s211_s6 = inlined_call_operand.vmem [shape: f32[8,16], index: 6, kind: output, shape index: {1}]  }
   0x1   :  { %v131_v0 = vld [vmem:[%s205_s1 + $0x8] sm:$0xff]  ;;  %v130_v1 = vld [vmem:[%s205_s1] sm:$0xff] }
   0x2   :  { %55 = vmatpush.bf16.msra.mxu0 %v131_v0  ;;  %v23_v2 = vld [vmem:[%s206_s0] sm:$0xff]  ;;  %v133_v4 = vld [vmem:[%s209_s2 + $0x8] sm:$0xff] }
   0x3   :  { %v24_v3 = vpack.c.bf16 %v23_v2, %v23_v2  ;;  %94 = vmatpush.bf16.msra.mxu1 %v133_v4  ;;  %v132_v5 = vld [vmem:[%s209_s2] sm:$0xff] }
   0x4   :  { %v134_v6 = vld [vmem:[%s207_s3] ss:$0 sm:$0xff] }
   0x5   :  { %v135_v12 = vld [vmem:[%s208_s4] ss:$0 sm:$0xff] }
   0x6   :  { %56 = vmatpush.bf16.msra.mxu0 %v130_v1 }
   0x7   :  { %95 = vmatpush.bf16.msra.mxu1 %v132_v5 }
   0x9   :  { %120 = vmatmul.msk.bf16.vlgmr.msra.gmra.mxu0 %vm45_vm0, %v24_v3 }
  0x86   :  { %v58_v7 = vpop.f32.mrf.mxu0 }
  0x87   :  { %v59_v8 = vadd.f32 %v134_v6, %v58_v7 }
  0x89   :  { %136 = vtanh.f32 %v59_v8 }
  0x8e   :  { %v60_v9 = vpop.f32.mrf.mxu0 }
  0x8f   :  { %v137_v10 = vpop.eup %136 }
  0x90   :  { %63 = vst.msk [vmem:[%s210_s5] sm:$0xff] %vm45_vm0, %v137_v10  ;;  %v64_v11 = vpack.c.bf16 %v137_v10, %v137_v10 }
  0x92   :  { %129 = vmatmul.msk.bf16.vlgmr.msra.gmra.mxu1 %vm45_vm0, %v64_v11 }
 0x10f   :  { %v97_v13 = vpop.f32.mrf.mxu1 }
 0x110   :  { %v98_v14 = vadd.f32 %v135_v12, %v97_v13 }
 0x112   :  { %138 = vtanh.f32 %v98_v14 }
 0x117   :  { %v99_v15 = vpop.f32.mrf.mxu1 }
 0x118   :  { %v139_v16 = vpop.eup %138 }
 0x119   :  { %103 = vst.msk [vmem:[%s211_s6] sm:$0xff] %vm102_vm1, %v139_v16 }

// kernel: _lambda_.6
= control target key start
LH: loop header
LB: loop body
LE: loop exit
PB: predicated region body
PF: predicated region fallthrough
CT: control target
= control target key end

     0   :  { %vm4161_vm0 = vcmask 130048   ;;  %vm4162_vm1 = vcmask 64512   ;;  %s4087_s0 = inlined_call_operand.vmem [shape: f32[8,16], index: 0, kind: input, shape index: {}]   ;;  %s4088_s1 = inlined_call_operand.vmem [shape: bf16[2,16,8], index: 1, kind: input, shape index: {}]   ;;  %s4089_s2 = inlined_call_operand.vmem [shape: f32[2,1,8], index: 2, kind: input, shape index: {}]   ;;  %s4090_s4 = inlined_call_operand.vmem [shape: f32[8,16], index: 4, kind: input, shape index: {}]   ;;  %s4091_s5 = inlined_call_operand.vmem [shape: f32[8,8], index: 5, kind: output, shape index: {0}]   ;;  %s4092_s3 = inlined_call_operand.vmem [shape: f32[8,50,8], index: 3, kind: input, shape index: {}]   ;;  %s4093_s6 = inlined_call_operand.vmem [shape: f32[8,8], index: 6, kind: output, shape index: {1}]   ;;  %s4094_s7 = inlined_call_operand.vmem [shape: f32[8,8], index: 7, kind: output, shape index: {2}]   ;;  %s4095_s8 = inlined_call_operand.vmem [shape: f32[8,16], index: 8, kind: output, shape index: {3}]  }
   0x1   :  { %v25_v0 = vld [vmem:[%s4087_s0] sm:$0xff]  ;;  %v1325_v3 = vld [vmem:[%s4088_s1 + $0x8] sm:$0xff] }
   0x2   :  { %v1324_v1 = vld [vmem:[%s4088_s1] sm:$0xff]  ;;  %v26_v2 = vpack.c.bf16 %v25_v0, %v25_v0  ;;  %77 = vmatpush.bf16.msra.mxu1 %v1325_v3 }
   0x3   :  { %50 = vmatpush.bf16.msra.mxu0 %v1324_v1  ;;  %v139_v4 = vld [vmem:[%s4090_s4] sm:$0xff] }
   0x4   :  { %1288 = vmatpush.msra.mxu2 %v139_v4  ;;  %v1327_v5 = vld [vmem:[%s4089_s2] ss:$0 sm:$0xff]  ;;  %v1328_v6 = vld [vmem:[%s4089_s2 + $0x1] ss:$0 sm:$0xff] }
   0x5   :  { %1322 = vmatmul.msk.bf16.vlgmr.msra.gmra.mxu1 %vm4161_vm0, %v26_v2 }
   0x6   :  { %1314 = vmatmul.msk.bf16.vlgmr.msra.gmra.mxu0 %vm4161_vm0, %v26_v2 }
  0x82   :  { %v79_v9 = vpop.f32.mrf.mxu1 }
  0x83   :  { %v52_v7 = vpop.f32.mrf.mxu0  ;;  %v1763_v10 = vadd.f32 %v1328_v6, %v79_v9 }
  0x84   :  { %v53_v8 = vadd.f32 %v1327_v5, %v52_v7 }
  0x86   :  { %v141_v11 = vand.u32 2147483647, %v53_v8  ;;  %v140_v19 = vmax.f32 %v53_v8, 0.0 }
  0x88   :  { %v142_v12 = vsub.f32 0.0, %v141_v11 }
  0x8a   :  { %v143_v13 = vmul.f32 1.442695, %v142_v12  ;;  %v81_v15 = vpop.f32.mrf.mxu1 }
  0x8b   :  { %v54_v14 = vpop.f32.mrf.mxu0 }
  0x8c   :  { %1329 = vpow2.f32 %v143_v13  ;;  %v152_v14 = vand.u32 2147483647, %v1763_v10 }
  0x92   :  { %v1330_v16 = vpop.eup %1329 }
  0x93   :  { %v145_v17 = vadd.f32 1.0, %v1330_v16 }
  0x95   :  { %1331 = vlog2.f32 %v145_v17 }
  0x9b   :  { %v1332_v18 = vpop.eup %1331 }
  0x9c   :  { %v147_v20 = vmul.f32 0.6931472, %v1332_v18 }
  0x9e   :  { %v148_v21 = vadd.f32 %v147_v20, %v140_v19  ;;  %v1934_v20 = vld [vmem:[%s4092_s3 + $0x30] sm:$0x3] }
  0xa0   :  { %v149_v22 = vmax.f32 %v148_v21, 1e-30 }
  0xa2   :  { %v1765_v23 = vmin.f32 %v149_v22, 10.0 }
  0xa4   :  { %4206 = vst [vmem:[#allocation2_spill] sm:$0xff] %v1765_v23  ;;  %v161_v24 = vadd.f32 1.0, %v1765_v23  ;;  %v178_v25 = vadd.f32 2.0, %v1765_v23  ;;  %v1770_v26 = vadd.f32 3.0, %v1765_v23  ;;  %v1778_v27 = vadd.f32 4.0, %v1765_v23 }
  0xa5   :  { %323 = vst.msk [vmem:[%s4091_s5] sm:$0xff] %vm4162_vm1, %v1765_v23  ;;  %v1781_v28 = vadd.f32 5.0, %v1765_v23  ;;  %v1785_v29 = vadd.f32 6.0, %v1765_v23  ;;  %v1790_v31 = vadd.f32 7.0, %v1765_v23  ;;  %v1796_v36 = vadd.f32 8.0, %v1765_v23 }
  0xa6   :  { %1333 = vrcp.f32 %v161_v24  ;;  %vm167_vm2 = vweird.f32 %v161_v24  ;;  %v171_v38 = vand.u32 2147483647, %v161_v24  ;;  %v173_v39 = vand.u32 2147483648, %v161_v24 }
  0xa7   :  { %1335 = vrcp.f32 %v178_v25  ;;  %vm184_vm3 = vweird.f32 %v178_v25  ;;  %v188_v43 = vand.u32 2147483647, %v178_v25  ;;  %v190_v49 = vand.u32 2147483648, %v178_v25 }
  0xa8   :  { %1337 = vrcp.f32 %v1770_v26  ;;  %vm172_vm6 = vcmp.eq.f32.partialorder %v171_v38, 8.507059e+37  ;;  %v174_v55 = vor.u32 1.1754944e-38, %v173_v39  ;;  %v207_v2 = vand.u32 2147483648, %v1770_v26 }
  0xa9   :  { %1339 = vrcp.f32 %v1778_v27  ;;  %v191_v1 = vor.u32 1.1754944e-38, %v190_v49  ;;  %vm189_vm10 = vcmp.eq.f32.partialorder %v188_v43, 8.507059e+37  ;;  %vm201_vm11 = vweird.f32 %v1770_v26 }
  0xaa   :  { %1341 = vrcp.f32 %v1781_v28  ;;  %v205_v4 = vand.u32 2147483647, %v1770_v26  ;;  %v208_v15 = vor.u32 1.1754944e-38, %v207_v2  ;;  %v224_v16 = vand.u32 2147483648, %v1778_v27 }
  0xab   :  { %1343 = vrcp.f32 %v1785_v29  ;;  %vm218_vm15 = vweird.f32 %v1778_v27  ;;  %v222_v18 = vand.u32 2147483647, %v1778_v27  ;;  %v290_v6 = vand.u32 2147483647, %v1796_v36 }
  0xac   :  { %v1334_v30 = vpop.eup %1333  ;;  %1345 = vrcp.f32 %v1790_v31  ;;  %vm206_vm14 = vcmp.eq.f32.partialorder %v205_v4, 8.507059e+37 }
  0xad   :  { %v1336_v32 = vpop.eup %1335  ;;  %v163_v33 = vmul.f32 %v1334_v30, %v161_v24  ;;  %vm168_vm4 = vweird.f32 %v1334_v30  ;;  %1347 = vrcp.f32 %v1796_v36 }
  0xae   :  { %v1793_v34 = vpop.eup %1337  ;;  %v180_v35 = vmul.f32 %v1336_v32, %v178_v25  ;;  %vm185_vm5 = vweird.f32 %v1336_v32  ;;  %vm169_vm7 = vmor %vm167_vm2, %vm168_vm4  ;;  %vm235_vm4 = vweird.f32 %v1781_v28 }
  0xaf   :  { %v164_v37 = vsub.f32 1.0, %v163_v33  ;;  %v197_v40 = vmul.f32 %v1793_v34, %v1770_v26  ;;  %v1800_v41 = vpop.eup %1339  ;;  %vm186_vm8 = vmor %vm184_vm3, %vm185_vm5  ;;  %vm202_vm9 = vweird.f32 %v1793_v34  ;;  %vm223_vm5 = vcmp.eq.f32.partialorder %v222_v18, 8.507059e+37  ;;  %v1969_v33 = vld [vmem:[%s4092_s3 + $0x68] sm:$0x3] }
  0xb0   :  { %v181_v42 = vsub.f32 1.0, %v180_v35  ;;  %v1803_v44 = vpop.eup %1341  ;;  %v214_v47 = vmul.f32 %v1800_v41, %v1778_v27  ;;  %vm1824_vm12 = vmor %vm201_vm11, %vm202_vm9  ;;  %vm219_vm13 = vweird.f32 %v1800_v41  ;;  %v225_v27 = vor.u32 1.1754944e-38, %v224_v16 }
  0xb1   :  { %v165_v45 = vmul.f32 %v1334_v30, %v164_v37  ;;  %v198_v46 = vsub.f32 1.0, %v197_v40  ;;  %v231_v50 = vmul.f32 %v1803_v44, %v1781_v28  ;;  %v1809_v51 = vpop.eup %1343  ;;  %vm1842_vm2 = vmor %vm218_vm15, %vm219_vm13  ;;  %vm236_vm3 = vweird.f32 %v1803_v44 }
  0xb2   :  { %v182_v48 = vmul.f32 %v1336_v32, %v181_v42  ;;  %v215_v54 = vsub.f32 1.0, %v214_v47  ;;  %v248_v58 = vmul.f32 %v1809_v51, %v1785_v29  ;;  %v1819_v62 = vpop.eup %1345  ;;  %v297_v35 = vadd.f32 7.5, %v1765_v23 }
  0xb3   :  { %v166_v52 = vadd.f32 %v1334_v30, %v165_v45  ;;  %v199_v53 = vmul.f32 %v1793_v34, %v198_v46  ;;  %v232_v57 = vsub.f32 1.0, %v231_v50  ;;  %v265_v13 = vmul.f32 %v1819_v62, %v1790_v31 }
  0xb4   :  { %v183_v56 = vadd.f32 %v1336_v32, %v182_v48  ;;  %v216_v61 = vmul.f32 %v1800_v41, %v215_v54  ;;  %v249_v8 = vsub.f32 1.0, %v248_v58  ;;  %v153_v37 = vsub.f32 0.0, %v152_v14  ;;  %v1919_v14 = vld [vmem:[%s4092_s3 + $0x18] sm:$0xff] }
  0xb5   :  { %v170_v59 = vsel %vm169_vm7, %v1334_v30, %v166_v52  ;;  %v200_v60 = vadd.f32 %v1793_v34, %v199_v53  ;;  %v233_v7 = vmul.f32 %v1803_v44, %v232_v57  ;;  %v266_v26 = vsub.f32 1.0, %v265_v13  ;;  %v1914_v13 = vld [vmem:[%s4092_s3 + $0x10] sm:$0xff] }
  0xb6   :  { %v175_v63 = vsel %vm172_vm6, %v174_v55, %v170_v59  ;;  %v187_v0 = vsel %vm186_vm8, %v1336_v32, %v183_v56  ;;  %v217_v12 = vadd.f32 %v1800_v41, %v216_v61  ;;  %v250_v22 = vmul.f32 %v1809_v51, %v249_v8  ;;  %vm1855_vm6 = vmor %vm235_vm4, %vm236_vm3  ;;  %v2076_v8 = vld [vmem:[%s4092_s3 + $0xf8] sm:$0xff] }
  0xb7   :  { %v176_v3 = vmul.f32 676.5204, %v175_v63  ;;  %v192_v5 = vsel %vm189_vm10, %v191_v1, %v187_v0  ;;  %v204_v11 = vsel %vm1824_vm12, %v1793_v34, %v200_v60  ;;  %v234_v21 = vadd.f32 %v1803_v44, %v233_v7  ;;  %v2049_v60 = vld [vmem:[%s4092_s3 + $0xd8] sm:$0x3] }
  0xb8   :  { %v193_v17 = vmul.f32 -1259.1392, %v192_v5  ;;  %v209_v19 = vsel %vm206_vm14, %v208_v15, %v204_v11  ;;  %v221_v25 = vsel %vm1842_vm2, %v1800_v41, %v217_v12  ;;  %v241_v30 = vand.u32 2147483648, %v1781_v28  ;;  %v1906_v11 = vld [vmem:[%s4092_s3 + $0x8] sm:$0xff]  ;;  %v1924_v15 = vld [vmem:[%s4092_s3 + $0x20] sm:$0xff] }
  0xb9   :  { %v177_v9 = vadd.f32 1.0, %v176_v3  ;;  %v210_v32 = vmul.f32 771.3234, %v209_v19  ;;  %v239_v34 = vand.u32 2147483647, %v1781_v28  ;;  %v226_v38 = vsel %vm223_vm5, %v225_v27, %v221_v25  ;;  %v1868_v28 = vpop.eup %1347  ;;  %v1929_v19 = vld [vmem:[%s4092_s3 + $0x28] sm:$0xff] }
  0xba   :  { %v238_v39 = vsel %vm1855_vm6, %v1803_v44, %v234_v21  ;;  %vm253_vm7 = vweird.f32 %v1809_v51  ;;  %v251_v41 = vadd.f32 %v1809_v51, %v250_v22  ;;  %v267_v42 = vmul.f32 %v1819_v62, %v266_v26  ;;  %v1939_v21 = vld [vmem:[%s4092_s3 + $0x38] sm:$0xff]  ;;  %v1944_v22 = vld [vmem:[%s4092_s3 + $0x40] sm:$0xff]  ;;  %v1949_v25 = vld [vmem:[%s4092_s3 + $0x48] sm:$0xff] }
  0xbb   :  { %v194_v24 = vadd.f32 %v193_v17, %v177_v9  ;;  %1349 = vlog2.f32 %v297_v35  ;;  %v242_v43 = vor.u32 1.1754944e-38, %v241_v30  ;;  %v258_v45 = vand.u32 2147483648, %v1785_v29  ;;  %v1901_v9 = vld [vmem:[%s4092_s3] sm:$0xff]  ;;  %v1954_v26 = vld [vmem:[%s4092_s3 + $0x50] sm:$0xff]  ;;  %v1959_v27 = vld [vmem:[%s4092_s3 + $0x58] sm:$0xff] }
  0xbc   :  { %v227_v46 = vmul.f32 -176.61504, %v226_v38  ;;  %vm240_vm8 = vcmp.eq.f32.partialorder %v239_v34, 8.507059e+37  ;;  %vm252_vm9 = vweird.f32 %v1785_v29  ;;  %v256_v47 = vand.u32 2147483647, %v1785_v29  ;;  %v1974_v34 = vld [vmem:[%s4092_s3 + $0x70] sm:$0xff] }
  0xbd   :  { %v211_v40 = vadd.f32 %v210_v32, %v194_v24  ;;  %v154_v44 = vmul.f32 1.442695, %v153_v37  ;;  %v243_v48 = vsel %vm240_vm8, %v242_v43, %v238_v39  ;;  %vm254_vm10 = vmor %vm252_vm9, %vm253_vm7  ;;  %v282_v49 = vmul.f32 %v1868_v28, %v1796_v36  ;;  %v1964_v32 = vld [vmem:[%s4092_s3 + $0x60] sm:$0xff]  ;;  %v1989_v39 = vld [vmem:[%s4092_s3 + $0x88] sm:$0xff] }
  0xbe   :  { %v255_v52 = vsel %vm254_vm10, %v1809_v51, %v251_v41  ;;  %v268_v53 = vadd.f32 %v1819_v62, %v267_v42  ;;  %vm270_vm11 = vweird.f32 %v1819_v62  ;;  %v259_v54 = vor.u32 1.1754944e-38, %v258_v45  ;;  %v1984_v38 = vld [vmem:[%s4092_s3 + $0x80] sm:$0xff] }
  0xbf   :  { %v228_v50 = vadd.f32 %v227_v46, %v211_v40  ;;  %v275_v55 = vand.u32 2147483648, %v1790_v31  ;;  %v283_v56 = vsub.f32 1.0, %v282_v49  ;;  %v244_v58 = vmul.f32 12.507343, %v243_v48  ;;  %v1994_v40 = vld [vmem:[%s4092_s3 + $0x90] sm:$0xff] }
  0xc0   :  { %vm257_vm12 = vcmp.eq.f32.partialorder %v256_v47, 8.507059e+37  ;;  %vm269_vm13 = vweird.f32 %v1790_v31  ;;  %v273_v29 = vand.u32 2147483647, %v1790_v31  ;;  %v298_v61 = vadd.f32 0.5, %v1765_v23  ;;  %v2008_v46 = vld [vmem:[%s4092_s3 + $0xa0] sm:$0x3] }
  0xc1   :  { %v1350_v57 = vpop.eup %1349  ;;  %v260_v59 = vsel %vm257_vm12, %v259_v54, %v255_v52  ;;  %vm1880_vm14 = vmor %vm269_vm13, %vm270_vm11  ;;  %v284_v51 = vmul.f32 %v1868_v28, %v283_v56  ;;  %1351 = vpow2.f32 %v154_v44  ;;  %v245_v0 = vadd.f32 %v244_v58, %v228_v50  ;;  %v2013_v47 = vld [vmem:[%s4092_s3 + $0xa8] sm:$0xff]  ;;  %v2021_v52 = vld [vmem:[%s4092_s3 + $0xb0] sm:$0xff] }
  0xc2   :  { %v300_v63 = vmul.f32 0.6931472, %v1350_v57  ;;  %v272_v1 = vsel %vm1880_vm14, %v1819_v62, %v268_v53  ;;  %vm287_vm15 = vweird.f32 %v1868_v28  ;;  %v276_v2 = vor.u32 1.1754944e-38, %v275_v55  ;;  %v2026_v53 = vld [vmem:[%s4092_s3 + $0xb8] sm:$0xff]  ;;  %v2031_v54 = vld [vmem:[%s4092_s3 + $0xc0] sm:$0xff] }
  0xc3   :  { %v285_v31 = vadd.f32 %v1868_v28, %v284_v51  ;;  %v292_v3 = vand.u32 2147483648, %v1796_v36  ;;  %v261_v5 = vmul.f32 -0.1385711, %v260_v59  ;;  %vm274_vm2 = vcmp.eq.f32.partialorder %v273_v29, 8.507059e+37  ;;  %v2039_v29 = vld [vmem:[%s4092_s3 + $0xc8] sm:$0xff]  ;;  %v2044_v59 = vld [vmem:[%s4092_s3 + $0xd0] sm:$0xff] }
  0xc4   :  { %v301_v4 = vmul.f32 %v300_v63, %v298_v61  ;;  %vm286_vm3 = vweird.f32 %v1796_v36  ;;  %v277_v7 = vsel %vm274_vm2, %v276_v2, %v272_v1  ;;  %vm291_vm5 = vcmp.eq.f32.partialorder %v290_v6, 8.507059e+37  ;;  %v2057_v2 = vld [vmem:[%s4092_s3 + $0xe0] sm:$0xff] }
  0xc5   :  { %vm1894_vm4 = vmor %vm286_vm3, %vm287_vm15  ;;  %v262_v12 = vadd.f32 %v261_v5, %v245_v0  ;;  %v293_v16 = vor.u32 1.1754944e-38, %v292_v3  ;;  %v278_v24 = vmul.f32 9.984369e-06, %v277_v7  ;;  %v151_v41 = vmax.f32 %v1763_v10, 0.0  ;;  %v2071_v7 = vld [vmem:[%s4092_s3 + $0xf0] sm:$0xff]  ;;  %v2146_v6 = vld [vmem:[%s4092_s3 + $0x140] sm:$0xff] }
  0xc6   :  { %v302_v62 = vsub.f32 %v301_v4, %v297_v35  ;;  %v289_v36 = vsel %vm1894_vm4, %v1868_v28, %v285_v31  ;;  %v1979_v35 = vld [vmem:[%s4092_s3 + $0x78] sm:$0xff]  ;;  %v325_v42 = vsub.f32 1.0, %v1901_v9  ;;  %v326_v43 = vsub.f32 1.0, %v1906_v11  ;;  %v2062_v31 = vld [vmem:[%s4092_s3 + $0xe8] sm:$0xff] }
  0xc7   :  { %v1352_v18 = vpop.eup %1351  ;;  %v294_v30 = vsel %vm291_vm5, %v293_v16, %v289_v36  ;;  %v279_v37 = vadd.f32 %v278_v24, %v262_v12  ;;  %v327_v45 = vsub.f32 1.0, %v1914_v13  ;;  %v2003_v28 = vld [vmem:[%s4092_s3 + $0x98] sm:$0xff]  ;;  %v328_v48 = vsub.f32 1.0, %v1919_v14  ;;  %v2089_v13 = vld [vmem:[%s4092_s3 + $0x108] sm:$0xff]  ;;  %v2094_v14 = vld [vmem:[%s4092_s3 + $0x110] sm:$0x3] }
  0xc8   :  { %v303_v17 = vmul.f32 1.442695, %v302_v62  ;;  %v295_v44 = vmul.f32 1.5056327e-07, %v294_v30  ;;  %v329_v49 = vsub.f32 1.0, %v1924_v15  ;;  %v330_v50 = vsub.f32 1.0, %v1929_v19 }
  0xc9   :  { %v156_v55 = vadd.f32 1.0, %v1352_v18  ;;  %v331_v56 = vsub.f32 1.0, %v1934_v20  ;;  %v332_v57 = vsub.f32 1.0, %v1939_v21  ;;  %v333_v58 = vsub.f32 1.0, %v1944_v22  ;;  %v2081_v62 = vld [vmem:[%s4092_s3 + $0x100] sm:$0xff]  ;;  %v2102_v24 = vld [vmem:[%s4092_s3 + $0x118] sm:$0xff] }
  0xca   :  { %1353 = vpow2.f32 %v303_v17  ;;  %v296_v51 = vadd.f32 %v295_v44, %v279_v37  ;;  %v334_v61 = vsub.f32 1.0, %v1949_v25  ;;  %v335_v63 = vsub.f32 1.0, %v1954_v26  ;;  %v2107_v30 = vld [vmem:[%s4092_s3 + $0x120] sm:$0xff]  ;;  %v2112_v37 = vld [vmem:[%s4092_s3 + $0x128] sm:$0xff]  ;;  %v2122_v17 = vld [vmem:[%s4092_s3 + $0x130] sm:$0xff] }
  0xcb   :  { %v336_v0 = vsub.f32 1.0, %v1959_v27  ;;  %1355 = vlog2.f32 %v156_v55  ;;  %v381_v11 = vmax.f32 %v325_v42, 1e-30  ;;  %v2138_v16 = vld [vmem:[%s4092_s3 + $0x138] sm:$0xff]  ;;  %v383_v55 = vmax.f32 %v327_v45, 1e-30 }
  0xcc   :  { %v384_v5 = vmax.f32 %v328_v48, 1e-30  ;;  %v2154_v42 = vld [vmem:[%s4092_s3 + $0x150] sm:$0xff]  ;;  %v385_v12 = vmax.f32 %v329_v49, 1e-30  ;;  %v2172_v36 = vld [vmem:[%s4092_s3 + $0x160] sm:$0xff] }
  0xcd   :  { %v386_v18 = vmax.f32 %v330_v50, 1e-30  ;;  %v2177_v15 = vld [vmem:[%s4092_s3 + $0x168] sm:$0xff]  ;;  %v388_v48 = vmax.f32 %v332_v57, 1e-30  ;;  %v2193_v20 = vld [vmem:[%s4092_s3 + $0x170] sm:$0xff] }
  0xce   :  { %v389_v49 = vmax.f32 %v333_v58, 1e-30  ;;  %v390_v21 = vmax.f32 %v334_v61, 1e-30  ;;  %v2204_v22 = vld [vmem:[%s4092_s3 + $0x178] sm:$0xff]  ;;  %v4227_v3 = vsub.f32 1.0, %v2003_v28 }
  0xcf   :  { %v2262_v10 = vld [vmem:[%s4092_s3 + $0x198] sm:$0xff] }
  0xd0   :  { %v1354_v1 = vpop.eup %1353 }
  0xd1   :  { %v305_v9 = vmul.f32 2.5066283, %v1354_v1  ;;  %v382_v1 = vmax.f32 %v326_v43, 1e-30  ;;  %v1356_v4 = vpop.eup %1355  ;;  %v2163_v43 = vld [vmem:[%s4092_s3 + $0x158] sm:$0xff] }
  0xd2   :  { %v158_v50 = vmul.f32 0.6931472, %v1356_v4 }
  0xd3   :  { %v2114_v44 = vmul.f32 %v305_v9, %v296_v51  ;;  %v2130_v51 = vld [vmem:[%s4092_s3 + $0x148] sm:$0x3]  ;;  %v387_v9 = vmax.f32 %v331_v56, 1e-30 }
  0xd4   :  { %v159_v25 = vadd.f32 %v158_v50, %v151_v41  ;;  %v4218_v41 = vsub.f32 1.0, %v1969_v33  ;;  %v2241_v33 = vld [vmem:[%s4092_s3 + $0x188] sm:$0xff] }
  0xd5   :  { %1357 = vrcp.f32 %v2114_v44  ;;  %v318_v61 = vand.u32 2147483648, %v2114_v44  ;;  %v316_v26 = vand.u32 2147483647, %v2114_v44  ;;  %vm312_vm7 = vweird.f32 %v2114_v44 }
  0xd6   :  { %1359 = vlog2.f32 %v381_v11 }
  0xd7   :  { %1361 = vlog2.f32 %v382_v1  ;;  %vm317_vm9 = vcmp.eq.f32.partialorder %v316_v26, 8.507059e+37  ;;  %v2286_v26 = vld [vmem:[%s4092_s3 + $0x1b0] sm:$0xff]  ;;  %v400_v1 = vmax.f32 %v4227_v3, 1e-30 }
  0xd8   :  { %1363 = vlog2.f32 %v383_v55  ;;  %v379_v28 = vsub.f32 1.0, %v2286_v26  ;;  %v4233_v26 = vsub.f32 1.0, %v2039_v29 }
  0xd9   :  { %1365 = vlog2.f32 %v384_v5  ;;  %v391_v5 = vmax.f32 %v335_v63, 1e-30 }
  0xda   :  { %1367 = vlog2.f32 %v385_v12  ;;  %v392_v12 = vmax.f32 %v336_v0, 1e-30  ;;  %v394_v0 = vmax.f32 %v4218_v41, 1e-30 }
  0xdb   :  { %v1358_v19 = vpop.eup %1357  ;;  %1369 = vlog2.f32 %v386_v18  ;;  %v4217_v18 = vsub.f32 1.0, %v1964_v32 }
  0xdc   :  { %v308_v45 = vmul.f32 %v1358_v19, %v2114_v44  ;;  %v2199_v57 = vpop.eup %1359  ;;  %1371 = vlog2.f32 %v387_v9  ;;  %vm313_vm6 = vweird.f32 %v1358_v19  ;;  %v2231_v9 = vld [vmem:[%s4092_s3 + $0x180] sm:$0x3] }
  0xdd   :  { %v2210_v55 = vpop.eup %1361  ;;  %v393_v4 = vmax.f32 %v4217_v18, 1e-30  ;;  %1373 = vlog2.f32 %v388_v48  ;;  %vm2244_vm8 = vmor %vm312_vm7, %vm313_vm6  ;;  %v319_v18 = vor.u32 1.1754944e-38, %v318_v61  ;;  %v160_v61 = vmax.f32 %v159_v25, 1e-30 }
  0xde   :  { %v309_v58 = vsub.f32 1.0, %v308_v45  ;;  %v2217_v56 = vpop.eup %1363  ;;  %1375 = vlog2.f32 %v389_v49  ;;  %v4219_v49 = vsub.f32 1.0, %v1974_v34  ;;  %v4223_v34 = vsub.f32 1.0, %v1984_v38 }
  0xdf   :  { %v2220_v27 = vpop.eup %1365  ;;  %1377 = vlog2.f32 %v390_v21  ;;  %v4224_v21 = vsub.f32 1.0, %v1989_v39  ;;  %v4226_v39 = vsub.f32 1.0, %v1994_v40  ;;  %v376_v25 = vsub.f32 1.0, %v2262_v10 }
  0xe0   :  { %v310_v45 = vmul.f32 %v1358_v19, %v309_v58  ;;  %v2226_v32 = vpop.eup %1367  ;;  %v395_v50 = vmax.f32 %v4219_v49, 1e-30  ;;  %1379 = vlog2.f32 %v391_v5  ;;  %v397_v41 = vmax.f32 %v4223_v34, 1e-30  ;;  %v2257_v49 = vld [vmem:[%s4092_s3 + $0x190] sm:$0xff] }
  0xe1   :  { %v2236_v58 = vpop.eup %1369  ;;  %1381 = vlog2.f32 %v392_v12  ;;  %v2271_v12 = vld [vmem:[%s4092_s3 + $0x1a0] sm:$0xff] }
  0xe2   :  { %v311_v48 = vadd.f32 %v1358_v19, %v310_v45  ;;  %v4222_v45 = vsub.f32 1.0, %v1979_v35  ;;  %v2252_v5 = vpop.eup %1371  ;;  %1383 = vlog2.f32 %v393_v4  ;;  %v377_v40 = vsub.f32 1.0, %v2271_v12 }
  0xe3   :  { %v2266_v38 = vpop.eup %1373  ;;  %1385 = vlog2.f32 %v394_v0  ;;  %v4230_v12 = vsub.f32 1.0, %v2021_v52 }
  0xe4   :  { %v396_v44 = vmax.f32 %v4222_v45, 1e-30  ;;  %v315_v35 = vsel %vm2244_vm8, %v1358_v19, %v311_v48  ;;  %v2276_v45 = vld [vmem:[%s4092_s3 + $0x1a8] sm:$0xff]  ;;  %v398_v19 = vmax.f32 %v4224_v21, 1e-30  ;;  %v2281_v4 = vpop.eup %1375  ;;  %1387 = vlog2.f32 %v395_v50 }
  0xe5   :  { %v320_v34 = vsel %vm317_vm9, %v319_v18, %v315_v35  ;;  %v2291_v48 = vld [vmem:[%s4092_s3 + $0x1b8] sm:$0x3]  ;;  %v399_v35 = vmax.f32 %v4226_v39, 1e-30  ;;  %v2298_v0 = vpop.eup %1377  ;;  %v375_v21 = vsub.f32 1.0, %v2257_v49  ;;  %v378_v50 = vsub.f32 1.0, %v2276_v45 }
  0xe6   :  { %v2293_v63 = vmul.f32 %v320_v34, %v160_v61  ;;  %1389 = vlog2.f32 %v396_v44  ;;  %v2304_v11 = vpop.eup %1379  ;;  %v4228_v49 = vsub.f32 1.0, %v2008_v46  ;;  %v380_v3 = vsub.f32 1.0, %v2291_v48 }
  0xe7   :  { %1391 = vlog2.f32 %v397_v41  ;;  %v2315_v10 = vpop.eup %1381  ;;  %v4229_v44 = vsub.f32 1.0, %v2013_v47  ;;  %v403_v18 = vmax.f32 %v4230_v12, 1e-30  ;;  %v4231_v45 = vsub.f32 1.0, %v2026_v53 }
  0xe8   :  { %4225 = vst [vmem:[#allocation3_spill] sm:$0xff] %v2293_v63  ;;  %v401_v61 = vmax.f32 %v4228_v49, 1e-30  ;;  %1393 = vlog2.f32 %v398_v19  ;;  %v2321_v39 = vpop.eup %1383  ;;  %v4232_v41 = vsub.f32 1.0, %v2031_v54  ;;  %v406_v48 = vmax.f32 %v4233_v26, 1e-30 }
  0xe9   :  { %324 = vst.msk [vmem:[%s4093_s6] sm:$0xff] %vm4162_vm1, %v2293_v63  ;;  %v402_v34 = vmax.f32 %v4229_v44, 1e-30  ;;  %v404_v46 = vmax.f32 %v4231_v45, 1e-30  ;;  %1395 = vlog2.f32 %v399_v35  ;;  %v2329_v63 = vpop.eup %1385  ;;  %v4234_v47 = vsub.f32 1.0, %v2044_v59 }
  0xea   :  { %v405_v49 = vmax.f32 %v4232_v41, 1e-30  ;;  %v4235_v44 = vsub.f32 1.0, %v2049_v60  ;;  %1397 = vlog2.f32 %v400_v1  ;;  %v2337_v52 = vpop.eup %1387  ;;  %v4236_v53 = vsub.f32 1.0, %v2057_v2 }
  0xeb   :  { %v407_v19 = vmax.f32 %v4234_v47, 1e-30  ;;  %v4237_v54 = vsub.f32 1.0, %v2062_v31  ;;  %v4238_v45 = vsub.f32 1.0, %v2071_v7  ;;  %1399 = vlog2.f32 %v401_v61 }
  0xec   :  { %v408_v23 = vmax.f32 %v4235_v44, 1e-30  ;;  %v409_v12 = vmax.f32 %v4236_v53, 1e-30  ;;  %v2345_v29 = vpop.eup %1389  ;;  %v4239_v59 = vsub.f32 1.0, %v2076_v8  ;;  %v4240_v60 = vsub.f32 1.0, %v2081_v62 }
  0xed   :  { %v410_v35 = vmax.f32 %v4237_v54, 1e-30  ;;  %v411_v41 = vmax.f32 %v4238_v45, 1e-30  ;;  %v4241_v47 = vsub.f32 1.0, %v2089_v13  ;;  %1401 = vlog2.f32 %v402_v34  ;;  %v1392_v2 = vpop.eup %1391 }
  0xee   :  { %v412_v26 = vmax.f32 %v4239_v59, 1e-30  ;;  %v413_v1 = vmax.f32 %v4240_v60, 1e-30  ;;  %v4242_v31 = vsub.f32 1.0, %v2094_v14  ;;  %v4243_v7 = vsub.f32 1.0, %v2102_v24  ;;  %v1394_v8 = vpop.eup %1393 }
  0xef   :  { %v414_v44 = vmax.f32 %v4241_v47, 1e-30  ;;  %v4244_v61 = vsub.f32 1.0, %v2107_v30  ;;  %1403 = vlog2.f32 %v403_v18  ;;  %v4245_v62 = vsub.f32 1.0, %v2112_v37  ;;  %v1396_v24 = vpop.eup %1395 }
  0xf0   :  { %v415_v53 = vmax.f32 %v4242_v31, 1e-30  ;;  %v2357_v54 = vmax.f32 %v4243_v7, 1e-30  ;;  %v4246_v13 = vsub.f32 1.0, %v2122_v17  ;;  %v4247_v14 = vsub.f32 1.0, %v2138_v16  ;;  %v1398_v17 = vpop.eup %1397 }
  0xf1   :  { %v2361_v45 = vmax.f32 %v4244_v61, 1e-30  ;;  %v2365_v59 = vmax.f32 %v4245_v62, 1e-30  ;;  %1405 = vlog2.f32 %v404_v46  ;;  %v4248_v30 = vsub.f32 1.0, %v2146_v6 }
  0xf2   :  { %v2369_v34 = vmax.f32 %v4246_v13, 1e-30  ;;  %v2373_v60 = vmax.f32 %v4247_v14, 1e-30  ;;  %v4249_v18 = vsub.f32 1.0, %v2130_v51  ;;  %v4250_v37 = vsub.f32 1.0, %v2154_v42  ;;  %v1400_v51 = vpop.eup %1399 }
  0xf3   :  { %v2377_v47 = vmax.f32 %v4248_v30, 1e-30  ;;  %1407 = vlog2.f32 %v405_v49  ;;  %v4251_v16 = vsub.f32 1.0, %v2163_v43  ;;  %v4252_v46 = vsub.f32 1.0, %v2172_v36  ;;  %v1402_v36 = vpop.eup %1401 }
  0xf4   :  { %v2381_v31 = vmax.f32 %v4249_v18, 1e-30  ;;  %v2385_v7 = vmax.f32 %v4250_v37, 1e-30  ;;  %v4253_v6 = vsub.f32 1.0, %v2177_v15  ;;  %1409 = vlog2.f32 %v406_v48 }
  0xf5   :  { %v2389_v61 = vmax.f32 %v4251_v16, 1e-30  ;;  %v2393_v62 = vmax.f32 %v4252_v46, 1e-30  ;;  %v4254_v42 = vsub.f32 1.0, %v2193_v20  ;;  %v4255_v49 = vsub.f32 1.0, %v2204_v22  ;;  %v1404_v20 = vpop.eup %1403 }
  0xf6   :  { %v2397_v13 = vmax.f32 %v4253_v6, 1e-30  ;;  %v4256_v43 = vsub.f32 1.0, %v2231_v9  ;;  %1411 = vlog2.f32 %v407_v19  ;;  %v4257_v15 = vsub.f32 1.0, %v2241_v33 }
  0xf7   :  { %v2401_v14 = vmax.f32 %v4254_v42, 1e-30  ;;  %v2405_v30 = vmax.f32 %v4255_v49, 1e-30  ;;  %v2415_v48 = vmax.f32 %v375_v21, 1e-30  ;;  %1413 = vlog2.f32 %v408_v23  ;;  %v1406_v9 = vpop.eup %1405 }
  0xf8   :  { %v2409_v18 = vmax.f32 %v4256_v43, 1e-30  ;;  %v2413_v37 = vmax.f32 %v4257_v15, 1e-30  ;;  %v2417_v16 = vmax.f32 %v376_v25, 1e-30  ;;  %1415 = vlog2.f32 %v409_v12 }
  0xf9   :  { %v2419_v46 = vmax.f32 %v377_v40, 1e-30  ;;  %v2421_v22 = vmax.f32 %v378_v50, 1e-30  ;;  %v2423_v6 = vmax.f32 %v379_v28, 1e-30  ;;  %1417 = vlog2.f32 %v410_v35  ;;  %v1408_v25 = vpop.eup %1407 }
  0xfa   :  { %v2425_v19 = vmax.f32 %v380_v3, 1e-30  ;;  %v2428_v33 = vmul.f32 0.6931472, %v2199_v57  ;;  %v2431_v21 = vmul.f32 0.6931472, %v2210_v55  ;;  %1419 = vlog2.f32 %v411_v41  ;;  %v1410_v28 = vpop.eup %1409 }
  0xfb   :  { %v2434_v23 = vmul.f32 0.6931472, %v2217_v56  ;;  %v2437_v40 = vmul.f32 0.6931472, %v2220_v27  ;;  %v2440_v50 = vmul.f32 0.6931472, %v2226_v32  ;;  %1421 = vlog2.f32 %v412_v26 }
  0xfc   :  { %4258 = vst [vmem:[#allocation4_spill] sm:$0xff] %v2428_v33  ;;  %v2443_v3 = vmul.f32 0.6931472, %v2236_v58  ;;  %v2446_v57 = vmul.f32 0.6931472, %v2252_v5  ;;  %v1412_v56 = vpop.eup %1411  ;;  %1423 = vlog2.f32 %v413_v1 }
  0xfd   :  { %4259 = vst [vmem:[#allocation5_spill] sm:$0xff] %v2431_v21  ;;  %v2449_v55 = vmul.f32 0.6931472, %v2266_v38  ;;  %v2452_v12 = vmul.f32 0.6931472, %v2281_v4  ;;  %v1414_v58 = vpop.eup %1413  ;;  %1425 = vlog2.f32 %v414_v44 }
  0xfe   :  { %4260 = vst [vmem:[#allocation6_spill] sm:$0xff] %v2434_v23  ;;  %v2455_v27 = vmul.f32 0.6931472, %v2298_v0  ;;  %v2458_v32 = vmul.f32 0.6931472, %v2304_v11  ;;  %v1416_v4 = vpop.eup %1415  ;;  %1427 = vlog2.f32 %v415_v53 }
  0xff   :  { %4261 = vst [vmem:[#allocation7_spill] sm:$0xff] %v2437_v40  ;;  %v2461_v35 = vmul.f32 0.6931472, %v2315_v10  ;;  %v2464_v5 = vmul.f32 0.6931472, %v2321_v39  ;;  %v1418_v26 = vpop.eup %1417  ;;  %1429 = vlog2.f32 %v2357_v54 }
 0x100   :  { %4262 = vst [vmem:[#allocation8_spill] sm:$0xff] %v2440_v50  ;;  %v2467_v38 = vmul.f32 0.6931472, %v2329_v63  ;;  %v2470_v41 = vmul.f32 0.6931472, %v2337_v52  ;;  %v1420_v63 = vpop.eup %1419  ;;  %1431 = vlog2.f32 %v2361_v45 }
 0x101   :  { %4263 = vst [vmem:[#allocation9_spill] sm:$0xff] %v2443_v3  ;;  %v2473_v0 = vmul.f32 0.6931472, %v2345_v29  ;;  %v2475_v11 = vmul.f32 0.6931472, %v1392_v2  ;;  %v1422_v29 = vpop.eup %1421  ;;  %1433 = vlog2.f32 %v2365_v59 }
 0x102   :  { %4264 = vst [vmem:[#allocation10_spill] sm:$0xff] %v2446_v57  ;;  %v2477_v10 = vmul.f32 0.6931472, %v1394_v8  ;;  %v2479_v1 = vmul.f32 0.6931472, %v1396_v24  ;;  %v4104_v8 = vsub.f32 0.0, %v2428_v33  ;;  %v1424_v24 = vpop.eup %1423  ;;  %1435 = vlog2.f32 %v2369_v34 }
 0x103   :  { %4265 = vst [vmem:[#allocation11_spill] sm:$0xff] %v2449_v55  ;;  %v2481_v39 = vmul.f32 0.6931472, %v1398_v17  ;;  %v2484_v44 = vmul.f32 0.6931472, %v1400_v51  ;;  %v1426_v49 = vpop.eup %1425  ;;  %1437 = vlog2.f32 %v2373_v60  ;;  %v4311_v17 = vsub.f32 0.0, %v2437_v40 }
 0x104   :  { %4266 = vst [vmem:[#allocation12_spill] sm:$0xff] %v2452_v12  ;;  %v2486_v52 = vmul.f32 0.6931472, %v1402_v36  ;;  %v2488_v42 = vmul.f32 0.6931472, %v1404_v20  ;;  %v1428_v36 = vpop.eup %1427  ;;  %1439 = vlog2.f32 %v2377_v47 }
 0x105   :  { %4267 = vst [vmem:[#allocation13_spill] sm:$0xff] %v2455_v27  ;;  %v2491_v2 = vmul.f32 0.6931472, %v1406_v9  ;;  %v2493_v53 = vmul.f32 0.6931472, %v1408_v25  ;;  %v1430_v9 = vpop.eup %1429  ;;  %1441 = vlog2.f32 %v2381_v31 }
 0x106   :  { %4268 = vst [vmem:[#allocation14_spill] sm:$0xff] %v2458_v32  ;;  %v2497_v54 = vmul.f32 0.6931472, %v1410_v28  ;;  %v2502_v45 = vmul.f32 0.6931472, %v1412_v56  ;;  %v1432_v56 = vpop.eup %1431  ;;  %1443 = vlog2.f32 %v2385_v7 }
 0x107   :  { %4269 = vst [vmem:[#allocation15_spill] sm:$0xff] %v2461_v35  ;;  %v2507_v15 = vmul.f32 0.6931472, %v1414_v58  ;;  %v2509_v20 = vmul.f32 0.6931472, %v1416_v4  ;;  %v1434_v4 = vpop.eup %1433  ;;  %1445 = vlog2.f32 %v2389_v61 }
 0x108   :  { %4270 = vst [vmem:[#allocation16_spill] sm:$0xff] %v2464_v5  ;;  %v2513_v25 = vmul.f32 0.6931472, %v1418_v26  ;;  %v2518_v59 = vmul.f32 0.6931472, %v1420_v63  ;;  %v1436_v60 = vpop.eup %1435  ;;  %1447 = vlog2.f32 %v2393_v62 }
 0x109   :  { %4271 = vst [vmem:[#allocation17_spill] sm:$0xff] %v2467_v38  ;;  %v2523_v34 = vmul.f32 0.6931472, %v1422_v29  ;;  %v2528_v28 = vmul.f32 0.6931472, %v1424_v24  ;;  %v1438_v58 = vpop.eup %1437  ;;  %1449 = vlog2.f32 %v2397_v13 }
 0x10a   :  { %4272 = vst [vmem:[#allocation18_spill] sm:$0xff] %v2470_v41  ;;  %v2533_v47 = vmul.f32 0.6931472, %v1426_v49  ;;  %v1440_v31 = vpop.eup %1439  ;;  %v2538_v26 = vmul.f32 0.6931472, %v1428_v36  ;;  %1451 = vlog2.f32 %v2401_v14 }
 0x10b   :  { %4273 = vst [vmem:[#allocation19_spill] sm:$0xff] %v2473_v0  ;;  %v1442_v7 = vpop.eup %1441  ;;  %v2543_v63 = vmul.f32 0.6931472, %v1430_v9  ;;  %1453 = vlog2.f32 %v2405_v30  ;;  %v2548_v29 = vmul.f32 0.6931472, %v1432_v56 }
 0x10c   :  { %4274 = vst [vmem:[#allocation20_spill] sm:$0xff] %v2475_v11  ;;  %v1444_v61 = vpop.eup %1443  ;;  %1455 = vlog2.f32 %v2409_v18  ;;  %v2553_v24 = vmul.f32 0.6931472, %v1434_v4  ;;  %v2558_v49 = vmul.f32 0.6931472, %v1436_v60 }
 0x10d   :  { %4275 = vst [vmem:[#allocation21_spill] sm:$0xff] %v2477_v10  ;;  %v1446_v62 = vpop.eup %1445  ;;  %1457 = vlog2.f32 %v2413_v37  ;;  %v2563_v36 = vmul.f32 0.6931472, %v1438_v58  ;;  %v2568_v9 = vmul.f32 0.6931472, %v1440_v31 }
 0x10e   :  { %4276 = vst [vmem:[#allocation22_spill] sm:$0xff] %v2479_v1  ;;  %v1448_v13 = vpop.eup %1447  ;;  %1459 = vlog2.f32 %v2415_v48  ;;  %v2573_v56 = vmul.f32 0.6931472, %v1442_v7  ;;  %v2578_v4 = vmul.f32 0.6931472, %v1444_v61  ;;  %v4309_v61 = vsub.f32 0.0, %v2434_v23 }
 0x10f   :  { %4277 = vst [vmem:[#allocation23_spill] sm:$0xff] %v2481_v39  ;;  %v1450_v14 = vpop.eup %1449  ;;  %1461 = vlog2.f32 %v2417_v16  ;;  %v2583_v60 = vmul.f32 0.6931472, %v1446_v62  ;;  %v2585_v7 = vmul.f32 0.6931472, %v1448_v13  ;;  %v4306_v13 = vsub.f32 0.0, %v2431_v21 }
 0x110   :  { %4278 = vst [vmem:[#allocation24_spill] sm:$0xff] %v2484_v44  ;;  %v1452_v30 = vpop.eup %1451  ;;  %1463 = vlog2.f32 %v2419_v46  ;;  %v2587_v43 = vmul.f32 0.6931472, %v1450_v14  ;;  %v671_v58 = vmax.f32 %v4309_v61, 1e-38 }
 0x111   :  { %4279 = vst [vmem:[#allocation25_spill] sm:$0xff] %v2486_v52  ;;  %v1454_v18 = vpop.eup %1453  ;;  %1465 = vlog2.f32 %v2421_v22  ;;  %v2594_v31 = vmul.f32 0.6931472, %v1452_v30  ;;  %v670_v14 = vmax.f32 %v4306_v13, 1e-38 }
 0x112   :  { %4280 = vst [vmem:[#allocation26_spill] sm:$0xff] %v2488_v42  ;;  %v1456_v37 = vpop.eup %1455  ;;  %1467 = vlog2.f32 %v2423_v6  ;;  %v2596_v62 = vmul.f32 0.6931472, %v1454_v18  ;;  %v669_v6 = vmax.f32 %v4104_v8, 1e-38 }
 0x113   :  { %4281 = vst [vmem:[#allocation27_spill] sm:$0xff] %v2491_v2  ;;  %v1458_v48 = vpop.eup %1457  ;;  %1469 = vlog2.f32 %v2425_v19 }
 0x114   :  { %4282 = vst [vmem:[#allocation28_spill] sm:$0xff] %v2493_v53  ;;  %v1460_v22 = vpop.eup %1459  ;;  %v2612_v19 = vmul.f32 0.6931472, %v1458_v48  ;;  %1471 = vlog2.f32 %v669_v6 }
 0x115   :  { %4283 = vst [vmem:[#allocation29_spill] sm:$0xff] %v2497_v54  ;;  %v1462_v16 = vpop.eup %1461  ;;  %v2616_v8 = vmul.f32 0.6931472, %v1460_v22  ;;  %v4317_v22 = vsub.f32 0.0, %v2443_v3  ;;  %1473 = vlog2.f32 %v670_v14  ;;  %v4324_v14 = vsub.f32 0.0, %v2458_v32 }
 0x116   :  { %4284 = vst [vmem:[#allocation30_spill] sm:$0xff] %v2502_v45  ;;  %v1464_v51 = vpop.eup %1463  ;;  %v2622_v21 = vmul.f32 0.6931472, %v1462_v16  ;;  %v4319_v16 = vsub.f32 0.0, %v2446_v57  ;;  %1475 = vlog2.f32 %v671_v58  ;;  %v4326_v32 = vsub.f32 0.0, %v2464_v5 }
 0x117   :  { %4285 = vst [vmem:[#allocation31_spill] sm:$0xff] %v2507_v15  ;;  %v1466_v46 = vpop.eup %1465  ;;  %v2624_v13 = vmul.f32 0.6931472, %v1464_v51  ;;  %v674_v30 = vmax.f32 %v4317_v22, 1e-38  ;;  %v4331_v58 = vsub.f32 0.0, %v2477_v10 }
 0x118   :  { %4286 = vst [vmem:[#allocation32_spill] sm:$0xff] %v2509_v20  ;;  %v2628_v23 = vmul.f32 0.6931472, %v1466_v46  ;;  %v675_v51 = vmax.f32 %v4319_v16, 1e-38  ;;  %v4320_v46 = vsub.f32 0.0, %v2449_v55 }
 0x119   :  { %4287 = vst [vmem:[#allocation33_spill] sm:$0xff] %v2513_v25  ;;  %v4322_v16 = vsub.f32 0.0, %v2455_v27  ;;  %v679_v55 = vmax.f32 %v4324_v14, 1e-38  ;;  %v681_v14 = vmax.f32 %v4326_v32, 1e-38 }
 0x11a   :  { %4288 = vst [vmem:[#allocation34_spill] sm:$0xff] %v2518_v59  ;;  %v4330_v32 = vsub.f32 0.0, %v2475_v11  ;;  %v4336_v11 = vsub.f32 0.0, %v2488_v42  ;;  %v4341_v42 = vsub.f32 0.0, %v2507_v15 }
 0x11b   :  { %4289 = vst [vmem:[#allocation35_spill] sm:$0xff] %v2523_v34 }
 0x11c   :  { %4290 = vst [vmem:[#allocation36_spill] sm:$0xff] %v2528_v28 }
 0x11d   :  { %4291 = vst [vmem:[#allocation37_spill] sm:$0xff] %v2533_v47 }
 0x11e   :  { %4292 = vst [vmem:[#allocation38_spill] sm:$0xff] %v2538_v26 }
 0x11f   :  { %4293 = vst [vmem:[#allocation39_spill] sm:$0xff] %v2543_v63 }
 0x120   :  { %4294 = vst [vmem:[#allocation40_spill] sm:$0xff] %v2548_v29 }
 0x121   :  { %4295 = vst [vmem:[#allocation41_spill] sm:$0xff] %v2553_v24 }
 0x122   :  { %4296 = vst [vmem:[#allocation42_spill] sm:$0xff] %v2558_v49  ;;  %v2610_v49 = vmul.f32 0.6931472, %v1456_v37  ;;  %v4314_v37 = vsub.f32 0.0, %v2440_v50  ;;  %v678_v50 = vmax.f32 %v4322_v16, 1e-38 }
 0x123   :  { %4297 = vst [vmem:[#allocation43_spill] sm:$0xff] %v2563_v36  ;;  %v1468_v36 = vpop.eup %1467 }
 0x124   :  { %4298 = vst [vmem:[#allocation44_spill] sm:$0xff] %v2568_v9  ;;  %v1470_v33 = vpop.eup %1469  ;;  %v673_v48 = vmax.f32 %v4314_v37, 1e-38  ;;  %v2630_v61 = vmul.f32 0.6931472, %v1468_v36  ;;  %v4329_v37 = vsub.f32 0.0, %v2473_v0 }
 0x125   :  { %4299 = vst [vmem:[#allocation45_spill] sm:$0xff] %v2573_v56  ;;  %v2634_v18 = vmul.f32 0.6931472, %v1470_v33  ;;  %v676_v36 = vmax.f32 %v4320_v46, 1e-38  ;;  %v4321_v33 = vsub.f32 0.0, %v2452_v12  ;;  %v2651_v6 = vpop.eup %1471 }
 0x126   :  { %4300 = vst [vmem:[#allocation46_spill] sm:$0xff] %v2578_v4  ;;  %v4323_v46 = vld [vmem:[#allocation2_spill] sm:$0xff]  ;;  %v684_v5 = vmax.f32 %v4329_v37, 1e-38  ;;  %v4334_v37 = vsub.f32 0.0, %v2484_v44 }
 0x127   :  { %4301 = vst [vmem:[#allocation47_spill] sm:$0xff] %v2583_v60  ;;  %v677_v22 = vmax.f32 %v4321_v33, 1e-38  ;;  %v2657_v33 = vpop.eup %1473 }
 0x128   :  { %4302 = vst [vmem:[#allocation48_spill] sm:$0xff] %v2585_v7  ;;  %v689_v0 = vmax.f32 %v4334_v37, 1e-38 }
 0x129   :  { %4303 = vst [vmem:[#allocation49_spill] sm:$0xff] %v2587_v43  ;;  %v672_v43 = vmax.f32 %v4311_v17, 1e-38  ;;  %v4325_v17 = vsub.f32 0.0, %v2461_v35  ;;  %v4327_v35 = vsub.f32 0.0, %v2467_v38  ;;  %v4333_v38 = vsub.f32 0.0, %v2481_v39 }
 0x12a   :  { %4304 = vst [vmem:[#allocation50_spill] sm:$0xff] %v2594_v31  ;;  %v4339_v39 = vsub.f32 0.0, %v2497_v54 }
 0x12b   :  { %4305 = vst [vmem:[#allocation51_spill] sm:$0xff] %v2596_v62  ;;  %1477 = vlog2.f32 %v672_v43  ;;  %v680_v16 = vmax.f32 %v4325_v17, 1e-38  ;;  %v682_v17 = vmax.f32 %v4327_v35, 1e-38  ;;  %v4328_v43 = vsub.f32 0.0, %v2470_v41 }
 0x12c   :  { %4307 = vst [vmem:[#allocation52_spill] sm:$0xff] %v2610_v49  ;;  %1479 = vlog2.f32 %v673_v48  ;;  %v686_v48 = vmax.f32 %v4331_v58, 1e-38  ;;  %v4332_v35 = vsub.f32 0.0, %v2479_v1  ;;  %v688_v57 = vmax.f32 %v4333_v38, 1e-38 }
 0x12d   :  { %4308 = vst [vmem:[#allocation53_spill] sm:$0xff] %v2612_v19  ;;  %1481 = vlog2.f32 %v674_v30  ;;  %v2663_v30 = vpop.eup %1475  ;;  %v683_v27 = vmax.f32 %v4328_v43, 1e-38  ;;  %v691_v41 = vmax.f32 %v4336_v11, 1e-38  ;;  %v4338_v38 = vsub.f32 0.0, %v2493_v53 }
 0x12e   :  { %4310 = vst [vmem:[#allocation54_spill] sm:$0xff] %v2616_v8  ;;  %1483 = vlog2.f32 %v675_v51  ;;  %v694_v10 = vmax.f32 %v4339_v39, 1e-38  ;;  %v2711_v11 = vmax.f32 %v4341_v42, 1e-38  ;;  %v4344_v39 = vsub.f32 0.0, %v2518_v59 }
 0x12f   :  { %4312 = vst [vmem:[#allocation55_spill] sm:$0xff] %v2622_v21  ;;  %1485 = vlog2.f32 %v676_v36 }
 0x130   :  { %4313 = vst [vmem:[#allocation56_spill] sm:$0xff] %v2624_v13  ;;  %1487 = vlog2.f32 %v677_v22  ;;  %v685_v22 = vmax.f32 %v4330_v32, 1e-38  ;;  %v4335_v32 = vsub.f32 0.0, %v2486_v52  ;;  %v4340_v52 = vsub.f32 0.0, %v2502_v45 }
 0x131   :  { %4315 = vst [vmem:[#allocation57_spill] sm:$0xff] %v2628_v23  ;;  %v2669_v51 = vpop.eup %1477  ;;  %1489 = vlog2.f32 %v678_v50  ;;  %v687_v50 = vmax.f32 %v4332_v35, 1e-38  ;;  %v4337_v35 = vsub.f32 0.0, %v2491_v2 }
 0x132   :  { %4316 = vst [vmem:[#allocation58_spill] sm:$0xff] %v2630_v61  ;;  %v2675_v36 = vpop.eup %1479  ;;  %1491 = vlog2.f32 %v679_v55  ;;  %v690_v55 = vmax.f32 %v4335_v32, 1e-38  ;;  %v695_v32 = vmax.f32 %v4340_v52, 1e-38  ;;  %v4345_v52 = vsub.f32 0.0, %v2523_v34 }
 0x133   :  { %4318 = vst [vmem:[#allocation59_spill] sm:$0xff] %v2634_v18  ;;  %v2683_v12 = vpop.eup %1481  ;;  %1493 = vlog2.f32 %v680_v16  ;;  %v692_v1 = vmax.f32 %v4337_v35, 1e-38  ;;  %v693_v16 = vmax.f32 %v4338_v38, 1e-38  ;;  %v4343_v38 = vsub.f32 0.0, %v2513_v25 }
 0x134   :  { %v2691_v43 = vpop.eup %1483  ;;  %1495 = vlog2.f32 %v681_v14  ;;  %v4342_v14 = vsub.f32 0.0, %v2509_v20  ;;  %v2727_v45 = vmax.f32 %v4345_v52, 1e-38  ;;  %v4346_v20 = vsub.f32 0.0, %v2528_v28 }
 0x135   :  { %v2699_v58 = vpop.eup %1485  ;;  %1497 = vlog2.f32 %v682_v17  ;;  %v2719_v53 = vmax.f32 %v4343_v38, 1e-38  ;;  %v2723_v17 = vmax.f32 %v4344_v39, 1e-38  ;;  %v4348_v38 = vsub.f32 0.0, %v2538_v26 }
 0x136   :  { %v1488_v37 = vpop.eup %1487  ;;  %v2715_v44 = vmax.f32 %v4342_v14, 1e-38  ;;  %1499 = vlog2.f32 %v683_v27  ;;  %v2731_v14 = vmax.f32 %v4346_v20, 1e-38  ;;  %v4347_v27 = vsub.f32 0.0, %v2533_v47  ;;  %v4352_v47 = vld [vmem:[#allocation42_spill] sm:$0xff] }
 0x137   :  { %v1490_v35 = vpop.eup %1489  ;;  %1501 = vlog2.f32 %v684_v5  ;;  %v2739_v25 = vmax.f32 %v4348_v38, 1e-38  ;;  %v4349_v34 = vsub.f32 0.0, %v2543_v63  ;;  %v4350_v5 = vsub.f32 0.0, %v2548_v29 }
 0x138   :  { %v1492_v42 = vpop.eup %1491  ;;  %v2735_v15 = vmax.f32 %v4347_v27, 1e-38  ;;  %1503 = vlog2.f32 %v685_v22  ;;  %v4351_v20 = vsub.f32 0.0, %v2553_v24  ;;  %v4353_v26 = vsub.f32 0.0, %v4352_v47  ;;  %v4354_v22 = vld [vmem:[#allocation43_spill] sm:$0xff] }
 0x139   :  { %v1494_v39 = vpop.eup %1493  ;;  %v2743_v52 = vmax.f32 %v4349_v34, 1e-38  ;;  %v2747_v59 = vmax.f32 %v4350_v5, 1e-38  ;;  %1505 = vlog2.f32 %v686_v48  ;;  %v4355_v54 = vsub.f32 0.0, %v4354_v22 }
 0x13a   :  { %v2751_v28 = vmax.f32 %v4351_v20, 1e-38  ;;  %v1496_v27 = vpop.eup %1495  ;;  %v2755_v38 = vmax.f32 %v4353_v26, 1e-38  ;;  %v4356_v34 = vsub.f32 0.0, %v2568_v9  ;;  %1507 = vlog2.f32 %v687_v50  ;;  %v4361_v50 = vld [vmem:[#allocation49_spill] sm:$0xff] }
 0x13b   :  { %v2759_v2 = vmax.f32 %v4355_v54, 1e-38  ;;  %v1498_v5 = vpop.eup %1497  ;;  %v4357_v24 = vsub.f32 0.0, %v2573_v56  ;;  %v4358_v48 = vsub.f32 0.0, %v2578_v4  ;;  %v4359_v26 = vsub.f32 0.0, %v2583_v60 }
 0x13c   :  { %v2763_v63 = vmax.f32 %v4356_v34, 1e-38  ;;  %1509 = vlog2.f32 %v688_v57  ;;  %v1500_v54 = vpop.eup %1499  ;;  %v4360_v9 = vsub.f32 0.0, %v2585_v7  ;;  %v4362_v22 = vsub.f32 0.0, %v4361_v50 }
 0x13d   :  { %v2767_v20 = vmax.f32 %v4357_v24, 1e-38  ;;  %v2771_v29 = vmax.f32 %v4358_v48, 1e-38  ;;  %v2775_v47 = vmax.f32 %v4359_v26, 1e-38  ;;  %1511 = vlog2.f32 %v689_v0  ;;  %v1502_v48 = vpop.eup %1501 }
 0x13e   :  { %v2779_v34 = vmax.f32 %v4360_v9, 1e-38  ;;  %v2783_v3 = vmax.f32 %v4362_v22, 1e-38  ;;  %v4363_v24 = vsub.f32 0.0, %v2594_v31  ;;  %v4364_v60 = vsub.f32 0.0, %v2596_v62  ;;  %v1504_v22 = vpop.eup %1503 }
 0x13f   :  { %v4365_v57 = vsub.f32 0.0, %v2610_v49  ;;  %v4366_v9 = vsub.f32 0.0, %v2612_v19  ;;  %1513 = vlog2.f32 %v690_v55  ;;  %v4367_v31 = vsub.f32 0.0, %v2616_v8 }
 0x140   :  { %v2787_v56 = vmax.f32 %v4363_v24, 1e-38  ;;  %v2791_v26 = vmax.f32 %v4364_v60, 1e-38  ;;  %v4368_v0 = vsub.f32 0.0, %v2622_v21  ;;  %v4369_v60 = vsub.f32 0.0, %v2624_v13 }
 0x141   :  { %v2795_v4 = vmax.f32 %v4365_v57, 1e-38  ;;  %v2799_v7 = vmax.f32 %v4366_v9, 1e-38  ;;  %v2803_v24 = vmax.f32 %v4367_v31, 1e-38  ;;  %1515 = vlog2.f32 %v691_v41  ;;  %v1506_v57 = vpop.eup %1505 }
 0x142   :  { %v2807_v50 = vmax.f32 %v4368_v0, 1e-38  ;;  %v2811_v62 = vmax.f32 %v4369_v60, 1e-38  ;;  %v4370_v19 = vsub.f32 0.0, %v2628_v23  ;;  %v4372_v55 = vsub.f32 0.0, %v2630_v61  ;;  %v1508_v0 = vpop.eup %1507 }
 0x143   :  { %v4374_v31 = vsub.f32 0.0, %v2634_v18  ;;  %1517 = vlog2.f32 %v692_v1  ;;  %v726_v13 = vmul.f32 0.6931472, %v2651_v6  ;;  %v728_v60 = vmul.f32 0.6931472, %v2657_v33  ;;  %v1510_v23 = vpop.eup %1509 }
 0x144   :  { %v2815_v9 = vmax.f32 %v4370_v19, 1e-38  ;;  %v2819_v49 = vmax.f32 %v4372_v55, 1e-38  ;;  %v730_v41 = vmul.f32 0.6931472, %v2663_v30  ;;  %1519 = vlog2.f32 %v693_v16 }
 0x145   :  { %v2823_v8 = vmax.f32 %v4374_v31, 1e-38  ;;  %v732_v19 = vmul.f32 0.6931472, %v2669_v51  ;;  %v734_v61 = vmul.f32 0.6931472, %v2675_v36  ;;  %1521 = vlog2.f32 %v694_v10  ;;  %v1512_v31 = vpop.eup %1511 }
 0x146   :  { %4371 = vst [vmem:[#allocation2_spill] sm:$0xff] %v2815_v9  ;;  %v2831_v55 = vmul.f32 0.6931472, %v2683_v12  ;;  %v2834_v1 = vmul.f32 0.6931472, %v2691_v43  ;;  %1523 = vlog2.f32 %v695_v32  ;;  %v1514_v30 = vpop.eup %1513 }
 0x147   :  { %4373 = vst [vmem:[#allocation60_spill] sm:$0xff] %v2819_v49  ;;  %v2837_v6 = vmul.f32 0.6931472, %v2699_v58  ;;  %v2839_v33 = vmul.f32 0.6931472, %v1488_v37  ;;  %1525 = vlog2.f32 %v2711_v11  ;;  %v1516_v12 = vpop.eup %1515 }
 0x148   :  { %4375 = vst [vmem:[#allocation61_spill] sm:$0xff] %v2823_v8  ;;  %v2841_v16 = vmul.f32 0.6931472, %v1490_v35  ;;  %v2843_v51 = vmul.f32 0.6931472, %v1492_v42  ;;  %1527 = vlog2.f32 %v2715_v44 }
 0x149   :  { %v2845_v36 = vmul.f32 0.6931472, %v1494_v39  ;;  %v2848_v10 = vmul.f32 0.6931472, %v1496_v27  ;;  %v2850_v43 = vmul.f32 0.6931472, %v1498_v5  ;;  %v1518_v58 = vpop.eup %1517  ;;  %1529 = vlog2.f32 %v2719_v53 }
 0x14a   :  { %v2852_v18 = vmul.f32 0.6931472, %v1500_v54  ;;  %v2855_v37 = vmul.f32 0.6931472, %v1502_v48  ;;  %v2857_v32 = vmul.f32 0.6931472, %v1504_v22  ;;  %v1520_v42 = vpop.eup %1519  ;;  %1531 = vlog2.f32 %v2723_v17 }
 0x14b   :  { %v2859_v35 = vmul.f32 0.6931472, %v1506_v57  ;;  %v2862_v11 = vmul.f32 0.6931472, %v1508_v0  ;;  %v2864_v39 = vmul.f32 0.6931472, %v1510_v23  ;;  %v1522_v5 = vpop.eup %1521  ;;  %1533 = vlog2.f32 %v2727_v45 }
 0x14c   :  { %v2866_v27 = vmul.f32 0.6931472, %v1512_v31  ;;  %v2869_v44 = vmul.f32 0.6931472, %v1514_v30  ;;  %v2871_v54 = vmul.f32 0.6931472, %v1516_v12  ;;  %v1524_v22 = vpop.eup %1523  ;;  %1535 = vlog2.f32 %v2731_v14 }
 0x14d   :  { %v837_v48 = vperm.slane %v4323_v46, 0  ;;  %v2875_v53 = vmul.f32 0.6931472, %v1518_v58  ;;  %v4376_v23 = vrot.slane %v4323_v46, 1  ;;  %v4377_v0 = vrot.slane %v4323_v46, 2  ;;  %v1526_v31 = vpop.eup %1525 }
 0x14e   :  { %v2884_v30 = vmul.f32 0.6931472, %v1520_v42  ;;  %1537 = vlog2.f32 %v2735_v15  ;;  %v4378_v45 = vrot.slane %v4323_v46, 3  ;;  %v4379_v58 = vrot.slane %v4323_v46, 4  ;;  %v1528_v14 = vpop.eup %1527 }
 0x14f   :  { %v838_v57 = vperm.slane %v4376_v23, 0  ;;  %v2882_v17 = vperm.slane %v4377_v0, 0  ;;  %v2895_v40 = vmul.f32 0.6931472, %v1522_v5  ;;  %1539 = vlog2.f32 %v2739_v25  ;;  %v1530_v8 = vpop.eup %1529 }
 0x150   :  { %v2889_v12 = vperm.slane %v4378_v45, 0  ;;  %v2893_v21 = vperm.slane %v4379_v58, 0  ;;  %v4380_v23 = vrot.slane %v4323_v46, 5  ;;  %v4381_v42 = vrot.slane %v4323_v46, 6  ;;  %v1532_v25 = vpop.eup %1531 }
 0x151   :  { %v2906_v45 = vmul.f32 0.6931472, %v1524_v22  ;;  %1541 = vlog2.f32 %v2743_v52  ;;  %v4383_v58 = vrot.slane %v4323_v46, 7  ;;  %v2913_v5 = vmul.f32 %v837_v48, %v726_v13 }
 0x152   :  { %v2900_v0 = vperm.slane %v4380_v23, 0  ;;  %v2904_v15 = vperm.slane %v4381_v42, 0  ;;  %v2915_v9 = vmul.f32 0.6931472, %v1526_v31  ;;  %1543 = vlog2.f32 %v2747_v59 }
 0x153   :  { %v2911_v49 = vperm.slane %v4383_v58, 0  ;;  %v2918_v23 = vmul.f32 %v837_v48, %v728_v60  ;;  %v2920_v42 = vmul.f32 %v837_v48, %v730_v41  ;;  %v2922_v22 = vmul.f32 0.6931472, %v1528_v14 }
 0x154   :  { %4382 = vst [vmem:[#allocation62_spill] sm:$0xff] %v2904_v15  ;;  %v1534_v15 = vpop.eup %1533  ;;  %1545 = vlog2.f32 %v2751_v28  ;;  %v2925_v52 = vmul.f32 %v837_v48, %v732_v19  ;;  %v2927_v46 = vmul.f32 %v837_v48, %v734_v61  ;;  %v784_v58 = vmul.f32 0.6931472, %v1530_v8 }
 0x155   :  { %v1536_v13 = vpop.eup %1535  ;;  %1547 = vlog2.f32 %v2755_v38  ;;  %v2931_v31 = vmul.f32 %v837_v48, %v2831_v55  ;;  %v2934_v59 = vmul.f32 %v837_v48, %v2834_v1  ;;  %v786_v41 = vmul.f32 0.6931472, %v1532_v25 }
 0x156   :  { %v1538_v60 = vpop.eup %1537  ;;  %1549 = vlog2.f32 %v2759_v2  ;;  %v2938_v28 = vmul.f32 %v838_v57, %v2837_v6  ;;  %v2941_v61 = vmul.f32 %v838_v57, %v2839_v33  ;;  %v788_v8 = vmul.f32 0.6931472, %v1534_v15 }
 0x157   :  { %v1540_v19 = vpop.eup %1539  ;;  %1551 = vlog2.f32 %v2763_v63  ;;  %v2945_v38 = vmul.f32 %v838_v57, %v2841_v16  ;;  %v2948_v55 = vmul.f32 %v838_v57, %v2843_v51  ;;  %v790_v48 = vmul.f32 0.6931472, %v1536_v13 }
 0x158   :  { %v1542_v1 = vpop.eup %1541  ;;  %1553 = vlog2.f32 %v2767_v20  ;;  %v2952_v2 = vmul.f32 %v838_v57, %v2845_v36  ;;  %v2955_v6 = vmul.f32 %v838_v57, %v2848_v10  ;;  %v792_v14 = vmul.f32 0.6931472, %v1538_v60 }
 0x159   :  { %v1544_v33 = vpop.eup %1543  ;;  %1555 = vlog2.f32 %v2771_v29  ;;  %v2959_v63 = vmul.f32 %v838_v57, %v2850_v43  ;;  %v2963_v16 = vmul.f32 %v2882_v17, %v2852_v18  ;;  %v794_v15 = vmul.f32 0.6931472, %v1540_v19 }
 0x15a   :  { %v1546_v51 = vpop.eup %1545  ;;  %1557 = vlog2.f32 %v2775_v47  ;;  %v2968_v20 = vmul.f32 %v2882_v17, %v2855_v37  ;;  %v2972_v36 = vmul.f32 %v2882_v17, %v2857_v32  ;;  %v796_v10 = vmul.f32 0.6931472, %v1542_v1 }
 0x15b   :  { %v1548_v29 = vpop.eup %1547  ;;  %1559 = vlog2.f32 %v2779_v34  ;;  %v2977_v18 = vmul.f32 %v2882_v17, %v2859_v35  ;;  %v2981_v43 = vmul.f32 %v2882_v17, %v2862_v11  ;;  %v798_v57 = vmul.f32 0.6931472, %v1544_v33 }
 0x15c   :  { %v1550_v47 = vpop.eup %1549  ;;  %1561 = vlog2.f32 %v2783_v3  ;;  %v2986_v37 = vmul.f32 %v2882_v17, %v2864_v39  ;;  %v2990_v32 = vmul.f32 %v2882_v17, %v2866_v27  ;;  %v800_v25 = vmul.f32 0.6931472, %v1546_v51 }
 0x15d   :  { %v1552_v34 = vpop.eup %1551  ;;  %1563 = vlog2.f32 %v2787_v56  ;;  %v2995_v35 = vmul.f32 %v2889_v12, %v2869_v44  ;;  %v2999_v11 = vmul.f32 %v2889_v12, %v2871_v54  ;;  %v802_v13 = vmul.f32 0.6931472, %v1548_v29  ;;  %v4384_v29 = vld [vmem:[#allocation2_spill] sm:$0xff] }
 0x15e   :  { %v1554_v3 = vpop.eup %1553  ;;  %1565 = vlog2.f32 %v2791_v26  ;;  %v3004_v39 = vmul.f32 %v2889_v12, %v2875_v53  ;;  %v3008_v27 = vmul.f32 %v2889_v12, %v2884_v30  ;;  %v804_v17 = vmul.f32 0.6931472, %v1550_v47 }
 0x15f   :  { %v1556_v56 = vpop.eup %1555  ;;  %1567 = vlog2.f32 %v2795_v4  ;;  %v3013_v44 = vmul.f32 %v2889_v12, %v2895_v40  ;;  %v3017_v54 = vmul.f32 %v2889_v12, %v2906_v45  ;;  %v806_v60 = vmul.f32 0.6931472, %v1552_v34  ;;  %v4385_v34 = vld [vmem:[#allocation60_spill] sm:$0xff] }
 0x160   :  { %v1558_v26 = vpop.eup %1557  ;;  %1569 = vlog2.f32 %v2799_v7  ;;  %v3022_v53 = vmul.f32 %v2889_v12, %v2915_v9  ;;  %v3026_v30 = vmul.f32 %v2893_v21, %v2922_v22  ;;  %v808_v19 = vmul.f32 0.6931472, %v1554_v3 }
 0x161   :  { %v1560_v4 = vpop.eup %1559  ;;  %1571 = vlog2.f32 %v2803_v24  ;;  %v3030_v40 = vmul.f32 %v2893_v21, %v784_v58  ;;  %v3033_v45 = vmul.f32 %v2893_v21, %v786_v41  ;;  %v810_v7 = vmul.f32 0.6931472, %v1556_v56 }
 0x162   :  { %v1562_v1 = vpop.eup %1561  ;;  %1573 = vlog2.f32 %v2807_v50  ;;  %v3037_v9 = vmul.f32 %v2893_v21, %v788_v8  ;;  %v3040_v12 = vmul.f32 %v2893_v21, %v790_v48  ;;  %v812_v33 = vmul.f32 0.6931472, %v1558_v26 }
 0x163   :  { %v1564_v22 = vpop.eup %1563  ;;  %1575 = vlog2.f32 %v2811_v62  ;;  %v3044_v24 = vmul.f32 %v2893_v21, %v792_v14  ;;  %v3047_v58 = vmul.f32 %v2893_v21, %v794_v15  ;;  %v814_v51 = vmul.f32 0.6931472, %v1560_v4  ;;  %v4386_v15 = vld [vmem:[#allocation61_spill] sm:$0xff] }
 0x164   :  { %v1566_v41 = vpop.eup %1565  ;;  %1577 = vlog2.f32 %v4384_v29  ;;  %v3051_v50 = vmul.f32 %v2900_v0, %v796_v10  ;;  %v909_v8 = vmul.f32 1.442695, %v2913_v5  ;;  %v816_v47 = vmul.f32 0.6931472, %v1562_v1 }
 0x165   :  { %v1568_v48 = vpop.eup %1567  ;;  %1579 = vlog2.f32 %v4385_v34  ;;  %v3056_v62 = vmul.f32 %v2900_v0, %v798_v57  ;;  %v911_v14 = vmul.f32 1.442695, %v2918_v23  ;;  %v3061_v3 = vmul.f32 %v2900_v0, %v800_v25 }
 0x166   :  { %v1570_v21 = vpop.eup %1569  ;;  %1581 = vlog2.f32 %v4386_v15  ;;  %v3064_v10 = vmul.f32 %v2900_v0, %v802_v13  ;;  %v913_v5 = vmul.f32 1.442695, %v2920_v42  ;;  %v818_v26 = vmul.f32 0.6931472, %v1564_v22  ;;  %v4388_v15 = vld [vmem:[#allocation62_spill] sm:$0xff] }
 0x167   :  { %v1572_v56 = vpop.eup %1571  ;;  %v3068_v4 = vmul.f32 %v2900_v0, %v804_v17  ;;  %v3071_v57 = vmul.f32 %v2900_v0, %v806_v60  ;;  %v915_v23 = vmul.f32 1.442695, %v2925_v52  ;;  %v820_v29 = vmul.f32 0.6931472, %v1566_v41 }
 0x168   :  { %v1574_v1 = vpop.eup %1573  ;;  %v3075_v25 = vmul.f32 %v2900_v0, %v808_v19  ;;  %1583 = vpow2.f32 %v909_v8  ;;  %v917_v13 = vmul.f32 1.442695, %v2927_v46  ;;  %v822_v42 = vmul.f32 0.6931472, %v1568_v48 }
 0x169   :  { %4387 = vst [vmem:[#allocation2_spill] sm:$0xff] %v3071_v57  ;;  %v1576_v34 = vpop.eup %1575  ;;  %v3079_v22 = vmul.f32 %v4388_v15, %v810_v7  ;;  %1585 = vpow2.f32 %v911_v14  ;;  %v919_v17 = vmul.f32 1.442695, %v2931_v31  ;;  %v3083_v57 = vmul.f32 %v4388_v15, %v812_v33 }
 0x16a   :  { %v1578_v60 = vpop.eup %1577  ;;  %v3086_v52 = vmul.f32 %v4388_v15, %v814_v51  ;;  %1587 = vpow2.f32 %v913_v5  ;;  %v921_v0 = vmul.f32 1.442695, %v2934_v59  ;;  %v824_v46 = vmul.f32 0.6931472, %v1570_v21 }
 0x16b   :  { %v1580_v19 = vpop.eup %1579  ;;  %v3090_v41 = vmul.f32 %v4388_v15, %v816_v47  ;;  %1589 = vpow2.f32 %v915_v23  ;;  %v923_v7 = vmul.f32 1.442695, %v2938_v28  ;;  %v3094_v31 = vmul.f32 %v4388_v15, %v818_v26 }
 0x16c   :  { %v1582_v8 = vpop.eup %1581  ;;  %v3097_v33 = vmul.f32 %v4388_v15, %v820_v29  ;;  %1591 = vpow2.f32 %v917_v13  ;;  %v925_v51 = vmul.f32 1.442695, %v2941_v61  ;;  %v826_v48 = vmul.f32 0.6931472, %v1572_v56 }
 0x16d   :  { %v828_v59 = vmul.f32 0.6931472, %v1574_v1  ;;  %1593 = vpow2.f32 %v919_v17  ;;  %v927_v14 = vmul.f32 1.442695, %v2945_v38  ;;  %v830_v21 = vmul.f32 0.6931472, %v1576_v34 }
 0x16e   :  { %v3101_v47 = vpop.eup %1583  ;;  %v832_v5 = vmul.f32 0.6931472, %v1578_v60  ;;  %1595 = vpow2.f32 %v921_v0  ;;  %v929_v28 = vmul.f32 1.442695, %v2948_v55  ;;  %v834_v23 = vmul.f32 0.6931472, %v1580_v19 }
 0x16f   :  { %v3104_v26 = vpop.eup %1585  ;;  %v836_v29 = vmul.f32 0.6931472, %v1582_v8  ;;  %1597 = vpow2.f32 %v923_v7  ;;  %v931_v13 = vmul.f32 1.442695, %v2952_v2  ;;  %v3110_v56 = vmul.f32 %v4388_v15, %v822_v42 }
 0x170   :  { %v3107_v61 = vpop.eup %1587  ;;  %v3113_v38 = vmul.f32 %v2911_v49, %v824_v46  ;;  %1599 = vpow2.f32 %v925_v51  ;;  %v933_v1 = vmul.f32 1.442695, %v2955_v6  ;;  %v3119_v55 = vmul.f32 %v2911_v49, %v826_v48 }
 0x171   :  { %v3116_v34 = vpop.eup %1589  ;;  %v3122_v17 = vmul.f32 %v2911_v49, %v828_v59  ;;  %1601 = vpow2.f32 %v927_v14  ;;  %v935_v2 = vmul.f32 1.442695, %v2959_v63  ;;  %v3128_v42 = vmul.f32 %v2911_v49, %v830_v21 }
 0x172   :  { %v3125_v60 = vpop.eup %1591  ;;  %v3131_v15 = vmul.f32 %v2911_v49, %v832_v5  ;;  %1603 = vpow2.f32 %v929_v28  ;;  %v937_v6 = vmul.f32 1.442695, %v2963_v16  ;;  %v3137_v19 = vmul.f32 %v2911_v49, %v834_v23 }
 0x173   :  { %v3134_v0 = vpop.eup %1593  ;;  %v3140_v46 = vmul.f32 %v2911_v49, %v836_v29  ;;  %1605 = vpow2.f32 %v931_v13  ;;  %v939_v63 = vmul.f32 1.442695, %v2968_v20  ;;  %v941_v8 = vmul.f32 1.442695, %v2972_v36  ;;  %v4389_v20 = vld [vmem:[#allocation4_spill] sm:$0xff]  ;;  %v4393_v36 = vld [vmem:[#allocation5_spill] sm:$0xff] }
 0x174   :  { %v3143_v7 = vpop.eup %1595  ;;  %1607 = vpow2.f32 %v933_v1  ;;  %v943_v51 = vmul.f32 1.442695, %v2977_v18  ;;  %v945_v16 = vmul.f32 1.442695, %v2981_v43  ;;  %v947_v59 = vmul.f32 1.442695, %v2986_v37 }
 0x175   :  { %v3148_v48 = vpop.eup %1597  ;;  %1609 = vpow2.f32 %v935_v2  ;;  %v949_v49 = vmul.f32 1.442695, %v2990_v32  ;;  %v951_v14 = vmul.f32 1.442695, %v2995_v35  ;;  %v4390_v5 = vsub.f32 0.0, %v4389_v20  ;;  %v4398_v29 = vld [vmem:[#allocation6_spill] sm:$0xff] }
 0x176   :  { %v3153_v21 = vpop.eup %1599  ;;  %v4394_v18 = vsub.f32 0.0, %v4393_v36  ;;  %1611 = vpow2.f32 %v937_v6  ;;  %v953_v37 = vmul.f32 1.442695, %v2999_v11  ;;  %v955_v32 = vmul.f32 1.442695, %v3004_v39  ;;  %v4402_v2 = vld [vmem:[#allocation7_spill] sm:$0xff] }
 0x177   :  { %vm3157_vm10 = vcmp.gt.f32.partialorder %v4390_v5, 0.0  ;;  %v3170_v35 = vmul.f32 1.442695, %v3008_v27  ;;  %v3172_v23 = vpop.eup %1601  ;;  %v4399_v13 = vsub.f32 0.0, %v4398_v29  ;;  %v4403_v20 = vsub.f32 0.0, %v4402_v2  ;;  %v4406_v11 = vld [vmem:[#allocation8_spill] sm:$0xff] }
 0x178   :  { %vm3163_vm11 = vcmp.gt.f32.partialorder %v4394_v18, 0.0  ;;  %4397 = vst [vmem:[#allocation60_spill] sm:$0xff] %v3172_v23  ;;  %v4407_v6 = vsub.f32 0.0, %v4406_v11  ;;  %1613 = vpow2.f32 %v939_v63  ;;  %v3193_v27 = vmul.f32 1.442695, %v3013_v44  ;;  %v3201_v29 = vpop.eup %1603  ;;  %v4415_v11 = vld [vmem:[#allocation10_spill] sm:$0xff] }
 0x179   :  { %vm3176_vm12 = vcmp.gt.f32.partialorder %v4399_v13, 0.0  ;;  %vm3182_vm13 = vcmp.gt.f32.partialorder %v4403_v20, 0.0  ;;  %v3196_v36 = vmul.f32 1.442695, %v3017_v54  ;;  %v3199_v18 = vmul.f32 1.442695, %v3022_v53 }
 0x17a   :  { %vm3188_vm14 = vcmp.gt.f32.partialorder %v4407_v6, 0.0  ;;  %4410 = vst [vmem:[#allocation61_spill] sm:$0xff] %v3201_v29  ;;  %v4411_v13 = vld [vmem:[#allocation9_spill] sm:$0xff]  ;;  %v4416_v6 = vsub.f32 0.0, %v4415_v11  ;;  %v4419_v44 = vld [vmem:[#allocation11_spill] sm:$0xff]  ;;  %1615 = vpow2.f32 %v941_v8  ;;  %v3230_v11 = vpop.eup %1605  ;;  %v4505_v5 = vld [vmem:[#allocation26_spill] sm:$0xff] }
 0x17b   :  { %v4412_v2 = vsub.f32 0.0, %v4411_v13  ;;  %v4420_v54 = vsub.f32 0.0, %v4419_v44  ;;  %v3222_v53 = vmul.f32 1.442695, %v3026_v30  ;;  %v3225_v13 = vmul.f32 1.442695, %v3030_v40 }
 0x17c   :  { %vm3211_vm2 = vcmp.gt.f32.partialorder %v4416_v6, 0.0  ;;  %4424 = vst [vmem:[#allocation4_spill] sm:$0xff] %v3230_v11  ;;  %v4425_v6 = vld [vmem:[#allocation12_spill] sm:$0xff]  ;;  %1617 = vpow2.f32 %v943_v51  ;;  %v3239_v8 = vmul.f32 1.442695, %v3037_v9  ;;  %v4500_v43 = vld [vmem:[#allocation25_spill] sm:$0xff] }
 0x17d   :  { %vm3205_vm15 = vcmp.gt.f32.partialorder %v4412_v2, 0.0  ;;  %vm3217_vm3 = vcmp.gt.f32.partialorder %v4420_v54, 0.0  ;;  %v3228_v2 = vmul.f32 1.442695, %v3033_v45  ;;  %v4426_v29 = vsub.f32 0.0, %v4425_v6  ;;  %v3247_v45 = vpop.eup %1607  ;;  %v4431_v54 = vld [vmem:[#allocation13_spill] sm:$0xff] }
 0x17e   :  { %v3242_v30 = vmul.f32 1.442695, %v3040_v12  ;;  %v3245_v40 = vmul.f32 1.442695, %v3044_v24  ;;  %v4432_v11 = vsub.f32 0.0, %v4431_v54  ;;  %1619 = vpow2.f32 %v945_v16  ;;  %v4441_v54 = vld [vmem:[#allocation15_spill] sm:$0xff] }
 0x17f   :  { %4423 = vst [vmem:[#allocation62_spill] sm:$0xff] %v3228_v2  ;;  %vm3234_vm4 = vcmp.gt.f32.partialorder %v4426_v29, 0.0  ;;  %v4435_v29 = vld [vmem:[#allocation14_spill] sm:$0xff]  ;;  %v3262_v9 = vmul.f32 1.442695, %v3047_v58  ;;  %1621 = vpow2.f32 %v947_v59  ;;  %v4457_v59 = vmov 0 }
 0x180   :  { %4429 = vst [vmem:[#allocation5_spill] sm:$0xff] %v3242_v30  ;;  %vm3251_vm5 = vcmp.gt.f32.partialorder %v4432_v11, 0.0  ;;  %v4436_v2 = vsub.f32 0.0, %v4435_v29  ;;  %v3265_v12 = vmul.f32 1.442695, %v3051_v50  ;;  %v3270_v11 = vpop.eup %1609  ;;  %1623 = vpow2.f32 %v949_v49  ;;  %v4526_v51 = vld [vmem:[#allocation29_spill] sm:$0xff] }
 0x181   :  { %4430 = vst [vmem:[#allocation6_spill] sm:$0xff] %v3245_v40  ;;  %v3268_v24 = vmul.f32 1.442695, %v3056_v62  ;;  %v4442_v40 = vsub.f32 0.0, %v4441_v54  ;;  %v3285_v58 = vmul.f32 1.442695, %v3061_v3  ;;  %1625 = vpow2.f32 %v951_v14 }
 0x182   :  { %vm3257_vm6 = vcmp.gt.f32.partialorder %v4436_v2, 0.0  ;;  %4439 = vst [vmem:[#allocation7_spill] sm:$0xff] %v3265_v12  ;;  %v4445_v2 = vld [vmem:[#allocation16_spill] sm:$0xff]  ;;  %v3288_v50 = vmul.f32 1.442695, %v3064_v10  ;;  %v4451_v54 = vld [vmem:[#allocation17_spill] sm:$0xff]  ;;  %1627 = vpow2.f32 %v953_v37 }
 0x183   :  { %4440 = vst [vmem:[#allocation8_spill] sm:$0xff] %v3268_v24  ;;  %vm3274_vm7 = vcmp.gt.f32.partialorder %v4442_v40, 0.0  ;;  %v4446_v30 = vsub.f32 0.0, %v4445_v2  ;;  %v3291_v62 = vmul.f32 1.442695, %v3068_v4  ;;  %v3293_v40 = vpop.eup %1611  ;;  %v4452_v24 = vsub.f32 0.0, %v4451_v54 }
 0x184   :  { %4449 = vst [vmem:[#allocation9_spill] sm:$0xff] %v3288_v50  ;;  %v4453_v2 = vmov 0  ;;  %v4459_v3 = vld [vmem:[#allocation2_spill] sm:$0xff]  ;;  %v3311_v4 = vmul.f32 1.442695, %v3075_v25  ;;  %v4462_v54 = vld [vmem:[#allocation19_spill] sm:$0xff]  ;;  %1629 = vpow2.f32 %v955_v32 }
 0x185   :  { %vm3280_vm8 = vcmp.gt.f32.partialorder %v4446_v30, 0.0  ;;  %4450 = vst [vmem:[#allocation10_spill] sm:$0xff] %v3291_v62  ;;  %vm3297_vm9 = vcmp.gt.f32.partialorder %v4452_v24, 0.0  ;;  %v4455_v30 = vld [vmem:[#allocation18_spill] sm:$0xff]  ;;  %v3308_v10 = vmul.f32 1.442695, %v4459_v3  ;;  %v3316_v24 = vpop.eup %1613  ;;  %1631 = vpow2.f32 %v3170_v35 }
 0x186   :  { %v4454_v2 = vsel %vm3297_vm9, 4294967295, %v4453_v2  ;;  %v4456_v12 = vsub.f32 0.0, %v4455_v30  ;;  %4460 = vst [vmem:[#allocation11_spill] sm:$0xff] %v3311_v4  ;;  %v3314_v62 = vmul.f32 1.442695, %v3079_v22  ;;  %v4463_v50 = vsub.f32 0.0, %v4462_v54  ;;  %v3333_v22 = vpop.eup %1615 }
 0x187   :  { %v4464_v30 = vmov 0  ;;  %v3325_v49 = vmul.f32 1.442695, %v3083_v57  ;;  %v3331_v25 = vmul.f32 1.442695, %v3090_v41  ;;  %v4467_v3 = vld [vmem:[#allocation20_spill] sm:$0xff]  ;;  %1633 = vpow2.f32 %v3193_v27 }
 0x188   :  { %vm3303_vm0 = vcmp.gt.f32.partialorder %v4456_v12, 0.0  ;;  %4461 = vst [vmem:[#allocation12_spill] sm:$0xff] %v3314_v62  ;;  %vm3320_vm1 = vcmp.gt.f32.partialorder %v4463_v50, 0.0  ;;  %v3328_v12 = vmul.f32 1.442695, %v3086_v52  ;;  %v4468_v62 = vsub.f32 0.0, %v4467_v3 }
 0x189   :  { %v4458_v59 = vsel %vm3303_vm0, 4294967295, %v4457_v59  ;;  %v4465_v30 = vsel %vm3320_vm1, 4294967295, %v4464_v30  ;;  %4466 = vst [vmem:[#allocation13_spill] sm:$0xff] %v3331_v25  ;;  %v4469_v54 = vmov 0  ;;  %v4471_v50 = vld [vmem:[#allocation21_spill] sm:$0xff]  ;;  %v4473_v14 = vmov 0 }
 0x18a   :  { %vm3337_vm0 = vcmp.gt.f32.partialorder %v4468_v62, 0.0  ;;  %v4472_v4 = vsub.f32 0.0, %v4471_v50  ;;  %v3348_v57 = vmul.f32 1.442695, %v3094_v31  ;;  %v3351_v52 = vmul.f32 1.442695, %v3097_v33  ;;  %v3356_v62 = vpop.eup %1617 }
 0x18b   :  { %v4470_v54 = vsel %vm3337_vm0, 4294967295, %v4469_v54  ;;  %v3354_v41 = vmul.f32 1.442695, %v3110_v56  ;;  %v4475_v3 = vld [vmem:[#allocation22_spill] sm:$0xff]  ;;  %v4477_v50 = vmov 0  ;;  %v3373_v56 = vpop.eup %1619  ;;  %1635 = vpow2.f32 %v3196_v36 }
 0x18c   :  { %vm3343_vm1 = vcmp.gt.f32.partialorder %v4472_v4, 0.0  ;;  %v4476_v25 = vsub.f32 0.0, %v4475_v3  ;;  %v3365_v37 = vmul.f32 1.442695, %v3113_v38  ;;  %v3368_v31 = vmul.f32 1.442695, %v3119_v55  ;;  %v3385_v38 = vpop.eup %1621 }
 0x18d   :  { %v4474_v14 = vsel %vm3343_vm1, 4294967295, %v4473_v14  ;;  %v3371_v33 = vmul.f32 1.442695, %v3122_v17  ;;  %4482 = vst [vmem:[#allocation17_spill] sm:$0xff] %v3373_v56  ;;  %v3377_v4 = vmul.f32 1.442695, %v3128_v42  ;;  %1637 = vpow2.f32 %v3199_v18 }
 0x18e   :  { %vm3360_vm0 = vcmp.gt.f32.partialorder %v4476_v25, 0.0  ;;  %4479 = vst [vmem:[#allocation14_spill] sm:$0xff] %v3365_v37  ;;  %v3380_v25 = vmul.f32 1.442695, %v3131_v15  ;;  %v3383_v32 = vmul.f32 1.442695, %v3137_v19  ;;  %v3403_v19 = vpop.eup %1623  ;;  %1639 = vpow2.f32 %v3222_v53 }
 0x18f   :  { %v4478_v50 = vsel %vm3360_vm0, 4294967295, %v4477_v50  ;;  %4480 = vst [vmem:[#allocation15_spill] sm:$0xff] %v3368_v31  ;;  %v4487_v55 = vld [vmem:[#allocation23_spill] sm:$0xff]  ;;  %v4489_v17 = vmov 0  ;;  %v3395_v35 = vmul.f32 1.442695, %v3140_v46  ;;  %v3421_v28 = vpop.eup %1625  ;;  %1641 = vpow2.f32 %v3225_v13 }
 0x190   :  { %4481 = vst [vmem:[#allocation16_spill] sm:$0xff] %v3371_v33  ;;  %v4488_v3 = vsub.f32 0.0, %v4487_v55  ;;  %v1021_v42 = vsel %vm3157_vm10, %v3101_v47, 0.0  ;;  %v1022_v15 = vsel %vm3163_vm11, %v3104_v26, 0.0  ;;  %v4494_v55 = vld [vmem:[#allocation24_spill] sm:$0xff]  ;;  %v1023_v46 = vsel %vm3176_vm12, %v3107_v61, 0.0  ;;  %v3439_v1 = vpop.eup %1627 }
 0x191   :  { %4483 = vst [vmem:[#allocation18_spill] sm:$0xff] %v3377_v4  ;;  %v1024_v47 = vsel %vm3182_vm13, %v3116_v34, 0.0  ;;  %v1025_v26 = vsel %vm3188_vm14, %v3125_v60, 0.0  ;;  %v4501_v27 = vsub.f32 0.0, %v4500_v43  ;;  %v1026_v61 = vsel %vm3205_vm15, %v3134_v0, 0.0  ;;  %v3453_v23 = vpop.eup %1629  ;;  %v4513_v43 = vld [vmem:[#allocation61_spill] sm:$0xff] }
 0x192   :  { %4484 = vst [vmem:[#allocation2_spill] sm:$0xff] %v3380_v25  ;;  %vm3389_vm0 = vcmp.gt.f32.partialorder %v4488_v3, 0.0  ;;  %v4495_v3 = vsub.f32 0.0, %v4494_v55  ;;  %v4502_v55 = vmov 0  ;;  %v1028_v60 = vsel %vm3217_vm3, %v3148_v48, 0.0  ;;  %v4512_v48 = vld [vmem:[#allocation60_spill] sm:$0xff] }
 0x193   :  { %4485 = vst [vmem:[#allocation19_spill] sm:$0xff] %v3383_v32  ;;  %v4490_v17 = vsel %vm3389_vm0, 4294967295, %v4489_v17  ;;  %v4496_v32 = vmov 0  ;;  %vm3425_vm10 = vcmp.gt.f32.partialorder %v4501_v27, 0.0  ;;  %v4506_v39 = vsub.f32 0.0, %v4505_v5  ;;  %v3462_v5 = vpop.eup %1631  ;;  %v4519_v13 = vld [vmem:[#allocation4_spill] sm:$0xff] }
 0x194   :  { %4486 = vst [vmem:[#allocation20_spill] sm:$0xff] %v3385_v38  ;;  %vm3407_vm1 = vcmp.gt.f32.partialorder %v4495_v3, 0.0  ;;  %v4503_v55 = vsel %vm3425_vm10, 4294967295, %v4502_v55  ;;  %v4507_v36 = vmov 0  ;;  %v1029_v0 = vsel %vm3234_vm4, %v3153_v21, 0.0  ;;  %v4514_v21 = vld [vmem:[#allocation27_spill] sm:$0xff] }
 0x195   :  { %4491 = vst [vmem:[#allocation21_spill] sm:$0xff] %v4490_v17  ;;  %v4497_v32 = vsel %vm3407_vm1, 4294967295, %v4496_v32  ;;  %vm3443_vm11 = vcmp.gt.f32.partialorder %v4506_v39, 0.0  ;;  %vm4510_vm12 = vcmask 64512   ;;  %v1030_v3 = vsel %vm3251_vm5, %v4512_v48, 0.0  ;;  %v4580_v17 = vld [vmem:[#allocation39_spill] sm:$0xff] }
 0x196   :  { %4492 = vst [vmem:[#allocation22_spill] sm:$0xff] %v3395_v35  ;;  %v4508_v36 = vsel %vm3443_vm11, 4294967295, %v4507_v36  ;;  %v1077_v18 = vsel %vm4510_vm12, %v1021_v42, 0.0  ;;  %vm4511_vm13 = vmmov %vm4510_vm12  ;;  %v1031_v53 = vsel %vm3257_vm6, %v4513_v43, 0.0  ;;  %v4515_v44 = vsub.f32 0.0, %v4514_v21 }
 0x197   :  { %4493 = vst [vmem:[#allocation23_spill] sm:$0xff] %v3403_v19  ;;  %v1078_v20 = vsel %vm4511_vm13, %v1022_v15, 0.0  ;;  %v4518_v15 = vld [vmem:[#allocation62_spill] sm:$0xff]  ;;  %vm4520_vm15 = vmmov %vm4510_vm12  ;;  %v4523_v43 = vmov 0  ;;  %vm4525_vm4 = vnez %v4458_v59  ;;  %v4527_v6 = vsub.f32 0.0, %v4526_v51 }
 0x198   :  { %4498 = vst [vmem:[#allocation24_spill] sm:$0xff] %v4497_v32  ;;  %v1079_v27 = vadd.f32 %v1078_v20, %v1077_v18  ;;  %vm3466_vm14 = vcmp.gt.f32.partialorder %v4515_v44, 0.0  ;;  %1643 = vpow2.f32 %v4518_v15  ;;  %v1080_v39 = vsel %vm4520_vm15, %v1023_v46, 0.0  ;;  %v3478_v18 = vpop.eup %1633  ;;  %v4521_v20 = vld [vmem:[#allocation28_spill] sm:$0xff]  ;;  %vm4532_vm13 = vmmov %vm4510_vm12 }
 0x199   :  { %4499 = vst [vmem:[#allocation63_spill] sm:$0xff] %v3421_v28  ;;  %v4522_v48 = vsub.f32 0.0, %v4521_v20  ;;  %1645 = vpow2.f32 %v3239_v8  ;;  %v1035_v44 = vsel %vm4525_vm4, %v3293_v40, 0.0  ;;  %v3493_v46 = vpop.eup %1635  ;;  %vm3497_vm5 = vcmp.gt.f32.partialorder %v4527_v6, 0.0  ;;  %v4537_v6 = vld [vmem:[#allocation31_spill] sm:$0xff] }
 0x19a   :  { %4504 = vst [vmem:[#allocation25_spill] sm:$0xff] %v3439_v1  ;;  %v1081_v15 = vadd.f32 %v1080_v39, %v1079_v27  ;;  %v4528_v20 = vmov 0  ;;  %vm4531_vm6 = vnez %v4465_v30  ;;  %v1082_v21 = vsel %vm4510_vm12, %v1024_v47, 0.0  ;;  %v3507_v40 = vpop.eup %1637  ;;  %v4533_v27 = vld [vmem:[#allocation30_spill] sm:$0xff]  ;;  %v4541_v30 = vld [vmem:[#allocation32_spill] sm:$0xff] }
 0x19b   :  { %4509 = vst [vmem:[#allocation26_spill] sm:$0xff] %v4508_v36  ;;  %vm3482_vm3 = vcmp.gt.f32.partialorder %v4522_v48, 0.0  ;;  %v4529_v20 = vsel %vm3497_vm5, 4294967295, %v4528_v20  ;;  %v4530_v48 = vld [vmem:[#allocation5_spill] sm:$0xff]  ;;  %v1036_v8 = vsel %vm4531_vm6, %v3316_v24, 0.0  ;;  %v1097_v59 = vsel %vm4532_vm13, %v1028_v60, 0.0 }
 0x19c   :  { %v4524_v43 = vsel %vm3482_vm3, 4294967295, %v4523_v43  ;;  %1647 = vpow2.f32 %v4530_v48  ;;  %v4534_v39 = vsub.f32 0.0, %v4533_v27  ;;  %v4535_v51 = vmov 0  ;;  %v4545_v60 = vld [vmem:[#allocation6_spill] sm:$0xff]  ;;  %v4551_v27 = vld [vmem:[#allocation33_spill] sm:$0xff] }
 0x19d   :  { %v4538_v34 = vsub.f32 0.0, %v4537_v6  ;;  %v4539_v48 = vmov 0  ;;  %v4542_v24 = vsub.f32 0.0, %v4541_v30  ;;  %v4543_v47 = vmov 0  ;;  %v3534_v6 = vpop.eup %1639  ;;  %v4556_v30 = vld [vmem:[#allocation34_spill] sm:$0xff] }
 0x19e   :  { %vm3511_vm15 = vcmp.gt.f32.partialorder %v4534_v39, 0.0  ;;  %1649 = vpow2.f32 %v4545_v60  ;;  %vm4546_vm12 = vnez %v4470_v54  ;;  %v3542_v35 = vpop.eup %1641  ;;  %v4552_v25 = vsub.f32 0.0, %v4551_v27  ;;  %v4564_v27 = vld [vmem:[#allocation36_spill] sm:$0xff] }
 0x19f   :  { %v4536_v51 = vsel %vm3511_vm15, 4294967295, %v4535_v51  ;;  %vm3517_vm4 = vcmp.gt.f32.partialorder %v4538_v34, 0.0  ;;  %vm3523_vm6 = vcmp.gt.f32.partialorder %v4542_v24, 0.0  ;;  %v1083_v34 = vadd.f32 %v1082_v21, %v1081_v15  ;;  %v4555_v21 = vld [vmem:[#allocation7_spill] sm:$0xff]  ;;  %v3551_v39 = vpop.eup %1643 }
 0x1a0   :  { %v4540_v48 = vsel %vm3517_vm4, 4294967295, %v4539_v48  ;;  %v4544_v47 = vsel %vm3523_vm6, 4294967295, %v4543_v47  ;;  %1651 = vpow2.f32 %v3262_v9  ;;  %vm4549_vm6 = vcmask 64512  }
 0x1a1   :  { %v1084_v24 = vsel %vm4549_vm6, %v1025_v26, 0.0  ;;  %vm4550_vm4 = vmmov %vm4549_vm6  ;;  %vm3546_vm15 = vcmp.gt.f32.partialorder %v4552_v25, 0.0  ;;  %1653 = vpow2.f32 %v4555_v21  ;;  %v4557_v33 = vsub.f32 0.0, %v4556_v30 }
 0x1a2   :  { %v1098_v60 = vsel %vm4550_vm4, %v1029_v0, 0.0  ;;  %v1085_v15 = vadd.f32 %v1084_v24, %v1083_v34  ;;  %v4558_v26 = vmov 0  ;;  %v4560_v0 = vld [vmem:[#allocation35_spill] sm:$0xff]  ;;  %v4562_v25 = vmov 0 }
 0x1a3   :  { %v1099_v9 = vadd.f32 %v1098_v60, %v1097_v59  ;;  %vm3555_vm6 = vcmp.gt.f32.partialorder %v4557_v33, 0.0  ;;  %v4561_v31 = vsub.f32 0.0, %v4560_v0  ;;  %v4565_v37 = vsub.f32 0.0, %v4564_v27  ;;  %v4568_v59 = vld [vmem:[#allocation8_spill] sm:$0xff]  ;;  %v4571_v60 = vld [vmem:[#allocation37_spill] sm:$0xff] }
 0x1a4   :  { %v4559_v26 = vsel %vm3555_vm6, 4294967295, %v4558_v26  ;;  %v4566_v34 = vmov 0  ;;  %1655 = vpow2.f32 %v4568_v59  ;;  %vm4569_vm13 = vcmask 64512  }
 0x1a5   :  { %vm3561_vm4 = vcmp.gt.f32.partialorder %v4561_v31, 0.0  ;;  %vm3567_vm9 = vcmp.gt.f32.partialorder %v4565_v37, 0.0  ;;  %v1086_v30 = vsel %vm4569_vm13, %v1026_v61, 0.0  ;;  %vm4570_vm6 = vmmov %vm4569_vm13  ;;  %v3577_v31 = vpop.eup %1645  ;;  %v4572_v21 = vsub.f32 0.0, %v4571_v60  ;;  %v4575_v37 = vld [vmem:[#allocation38_spill] sm:$0xff] }
 0x1a6   :  { %v4563_v25 = vsel %vm3561_vm4, 4294967295, %v4562_v25  ;;  %v4567_v34 = vsel %vm3567_vm9, 4294967295, %v4566_v34  ;;  %v1100_v24 = vsel %vm4570_vm6, %v1030_v3, 0.0  ;;  %v4573_v0 = vmov 0  ;;  %v3601_v38 = vpop.eup %1647 }
 0x1a7   :  { %vm3581_vm4 = vcmp.gt.f32.partialorder %v4572_v21, 0.0  ;;  %v4576_v27 = vsub.f32 0.0, %v4575_v37  ;;  %v4577_v59 = vmov 0  ;;  %v4581_v33 = vsub.f32 0.0, %v4580_v17  ;;  %v4584_v37 = vld [vmem:[#allocation40_spill] sm:$0xff]  ;;  %v4588_v17 = vld [vmem:[#allocation9_spill] sm:$0xff] }
 0x1a8   :  { %v4574_v0 = vsel %vm3581_vm4, 4294967295, %v4573_v0  ;;  %v4582_v61 = vmov 0  ;;  %1657 = vpow2.f32 %v3285_v58  ;;  %v1087_v60 = vadd.f32 %v1086_v30, %v1085_v15  ;;  %v3619_v30 = vpop.eup %1649 }
 0x1a9   :  { %vm3587_vm9 = vcmp.gt.f32.partialorder %v4576_v27, 0.0  ;;  %vm3593_vm0 = vcmp.gt.f32.partialorder %v4581_v33, 0.0  ;;  %v1101_v21 = vadd.f32 %v1100_v24, %v1099_v9  ;;  %v4585_v27 = vsub.f32 0.0, %v4584_v37  ;;  %v4592_v24 = vld [vmem:[#allocation41_spill] sm:$0xff]  ;;  %v3631_v58 = vpop.eup %1651 }
 0x1aa   :  { %v4578_v59 = vsel %vm3587_vm9, 4294967295, %v4577_v59  ;;  %v4583_v61 = vsel %vm3593_vm0, 4294967295, %v4582_v61  ;;  %v4586_v56 = vmov 0  ;;  %1659 = vpow2.f32 %v4588_v17  ;;  %v4596_v17 = vld [vmem:[#allocation10_spill] sm:$0xff]  ;;  %4597 = vst [vmem:[#allocation61_spill] sm:$0xff] %v3631_v58 }
 0x1ab   :  { %4579 = vst [vmem:[#allocation60_spill] sm:$0xff] %v4578_v59  ;;  %vm3605_vm13 = vcmp.gt.f32.partialorder %v4585_v27, 0.0  ;;  %v4589_v33 = vsel %vm3211_vm2, %v3143_v7, 0.0  ;;  %vm4590_vm6 = vcmask 58368   ;;  %vm4591_vm1 = vcmask 64512   ;;  %v4712_v58 = vld [vmem:[#allocation18_spill] sm:$0xff] }
 0x1ac   :  { %v4587_v56 = vsel %vm3605_vm13, 4294967295, %v4586_v56  ;;  %v1089_v15 = vsel %vm4590_vm6, %v4589_v33, 0.0  ;;  %v1102_v9 = vsel %vm4591_vm1, %v1031_v53, 0.0  ;;  %v4593_v37 = vsub.f32 0.0, %v4592_v24  ;;  %v4598_v33 = vld [vmem:[#allocation42_spill] sm:$0xff]  ;;  %v4602_v24 = vld [vmem:[#allocation43_spill] sm:$0xff] }
 0x1ad   :  { %v4594_v27 = vmov 0  ;;  %1661 = vpow2.f32 %v4596_v17  ;;  %v1090_v3 = vadd.f32 %v1089_v15, %v1087_v60  ;;  %v1103_v7 = vadd.f32 %v1102_v9, %v1101_v21  ;;  %v4607_v17 = vld [vmem:[#allocation44_spill] sm:$0xff] }
 0x1ae   :  { %vm3623_vm0 = vcmp.gt.f32.partialorder %v4593_v37, 0.0  ;;  %v4599_v53 = vsub.f32 0.0, %v4598_v33  ;;  %v4600_v19 = vmov 0  ;;  %v4603_v37 = vsub.f32 0.0, %v4602_v24  ;;  %v3659_v33 = vpop.eup %1653 }
 0x1af   :  { %v4595_v27 = vsel %vm3623_vm0, 4294967295, %v4594_v27  ;;  %v4604_v32 = vmov 0  ;;  %v4608_v28 = vsub.f32 0.0, %v4607_v17  ;;  %v4609_v63 = vmov 0  ;;  %v3683_v1 = vpop.eup %1655 }
 0x1b0   :  { %vm3635_vm1 = vcmp.gt.f32.partialorder %v4599_v53, 0.0  ;;  %vm3641_vm2 = vcmp.gt.f32.partialorder %v4603_v37, 0.0  ;;  %1663 = vpow2.f32 %v3308_v10  ;;  %v4612_v60 = vsel %vm3274_vm7, %v4519_v13, 0.0  ;;  %v4616_v53 = vld [vmem:[#allocation45_spill] sm:$0xff]  ;;  %v4621_v37 = vld [vmem:[#allocation46_spill] sm:$0xff]  ;;  %v4625_v13 = vld [vmem:[#allocation47_spill] sm:$0xff]  ;;  %v3694_v36 = vpop.eup %1657 }
 0x1b1   :  { %v4601_v19 = vsel %vm3635_vm1, 4294967295, %v4600_v19  ;;  %v4605_v32 = vsel %vm3641_vm2, 4294967295, %v4604_v32  ;;  %vm3647_vm6 = vcmp.gt.f32.partialorder %v4608_v28, 0.0  ;;  %vm4613_vm11 = vcmask 64512  }
 0x1b2   :  { %4606 = vst [vmem:[#allocation27_spill] sm:$0xff] %v4605_v32  ;;  %v4610_v63 = vsel %vm3647_vm6, 4294967295, %v4609_v63  ;;  %v1104_v21 = vsel %vm4613_vm11, %v4612_v60, 0.0  ;;  %vm4614_vm10 = vmmov %vm4613_vm11  ;;  %v4617_v24 = vsub.f32 0.0, %v4616_v53  ;;  %v4618_v28 = vmov 0 }
 0x1b3   :  { %4611 = vst [vmem:[#allocation62_spill] sm:$0xff] %v4610_v63  ;;  %v1116_v15 = vsel %vm4614_vm10, %v1035_v44, 0.0  ;;  %vm4615_vm1 = vmmov %vm4614_vm10  ;;  %v4622_v10 = vsub.f32 0.0, %v4621_v37  ;;  %v4626_v17 = vsub.f32 0.0, %v4625_v13  ;;  %v4627_v44 = vmov 0  ;;  %v4630_v37 = vld [vmem:[#allocation12_spill] sm:$0xff] }
 0x1b4   :  { %v1117_v9 = vsel %vm4615_vm1, %v1036_v8, 0.0  ;;  %vm3663_vm2 = vcmp.gt.f32.partialorder %v4617_v24, 0.0  ;;  %v4629_v8 = vld [vmem:[#allocation11_spill] sm:$0xff]  ;;  %v1091_v53 = vrot.slane %v1090_v3, 4  ;;  %v1105_v24 = vadd.f32 %v1104_v21, %v1103_v7  ;;  %vm4632_vm10 = vmmov %vm4615_vm1 }
 0x1b5   :  { %v4619_v28 = vsel %vm3663_vm2, 4294967295, %v4618_v28  ;;  %vm3669_vm6 = vcmp.gt.f32.partialorder %v4622_v10, 0.0  ;;  %vm3675_vm7 = vcmp.gt.f32.partialorder %v4626_v17, 0.0  ;;  %1665 = vpow2.f32 %v4629_v8  ;;  %vm4634_vm11 = vmmov %vm4615_vm1  ;;  %v3705_v10 = vpop.eup %1659 }
 0x1b6   :  { %4620 = vst [vmem:[#allocation4_spill] sm:$0xff] %v4619_v28  ;;  %v4628_v44 = vsel %vm3675_vm7, 4294967295, %v4627_v44  ;;  %1667 = vpow2.f32 %v4630_v37  ;;  %v4631_v13 = vsel %vm3280_vm8, %v3247_v45, 0.0  ;;  %v1118_v8 = vadd.f32 %v1117_v9, %v1116_v15  ;;  %v4635_v45 = vld [vmem:[#allocation48_spill] sm:$0xff]  ;;  %v4702_v28 = vld [vmem:[#allocation21_spill] sm:$0xff]  ;;  %v4720_v15 = vld [vmem:[#allocation23_spill] sm:$0xff] }
 0x1b7   :  { %v1106_v17 = vsel %vm4632_vm10, %v4631_v13, 0.0  ;;  %1669 = vpow2.f32 %v3325_v49  ;;  %v4633_v37 = vsel %vm4546_vm12, %v3333_v22, 0.0  ;;  %v4636_v13 = vsub.f32 0.0, %v4635_v45  ;;  %v4639_v49 = vld [vmem:[#allocation49_spill] sm:$0xff]  ;;  %v4647_v45 = vld [vmem:[#allocation50_spill] sm:$0xff] }
 0x1b8   :  { %v1107_v21 = vadd.f32 %v1106_v17, %v1105_v24  ;;  %v1119_v16 = vsel %vm4634_vm11, %v4633_v37, 0.0  ;;  %v4640_v9 = vsub.f32 0.0, %v4639_v49  ;;  %v3728_v37 = vpop.eup %1661  ;;  %v4649_v49 = vmov 0 }
 0x1b9   :  { %vm3709_vm8 = vcmp.gt.f32.partialorder %v4636_v13, 0.0  ;;  %v1120_v17 = vadd.f32 %v1119_v16, %v1118_v8  ;;  %4646 = vst [vmem:[#allocation28_spill] sm:$0xff] %v3728_v37  ;;  %v4648_v13 = vsub.f32 0.0, %v4647_v45  ;;  %1671 = vpow2.f32 %v3328_v12  ;;  %v3747_v45 = vpop.eup %1663  ;;  %v4662_v12 = vld [vmem:[#allocation13_spill] sm:$0xff]  ;;  %v4707_v37 = vld [vmem:[#allocation26_spill] sm:$0xff] }
 0x1ba   :  { %vm3715_vm1 = vcmp.gt.f32.partialorder %v4640_v9, 0.0  ;;  %v1092_v9 = vadd.f32 %v1091_v53, %v1090_v3  ;;  %vm4651_vm10 = vnez %v4454_v2  ;;  %vm4653_vm12 = vcmask 58368   ;;  %4657 = vst [vmem:[#allocation29_spill] sm:$0xff] %v3747_v45  ;;  %v4697_v45 = vld [vmem:[#allocation56_spill] sm:$0xff] }
 0x1bb   :  { %vm3732_vm5 = vcmp.gt.f32.partialorder %v4648_v13, 0.0  ;;  %v4652_v54 = vsel %vm4651_vm10, %v3270_v11, 0.0  ;;  %vm4654_vm11 = vnez %v4474_v14  ;;  %vm4656_vm3 = vcmask 64512   ;;  %v4658_v13 = vld [vmem:[#allocation51_spill] sm:$0xff]  ;;  %v3759_v3 = vpop.eup %1665 }
 0x1bc   :  { %v4650_v49 = vsel %vm3732_vm5, 4294967295, %v4649_v49  ;;  %v1108_v22 = vsel %vm4653_vm12, %v4652_v54, 0.0  ;;  %v4655_v8 = vsel %vm4654_vm11, %v3356_v62, 0.0  ;;  %v4659_v7 = vsub.f32 0.0, %v4658_v13  ;;  %4663 = vst [vmem:[#allocation5_spill] sm:$0xff] %v3759_v3  ;;  %v3771_v4 = vpop.eup %1667  ;;  %v4685_v62 = vld [vmem:[#allocation15_spill] sm:$0xff] }
 0x1bd   :  { %v1121_v16 = vsel %vm4656_vm3, %v4655_v8, 0.0  ;;  %1673 = vpow2.f32 %v4662_v12  ;;  %v1050_v11 = vsel %vm3546_vm15, %v3542_v35, 0.0  ;;  %v1109_v2 = vadd.f32 %v1108_v22, %v1107_v21  ;;  %v4667_v35 = vld [vmem:[#allocation52_spill] sm:$0xff]  ;;  %v3789_v8 = vpop.eup %1669 }
 0x1be   :  { %vm3751_vm5 = vcmp.gt.f32.partialorder %v4659_v7, 0.0  ;;  %v1122_v14 = vadd.f32 %v1121_v16, %v1120_v17  ;;  %1675 = vpow2.f32 %v3348_v57  ;;  %vm4664_vm3 = vnez %v4559_v26  ;;  %v4672_v16 = vld [vmem:[#allocation53_spill] sm:$0xff]  ;;  %v4684_v17 = vld [vmem:[#allocation14_spill] sm:$0xff]  ;;  %v4701_v3 = vld [vmem:[#allocation16_spill] sm:$0xff] }
 0x1bf   :  { %v4668_v21 = vsub.f32 0.0, %v4667_v35  ;;  %1677 = vpow2.f32 %v3351_v52  ;;  %vm4671_vm11 = vnez %v4583_v61  ;;  %v4673_v13 = vsub.f32 0.0, %v4672_v16  ;;  %v4676_v52 = vld [vmem:[#allocation54_spill] sm:$0xff]  ;;  %v4681_v16 = vld [vmem:[#allocation17_spill] sm:$0xff] }
 0x1c0   :  { %v4677_v35 = vsub.f32 0.0, %v4676_v52  ;;  %1679 = vpow2.f32 %v3354_v41  ;;  %v1093_v57 = vrot.slane %v1092_v9, 2  ;;  %vm4680_vm9 = vnez %v4478_v50  ;;  %v3816_v41 = vpop.eup %1671  ;;  %v4689_v52 = vld [vmem:[#allocation55_spill] sm:$0xff] }
 0x1c1   :  { %vm3775_vm15 = vcmp.gt.f32.partialorder %v4668_v21, 0.0  ;;  %vm3793_vm12 = vcmp.gt.f32.partialorder %v4673_v13, 0.0  ;;  %v4682_v13 = vsel %vm4680_vm9, %v4681_v16, 0.0  ;;  %vm4683_vm4 = vcmask 64512   ;;  %v4694_v50 = vld [vmem:[#allocation63_spill] sm:$0xff] }
 0x1c2   :  { %vm3799_vm10 = vcmp.gt.f32.partialorder %v4677_v35, 0.0  ;;  %v1123_v7 = vsel %vm4683_vm4, %v4682_v13, 0.0  ;;  %1681 = vpow2.f32 %v4684_v17  ;;  %v1110_v35 = vrot.slane %v1109_v2, 4  ;;  %v4704_v17 = vld [vmem:[#allocation20_spill] sm:$0xff] }
 0x1c3   :  { %v1124_v53 = vadd.f32 %v1123_v7, %v1122_v14  ;;  %1683 = vpow2.f32 %v4685_v62  ;;  %v3828_v13 = vpop.eup %1673  ;;  %v4690_v14 = vsub.f32 0.0, %v4689_v52  ;;  %vm4693_vm4 = vnez %v4503_v55  ;;  %v4763_v7 = vld [vmem:[#allocation59_spill] sm:$0xff] }
 0x1c4   :  { %v4695_v52 = vsel %vm4693_vm4, %v4694_v50, 0.0  ;;  %vm4696_vm9 = vcmask 64512   ;;  %v3850_v54 = vpop.eup %1675  ;;  %v4698_v63 = vsub.f32 0.0, %v4697_v45  ;;  %1685 = vpow2.f32 %v4701_v3 }
 0x1c5   :  { %vm3832_vm0 = vcmp.gt.f32.partialorder %v4690_v14, 0.0  ;;  %v1135_v14 = vsel %vm4696_vm9, %v4695_v52, 0.0  ;;  %v3859_v16 = vadd.f32 %v1093_v57, %v1092_v9  ;;  %vm4703_vm2 = vnez %v4702_v28  ;;  %vm4706_vm7 = vmmov %vm4696_vm9  ;;  %v4709_v52 = vld [vmem:[#allocation25_spill] sm:$0xff]  ;;  %v4713_v28 = vld [vmem:[#allocation2_spill] sm:$0xff] }
 0x1c6   :  { %vm3854_vm13 = vcmp.gt.f32.partialorder %v4698_v63, 0.0  ;;  %v4705_v55 = vsel %vm4703_vm2, %v4704_v17, 0.0  ;;  %vm4708_vm9 = vnez %v4707_v37  ;;  %vm4711_vm4 = vmmov %vm4706_vm7  ;;  %v3871_v63 = vpop.eup %1677  ;;  %1687 = vpow2.f32 %v4712_v58 }
 0x1c7   :  { %v1125_v50 = vsel %vm4706_vm7, %v4705_v55, 0.0  ;;  %v4710_v32 = vsel %vm4708_vm9, %v4709_v52, 0.0  ;;  %v3874_v59 = vadd.f32 %v1110_v35, %v1109_v2  ;;  %v3876_v57 = vpop.eup %1679  ;;  %1689 = vpow2.f32 %v4713_v28  ;;  %vm4715_vm2 = vmmov %vm4711_vm4  ;;  %v4716_v35 = vld [vmem:[#allocation19_spill] sm:$0xff] }
 0x1c8   :  { %v1136_v45 = vsel %vm4711_vm4, %v4710_v32, 0.0  ;;  %v1126_v9 = vadd.f32 %v1125_v50, %v1124_v53  ;;  %v1065_v37 = vsel %vm3709_vm8, %v3816_v41, 0.0  ;;  %v1066_v32 = vsel %vm3715_vm1, %v3828_v13, 0.0  ;;  %v1682_v53 = vpop.eup %1681  ;;  %vm4725_vm4 = vmmov %vm4715_vm2 }
 0x1c9   :  { %v1137_v3 = vadd.f32 %v1136_v45, %v1135_v14  ;;  %v4714_v58 = vsel %vm3466_vm14, %v3453_v23, 0.0  ;;  %1691 = vpow2.f32 %v4716_v35  ;;  %vm4717_vm7 = vnez %v4650_v49  ;;  %v4718_v14 = vld [vmem:[#allocation24_spill] sm:$0xff]  ;;  %v1684_v52 = vpop.eup %1683  ;;  %v4734_v23 = vld [vmem:[#allocation22_spill] sm:$0xff] }
 0x1ca   :  { %v1138_v2 = vsel %vm4715_vm2, %v4714_v58, 0.0  ;;  %v1067_v17 = vsel %vm4717_vm7, %v3850_v54, 0.0  ;;  %vm4719_vm9 = vnez %v4718_v14  ;;  %vm4722_vm8 = vcmask 58368   ;;  %vm4728_vm7 = vmmov %vm4725_vm4  ;;  %v4798_v14 = vld [vmem:[#allocation5_spill] sm:$0xff] }
 0x1cb   :  { %v4721_v41 = vsel %vm4719_vm9, %v4720_v15, 0.0  ;;  %v1139_v50 = vadd.f32 %v1138_v2, %v1137_v3  ;;  %vm4723_vm14 = vnez %v4524_v43  ;;  %vm4726_vm2 = vnez %v4544_v47  ;;  %vm4729_vm9 = vmmov %vm4725_vm4  ;;  %v4730_v3 = vld [vmem:[#allocation57_spill] sm:$0xff] }
 0x1cc   :  { %v1127_v55 = vsel %vm4722_vm8, %v4721_v41, 0.0  ;;  %v4724_v42 = vsel %vm4723_vm14, %v3462_v5, 0.0  ;;  %v4727_v28 = vsel %vm4726_vm2, %v3534_v6, 0.0  ;;  %v1155_v35 = vsel %vm4729_vm9, %v1050_v11, 0.0  ;;  %vm4737_vm14 = vmmov %vm4725_vm4 }
 0x1cd   :  { %v1140_v45 = vsel %vm4725_vm4, %v4724_v42, 0.0  ;;  %v1154_v58 = vsel %vm4728_vm7, %v4727_v28, 0.0  ;;  %v4731_v2 = vsub.f32 0.0, %v4730_v3  ;;  %v1112_v43 = vrot.slane %v3874_v59, 2  ;;  %v1686_v42 = vpop.eup %1685  ;;  %vm4741_vm9 = vmmov %vm4725_vm4 }
 0x1ce   :  { %v1128_v15 = vadd.f32 %v1127_v55, %v1126_v9  ;;  %v1141_v5 = vadd.f32 %v1140_v45, %v1139_v50  ;;  %v1156_v41 = vadd.f32 %v1155_v35, %v1154_v58  ;;  %1693 = vpow2.f32 %v4734_v23  ;;  %v3934_v55 = vpop.eup %1687 }
 0x1cf   :  { %vm3915_vm8 = vcmp.gt.f32.partialorder %v4731_v2, 0.0  ;;  %v1069_v47 = vsel %vm3775_vm15, %v3876_v57, 0.0  ;;  %vm4735_vm7 = vnez %v4529_v20  ;;  %v4738_v28 = vsel %vm4664_vm3, %v3551_v39, 0.0  ;;  %v3940_v58 = vpop.eup %1689  ;;  %v4750_v2 = vld [vmem:[#allocation58_spill] sm:$0xff] }
 0x1d0   :  { %v4736_v6 = vsel %vm4735_vm7, %v3478_v18, 0.0  ;;  %v1157_v9 = vsel %vm4725_vm4, %v4738_v28, 0.0  ;;  %v1070_v50 = vsel %vm3793_vm12, %v1682_v53, 0.0  ;;  %v1071_v23 = vsel %vm3799_vm10, %v1684_v52, 0.0  ;;  %vm4744_vm7 = vmmov %vm4725_vm4  ;;  %v3962_v52 = vpop.eup %1691 }
 0x1d1   :  { %v1142_v11 = vsel %vm4737_vm14, %v4736_v6, 0.0  ;;  %v1158_v20 = vadd.f32 %v1157_v9, %v1156_v41  ;;  %vm4739_vm2 = vnez %v4536_v51  ;;  %vm4742_vm3 = vnez %v4563_v25  ;;  %vm4746_vm10 = vmmov %vm4725_vm4 }
 0x1d2   :  { %v1143_v45 = vadd.f32 %v1142_v11, %v1141_v5  ;;  %v4740_v18 = vsel %vm4739_vm2, %v3493_v46, 0.0  ;;  %v4743_v26 = vsel %vm4742_vm3, %v3577_v31, 0.0  ;;  %v4745_v21 = vsel %vm4671_vm11, %v3659_v33, 0.0  ;;  %vm4749_vm14 = vmmov %vm4725_vm4 }
 0x1d3   :  { %v1144_v39 = vsel %vm4741_vm9, %v4740_v18, 0.0  ;;  %v1159_v12 = vsel %vm4744_vm7, %v4743_v26, 0.0  ;;  %v1173_v53 = vsel %vm4746_vm10, %v4745_v21, 0.0  ;;  %vm4747_vm12 = vnez %v4587_v56  ;;  %vm4759_vm3 = vmmov %vm4744_vm7 }
 0x1d4   :  { %v4748_v51 = vsel %vm4747_vm12, %v3683_v1, 0.0  ;;  %v1129_v35 = vrot.slane %v1128_v15, 4  ;;  %v1145_v25 = vadd.f32 %v1144_v39, %v1143_v45  ;;  %v1160_v3 = vadd.f32 %v1159_v12, %v1158_v20  ;;  %vm4762_vm10 = vmmov %vm4759_vm3  ;;  %v1694_v45 = vpop.eup %1693 }
 0x1d5   :  { %v1174_v46 = vsel %vm4749_vm14, %v4748_v51, 0.0  ;;  %v4751_v5 = vsub.f32 0.0, %v4750_v2  ;;  %v1072_v33 = vsel %vm3832_vm0, %v1686_v42, 0.0  ;;  %vm4754_vm11 = vnez %v4540_v48  ;;  %vm4769_vm14 = vmmov %vm4759_vm3 }
 0x1d6   :  { %v1175_v31 = vadd.f32 %v1174_v46, %v1173_v53  ;;  %v4755_v56 = vsel %vm4754_vm11, %v3507_v40, 0.0  ;;  %vm4756_vm2 = vcmask 58368   ;;  %vm4757_vm9 = vnez %v4567_v34  ;;  %v4780_v53 = vld [vmem:[#allocation61_spill] sm:$0xff]  ;;  %v4785_v46 = vld [vmem:[#allocation28_spill] sm:$0xff] }
 0x1d7   :  { %vm3966_vm4 = vcmp.gt.f32.partialorder %v4751_v5, 0.0  ;;  %v1146_v1 = vsel %vm4756_vm2, %v4755_v56, 0.0  ;;  %v4758_v41 = vsel %vm4757_vm9, %v3601_v38, 0.0  ;;  %vm4760_vm7 = vnez %v4595_v27  ;;  %vm4772_vm2 = vmmov %vm4759_vm3  ;;  %v4790_v5 = vld [vmem:[#allocation62_spill] sm:$0xff]  ;;  %v4792_v56 = vld [vmem:[#allocation29_spill] sm:$0xff] }
 0x1d8   :  { %v1161_v6 = vsel %vm4759_vm3, %v4758_v41, 0.0  ;;  %v4761_v11 = vsel %vm4760_vm7, %v3694_v36, 0.0  ;;  %v4764_v42 = vsub.f32 0.0, %v4763_v7  ;;  %v1073_v40 = vsel %vm3854_vm13, %v3934_v55, 0.0  ;;  %vm4774_vm13 = vmmov %vm4772_vm2 }
 0x1d9   :  { %v1176_v28 = vsel %vm4762_vm10, %v4761_v11, 0.0  ;;  %v1147_v34 = vadd.f32 %v1146_v1, %v1145_v25  ;;  %v1162_v38 = vadd.f32 %v1161_v6, %v1160_v3  ;;  %vm4767_vm12 = vnez %v4574_v0  ;;  %vm4777_vm3 = vmmov %vm4772_vm2 }
 0x1da   :  { %vm3989_vm0 = vcmp.gt.f32.partialorder %v4764_v42, 0.0  ;;  %v1177_v9 = vadd.f32 %v1176_v28, %v1175_v31  ;;  %v4768_v36 = vsel %vm4767_vm12, %v3619_v30, 0.0  ;;  %vm4770_vm11 = vnez %v4601_v19  ;;  %vm4787_vm12 = vmmov %vm4772_vm2  ;;  %v4796_v28 = vld [vmem:[#allocation4_spill] sm:$0xff] }
 0x1db   :  { %v1163_v27 = vsel %vm4769_vm14, %v4768_v36, 0.0  ;;  %v4771_v20 = vsel %vm4770_vm11, %v3705_v10, 0.0  ;;  %v4773_v62 = vsel %vm3669_vm6, %v3771_v4, 0.0  ;;  %vm4775_vm9 = vnez %v4628_v44  ;;  %v4778_v10 = vld [vmem:[#allocation60_spill] sm:$0xff]  ;;  %v4783_v4 = vld [vmem:[#allocation27_spill] sm:$0xff]  ;;  %vm4788_vm14 = vmmov %vm4772_vm2 }
 0x1dc   :  { %v1178_v18 = vsel %vm4772_vm2, %v4771_v20, 0.0  ;;  %v1192_v55 = vsel %vm4774_vm13, %v4773_v62, 0.0  ;;  %v4776_v0 = vsel %vm4775_vm9, %v3789_v8, 0.0  ;;  %v1130_v39 = vadd.f32 %v1129_v35, %v1128_v15  ;;  %vm4789_vm11 = vmmov %vm4772_vm2 }
 0x1dd   :  { %v1193_v30 = vsel %vm4777_vm3, %v4776_v0, 0.0  ;;  %v1164_v26 = vadd.f32 %v1163_v27, %v1162_v38  ;;  %v1179_v12 = vadd.f32 %v1178_v18, %v1177_v9  ;;  %v1148_v21 = vrot.slane %v1147_v34, 4  ;;  %vm4794_vm13 = vmmov %vm4777_vm3 }
 0x1de   :  { %v1194_v19 = vadd.f32 %v1193_v30, %v1192_v55  ;;  %vm4779_vm7 = vnez %v4778_v10  ;;  %vm4782_vm10 = vcmask 58368   ;;  %vm4784_vm6 = vnez %v4783_v4  ;;  %vm4795_vm9 = vmmov %vm4777_vm3 }
 0x1df   :  { %v4781_v51 = vsel %vm4779_vm7, %v4780_v53, 0.0  ;;  %v4786_v25 = vsel %vm4784_vm6, %v4785_v46, 0.0  ;;  %v1195_v8 = vsel %vm4788_vm14, %v1065_v37, 0.0  ;;  %v1211_v31 = vsel %vm4789_vm11, %v1070_v50, 0.0  ;;  %vm4802_vm6 = vmmov %vm4777_vm3 }
 0x1e0   :  { %v1165_v29 = vsel %vm4782_vm10, %v4781_v51, 0.0  ;;  %v1180_v44 = vsel %vm4787_vm12, %v4786_v25, 0.0  ;;  %v1196_v35 = vadd.f32 %v1195_v8, %v1194_v19  ;;  %v1074_v2 = vsel %vm3915_vm8, %v3940_v58, 0.0  ;;  %vm4800_vm8 = vmmov %vm4782_vm10 }
 0x1e1   :  { %v1166_v3 = vadd.f32 %v1165_v29, %v1164_v26  ;;  %v1181_v15 = vadd.f32 %v1180_v44, %v1179_v12  ;;  %vm4791_vm2 = vnez %v4790_v5  ;;  %v1197_v37 = vsel %vm4795_vm9, %v1066_v32, 0.0  ;;  %vm4803_vm1 = vmmov %vm4777_vm3 }
 0x1e2   :  { %v4793_v1 = vsel %vm4791_vm2, %v4792_v56, 0.0  ;;  %v1212_v6 = vsel %vm4777_vm3, %v1071_v23, 0.0  ;;  %vm4797_vm7 = vnez %v4796_v28  ;;  %v1198_v42 = vadd.f32 %v1197_v37, %v1196_v35  ;;  %vm4805_vm12 = vmmov %vm4803_vm1 }
 0x1e3   :  { %v1182_v41 = vsel %vm4794_vm13, %v4793_v1, 0.0  ;;  %v1167_v11 = vrot.slane %v1166_v3, 4  ;;  %v4799_v58 = vsel %vm4797_vm7, %v4798_v14, 0.0  ;;  %v1149_v38 = vadd.f32 %v1148_v21, %v1147_v34  ;;  %vm4806_vm14 = vmmov %vm4803_vm1 }
 0x1e4   :  { %v1183_v50 = vadd.f32 %v1182_v41, %v1181_v15  ;;  %v1184_v7 = vsel %vm4800_vm8, %v4799_v58, 0.0  ;;  %v1199_v60 = vsel %vm4802_vm6, %v1067_v17, 0.0  ;;  %v1213_v13 = vadd.f32 %v1212_v6, %v1211_v31  ;;  %vm4808_vm11 = vmmov %vm4803_vm1 }
 0x1e5   :  { %v1168_v32 = vadd.f32 %v1167_v11, %v1166_v3  ;;  %v1200_v23 = vadd.f32 %v1199_v60, %v1198_v42  ;;  %v1214_v36 = vsel %vm4803_vm1, %v1072_v33, 0.0  ;;  %v1131_v27 = vrot.slane %v1130_v39, 2  ;;  %vm4812_vm6 = vmmov %vm4803_vm1 }
 0x1e6   :  { %v1185_v9 = vadd.f32 %v1184_v7, %v1183_v50  ;;  %v4804_v20 = vsel %vm3751_vm5, %v3871_v63, 0.0  ;;  %v1215_v34 = vadd.f32 %v1214_v36, %v1213_v13  ;;  %v1697_v62 = vmov 50.0   ;;  %vm4807_vm5 = vmmov %vm4800_vm8 }
 0x1e7   :  { %v1201_v18 = vsel %vm4805_vm12, %v4804_v20, 0.0  ;;  %1695 = vrcp.f32 %v1697_v62  ;;  %v1075_v49 = vsel %vm3966_vm4, %v3962_v52, 0.0  ;;  %v1216_v55 = vsel %vm4806_vm14, %v1073_v40, 0.0  ;;  %vm4809_vm4 = vmmov %vm4803_vm1 }
 0x1e8   :  { %v1186_v54 = vrot.slane %v1185_v9, 4  ;;  %v1202_v17 = vadd.f32 %v1201_v18, %v1200_v23  ;;  %v1076_v33 = vsel %vm3989_vm0, %v1694_v45, 0.0  ;;  %v1150_v0 = vrot.slane %v1149_v38, 2  ;;  %vm4810_vm15 = vmmov %vm4807_vm5 }
 0x1e9   :  { %v1203_v24 = vsel %vm4807_vm5, %v1069_v47, 0.0  ;;  %v1217_v63 = vadd.f32 %v1216_v55, %v1215_v34  ;;  %v1169_v30 = vrot.slane %v1168_v32, 2  ;;  %v1218_v52 = vsel %vm4808_vm11, %v1074_v2, 0.0 }
 0x1ea   :  { %v1187_v26 = vadd.f32 %v1186_v54, %v1185_v9  ;;  %v1204_v12 = vadd.f32 %v1203_v24, %v1202_v17  ;;  %v1113_v61 = vadd.f32 %v1112_v43, %v3874_v59  ;;  %v1132_v40 = vadd.f32 %v1131_v27, %v1130_v39 }
 0x1eb   :  { %v1219_v48 = vadd.f32 %v1218_v52, %v1217_v63  ;;  %v1220_v22 = vsel %vm4809_vm4, %v1075_v49, 0.0  ;;  %v1095_v57 = vrot.slane %v3859_v16, 1  ;;  %v1151_v47 = vadd.f32 %v1150_v0, %v1149_v38 }
 0x1ec   :  { %v1188_v45 = vrot.slane %v1187_v26, 2  ;;  %v1205_v19 = vrot.slane %v1204_v12, 4  ;;  %v1222_v53 = vsel %vm4810_vm15, %v1076_v33, 0.0  ;;  %v1170_v51 = vadd.f32 %v1169_v30, %v1168_v32  ;;  %v4811_v33 = vld [vmem:[#allocation3_spill] sm:$0xff] }
 0x1ed   :  { %v1696_v21 = vpop.eup %1695  ;;  %v1221_v10 = vadd.f32 %v1220_v22, %v1219_v48  ;;  %v1114_v25 = vrot.slane %v1113_v61, 1  ;;  %v1133_v44 = vrot.slane %v1132_v40, 1  ;;  %v1096_v8 = vadd.f32 %v1095_v57, %v3859_v16 }
 0x1ee   :  { %v1189_v29 = vadd.f32 %v1188_v45, %v1187_v26  ;;  %v1206_v4 = vadd.f32 %v1205_v19, %v1204_v12  ;;  %v1231_v46 = vmul.f32 50.0, %v1696_v21  ;;  %v1152_v3 = vrot.slane %v1151_v47, 1 }
 0x1ef   :  { %v1223_v59 = vadd.f32 %v1222_v53, %v1221_v10  ;;  %v1171_v35 = vrot.slane %v1170_v51, 1  ;;  %v1115_v56 = vadd.f32 %v1114_v25, %v1113_v61  ;;  %v1134_v1 = vadd.f32 %v1133_v44, %v1132_v40 }
 0x1f0   :  { %v1207_v43 = vrot.slane %v1206_v4, 2  ;;  %v1232_v39 = vsub.f32 1.0, %v1231_v46  ;;  %v1190_v31 = vrot.slane %v1189_v29, 1  ;;  %vm1235_vm0 = vweird.f32 %v1696_v21 }
 0x1f1   :  { %v1224_v15 = vrot.slane %v1223_v59, 4  ;;  %v1153_v11 = vadd.f32 %v1152_v3, %v1151_v47  ;;  %vm1253_vm2 = vcmask 1041409   ;;  %v1172_v28 = vadd.f32 %v1171_v35, %v1170_v51 }
 0x1f2   :  { %v1208_v2 = vadd.f32 %v1207_v43, %v1206_v4  ;;  %v1233_v5 = vmul.f32 %v1696_v21, %v1232_v39  ;;  %v1191_v14 = vadd.f32 %v1190_v31, %v1189_v29  ;;  %vm1255_vm13 = vcmask 1042434  }
 0x1f3   :  { %v1225_v41 = vadd.f32 %v1224_v15, %v1223_v59  ;;  %vm1257_vm9 = vcmask 1043459   ;;  %vm1259_vm3 = vcmask 1044484   ;;  %vm1261_vm7 = vcmask 1045509  }
 0x1f4   :  { %v1209_v37 = vrot.slane %v1208_v2, 1  ;;  %v1234_v6 = vadd.f32 %v1696_v21, %v1233_v5  ;;  %vm1263_vm8 = vcmask 1046534   ;;  %vm1265_vm10 = vcmask 1047559  }
 0x1f5   :  { %v1226_v50 = vrot.slane %v1225_v41, 2  ;;  %vm4813_vm12 = vcmask 130048  }
 0x1f6   :  { %v1236_v58 = vsel %vm1235_vm0, %v1696_v21, %v1234_v6  ;;  %v1210_v60 = vadd.f32 %v1209_v37, %v1208_v2 }
 0x1f7   :  { %v1227_v16 = vadd.f32 %v1226_v50, %v1225_v41  ;;  %v1237_v7 = vmul.f32 %v1236_v58, %v1096_v8  ;;  %v1238_v42 = vmul.f32 %v1236_v58, %v1115_v56  ;;  %v1239_v38 = vmul.f32 %v1236_v58, %v1134_v1 }
 0x1f8   :  { %v1240_v32 = vmul.f32 %v1236_v58, %v1153_v11  ;;  %v1241_v23 = vmul.f32 %v1236_v58, %v1172_v28  ;;  %v1242_v20 = vmul.f32 %v1236_v58, %v1191_v14  ;;  %v1243_v34 = vmul.f32 %v1236_v58, %v1210_v60 }
 0x1f9   :  { %v1228_v13 = vrot.slane %v1227_v16, 1  ;;  %v1254_v9 = vsel %vm1253_vm2, %v1238_v42, %v1237_v7 }
 0x1fa   :  { %v1256_v36 = vsel %vm1255_vm13, %v1239_v38, %v1254_v9 }
 0x1fb   :  { %v1229_v27 = vadd.f32 %v1228_v13, %v1227_v16  ;;  %v1258_v18 = vsel %vm1257_vm9, %v1240_v32, %v1256_v36 }
 0x1fc   :  { %v1260_v62 = vsel %vm1259_vm3, %v1241_v23, %v1258_v18 }
 0x1fd   :  { %v1244_v49 = vmul.f32 %v1236_v58, %v1229_v27  ;;  %v1262_v54 = vsel %vm1261_vm7, %v1242_v20, %v1260_v62 }
 0x1fe   :  { %v1264_v17 = vsel %vm1263_vm8, %v1243_v34, %v1262_v54 }
 0x1ff   :  { %v1266_v55 = vsel %vm1265_vm10, %v1244_v49, %v1264_v17 }
 0x200   :  { %v1268_v0 = vmul.f32 %v1266_v55, %v4811_v33 }
 0x202   :  { %1269 = vst.msk [vmem:[%s4094_s7] sm:$0xff] %vm4812_vm6, %v1268_v0  ;;  %1323 = vmatmul.msk.f32.vlgmr.msra.gmra.mxu2 %vm4803_vm1, %v1268_v0 }
 0x285   :  { %v1290_v24 = vpop.f32.mrf.mxu2 }
 0x286   :  { %1293 = vst.msk [vmem:[%s4095_s8] sm:$0xff] %vm4813_vm12, %v1290_v24 }

// kernel: _lambda_.7
= control target key start
LH: loop header
LB: loop body
LE: loop exit
PB: predicated region body
PF: predicated region fallthrough
CT: control target
= control target key end

     0   :  { %vm4282_vm0 = vcmask 130048   ;;  %vm4281_vm1 = vcmask 261120   ;;  %s4205_s3 = inlined_call_operand.vmem [shape: bf16[2,16,16], index: 3, kind: input, shape index: {}]   ;;  %s4206_s2 = inlined_call_operand.vmem [shape: bf16[2,32,16], index: 2, kind: input, shape index: {}]   ;;  %s4207_s1 = inlined_call_operand.vmem [shape: f32[8,16], index: 1, kind: input, shape index: {}]   ;;  %s4208_s0 = inlined_call_operand.vmem [shape: f32[8,32], index: 0, kind: input, shape index: {}]   ;;  %s4209_s4 = inlined_call_operand.vmem [shape: f32[2,1,16], index: 4, kind: input, shape index: {}]   ;;  %s4210_s7 = inlined_call_operand.vmem [shape: f32[8,16], index: 7, kind: output, shape index: {0}]   ;;  %s4211_s6 = inlined_call_operand.vmem [shape: f32[16,32], index: 6, kind: input, shape index: {}]   ;;  %s4212_s5 = inlined_call_operand.vmem [shape: f32[8,50,16], index: 5, kind: input, shape index: {}]   ;;  %s4213_s8 = inlined_call_operand.vmem [shape: f32[8,16], index: 8, kind: output, shape index: {1}]   ;;  %s4214_s9 = inlined_call_operand.vmem [shape: f32[8,16], index: 9, kind: output, shape index: {2}]   ;;  %s4215_s10 = inlined_call_operand.vmem [shape: f32[8,32], index: 10, kind: output, shape index: {3}]  }
   0x1   :  { %v1421_v0 = vld [vmem:[%s4205_s3] sm:$0xff]  ;;  %v1420_v1 = vld [vmem:[%s4206_s2 + $0x8] sm:$0xff]  ;;  %v1423_v4 = vld [vmem:[%s4206_s2 + $0x18] sm:$0xff] }
   0x2   :  { %v33_v2 = vld [vmem:[%s4207_s1] sm:$0xff]  ;;  %58 = vmatpush.bf16.msra.mxu0 %v1421_v0  ;;  %86 = vmatpush.bf16.msra.mxu1 %v1420_v1  ;;  %v1424_v7 = vld [vmem:[%s4205_s3 + $0x8] sm:$0xff]  ;;  %v1422_v8 = vld [vmem:[%s4206_s2 + $0x10] sm:$0xff] }
   0x3   :  { %v34_v3 = vpack.c.bf16 %v33_v2, %v33_v2  ;;  %v1419_v5 = vld [vmem:[%s4206_s2] sm:$0xff]  ;;  %143 = vmatpush.bf16.msra.mxu3 %v1423_v4  ;;  %119 = vmatpush.bf16.msra.mxu2 %v1424_v7 }
   0x4   :  { %v31_v6 = vld [vmem:[%s4208_s0] sm:$0xff] }
   0x5   :  { %1387 = vmatmul.msk.bf16.vlgmr.msra.gmra.mxu0 %vm4282_vm0, %v34_v3  ;;  %v32_v9 = vpack.c.bf16 %v31_v6, %v31_v6  ;;  %v1426_v11 = vld [vmem:[%s4209_s4] ss:$0 sm:$0xff]  ;;  %v1427_v36 = vld [vmem:[%s4209_s4 + $0x1] ss:$0 sm:$0xff] }
   0x6   :  { %87 = vmatpush.bf16.msra.mxu1 %v1419_v5  ;;  %1407 = vmatmul.msk.bf16.vlgmr.msra.gmra.mxu2 %vm4282_vm0, %v34_v3 }
   0x7   :  { %144 = vmatpush.bf16.msra.mxu3 %v1422_v8 }
   0x9   :  { %1396 = vmatmul.msk.bf16.vlgmr.msra.gmra.mxu1 %vm4281_vm1, %v32_v9 }
   0xa   :  { %1416 = vmatmul.msk.bf16.vlgmr.msra.gmra.mxu3 %vm4281_vm1, %v32_v9 }
  0x82   :  { %v60_v10 = vpop.f32.mrf.mxu0 }
  0x86   :  { %v89_v12 = vpop.f32.mrf.mxu1 }
  0x87   :  { %v90_v13 = vadd.f32 %v89_v12, %v60_v10 }
  0x89   :  { %v97_v14 = vadd.f32 %v1426_v11, %v90_v13  ;;  %v121_v16 = vpop.f32.mrf.mxu2 }
  0x8a   :  { %v62_v15 = vpop.f32.mrf.mxu0 }
  0x8b   :  { %v215_v17 = vand.u32 2147483647, %v97_v14  ;;  %v214_v28 = vmax.f32 %v97_v14, 0.0 }
  0x8d   :  { %v216_v18 = vsub.f32 0.0, %v215_v17  ;;  %v146_v19 = vpop.f32.mrf.mxu3 }
  0x8e   :  { %v91_v20 = vpop.f32.mrf.mxu1  ;;  %v147_v21 = vadd.f32 %v146_v19, %v121_v16 }
  0x8f   :  { %v217_v22 = vmul.f32 1.442695, %v216_v18 }
  0x90   :  { %v1908_v40 = vadd.f32 %v1427_v36, %v147_v21 }
  0x91   :  { %1428 = vpow2.f32 %v217_v22  ;;  %v123_v23 = vpop.f32.mrf.mxu2 }
  0x92   :  { %v226_v48 = vand.u32 2147483647, %v1908_v40 }
  0x95   :  { %v148_v24 = vpop.f32.mrf.mxu3 }
  0x97   :  { %v1429_v25 = vpop.eup %1428 }
  0x98   :  { %v219_v26 = vadd.f32 1.0, %v1429_v25 }
  0x9a   :  { %1430 = vlog2.f32 %v219_v26 }
  0xa0   :  { %v1431_v27 = vpop.eup %1430 }
  0xa1   :  { %v221_v29 = vmul.f32 0.6931472, %v1431_v27 }
  0xa3   :  { %v222_v30 = vadd.f32 %v221_v29, %v214_v28  ;;  %v227_v29 = vsub.f32 0.0, %v226_v48 }
  0xa5   :  { %v223_v31 = vmax.f32 %v222_v30, 1e-30 }
  0xa7   :  { %v1883_v32 = vmin.f32 %v223_v31, 10.0 }
  0xa9   :  { %4326 = vst [vmem:[#allocation2_spill] sm:$0xff] %v1883_v32  ;;  %v235_v33 = vadd.f32 1.0, %v1883_v32  ;;  %v252_v34 = vadd.f32 2.0, %v1883_v32  ;;  %v1893_v35 = vadd.f32 3.0, %v1883_v32  ;;  %v1899_v37 = vadd.f32 4.0, %v1883_v32 }
  0xaa   :  { %396 = vst.msk [vmem:[%s4210_s7] sm:$0xff] %vm4282_vm0, %v1883_v32  ;;  %v1902_v38 = vadd.f32 5.0, %v1883_v32  ;;  %v1906_v39 = vadd.f32 6.0, %v1883_v32  ;;  %v1913_v44 = vadd.f32 7.0, %v1883_v32 }
  0xab   :  { %1432 = vrcp.f32 %v235_v33  ;;  %v245_v41 = vand.u32 2147483647, %v235_v33  ;;  %v247_v43 = vand.u32 2147483648, %v235_v33  ;;  %vm241_vm2 = vweird.f32 %v235_v33 }
  0xac   :  { %1434 = vrcp.f32 %v252_v34  ;;  %v262_v50 = vand.u32 2147483647, %v252_v34  ;;  %vm258_vm4 = vweird.f32 %v252_v34  ;;  %v264_v57 = vand.u32 2147483648, %v252_v34 }
  0xad   :  { %1436 = vrcp.f32 %v1893_v35  ;;  %vm1917_vm3 = vcmp.eq.f32.partialorder %v245_v41, 8.507059e+37  ;;  %v248_v55 = vor.u32 1.1754944e-38, %v247_v43  ;;  %v281_v4 = vand.u32 2147483648, %v1893_v35 }
  0xae   :  { %1438 = vrcp.f32 %v1899_v37  ;;  %vm1929_vm7 = vcmp.eq.f32.partialorder %v262_v50, 8.507059e+37  ;;  %v265_v10 = vor.u32 1.1754944e-38, %v264_v57  ;;  %vm275_vm11 = vweird.f32 %v1893_v35 }
  0xaf   :  { %1440 = vrcp.f32 %v1902_v38  ;;  %v279_v16 = vand.u32 2147483647, %v1893_v35  ;;  %v296_v20 = vand.u32 2147483647, %v1899_v37  ;;  %v282_v26 = vor.u32 1.1754944e-38, %v281_v4 }
  0xb0   :  { %1442 = vrcp.f32 %v1906_v39  ;;  %v298_v27 = vand.u32 2147483648, %v1899_v37  ;;  %vm292_vm15 = vweird.f32 %v1899_v37  ;;  %v332_v48 = vand.u32 2147483648, %v1906_v39 }
  0xb1   :  { %v1433_v42 = vpop.eup %1432  ;;  %1444 = vrcp.f32 %v1913_v44  ;;  %vm280_vm14 = vcmp.eq.f32.partialorder %v279_v16, 8.507059e+37 }
  0xb2   :  { %v1435_v45 = vpop.eup %1434  ;;  %v237_v46 = vmul.f32 %v1433_v42, %v235_v33  ;;  %vm242_vm5 = vweird.f32 %v1433_v42  ;;  %v299_v43 = vor.u32 1.1754944e-38, %v298_v27  ;;  %v333_v63 = vor.u32 1.1754944e-38, %v332_v48  ;;  %v2036_v33 = vld [vmem:[%s4212_s5 + $0x10] sm:$0xff] }
  0xb3   :  { %v1437_v47 = vpop.eup %1436  ;;  %v254_v49 = vmul.f32 %v1435_v45, %v252_v34  ;;  %vm259_vm6 = vweird.f32 %v1435_v45  ;;  %vm243_vm8 = vmor %vm241_vm2, %vm242_vm5  ;;  %vm309_vm5 = vweird.f32 %v1902_v38 }
  0xb4   :  { %v238_v51 = vsub.f32 1.0, %v237_v46  ;;  %v271_v53 = vmul.f32 %v1437_v47, %v1893_v35  ;;  %v1922_v54 = vpop.eup %1438  ;;  %vm276_vm9 = vweird.f32 %v1437_v47  ;;  %vm260_vm10 = vmor %vm258_vm4, %vm259_vm6 }
  0xb5   :  { %v255_v56 = vsub.f32 1.0, %v254_v49  ;;  %v1925_v58 = vpop.eup %1440  ;;  %v288_v61 = vmul.f32 %v1922_v54, %v1899_v37  ;;  %vm1952_vm12 = vmor %vm275_vm11, %vm276_vm9  ;;  %vm293_vm13 = vweird.f32 %v1922_v54  ;;  %v315_v37 = vand.u32 2147483648, %v1902_v38 }
  0xb6   :  { %v239_v59 = vmul.f32 %v1433_v42, %v238_v51  ;;  %v272_v60 = vsub.f32 1.0, %v271_v53  ;;  %v305_v0 = vmul.f32 %v1925_v58, %v1902_v38  ;;  %v1935_v1 = vpop.eup %1442  ;;  %vm1966_vm2 = vmor %vm292_vm15, %vm293_vm13  ;;  %vm310_vm4 = vweird.f32 %v1925_v58  ;;  %v2087_v51 = vld [vmem:[%s4212_s5 + $0x60] sm:$0xff] }
  0xb7   :  { %v256_v62 = vmul.f32 %v1435_v45, %v255_v56  ;;  %v289_v5 = vsub.f32 1.0, %v288_v61  ;;  %v322_v8 = vmul.f32 %v1935_v1, %v1906_v39  ;;  %v1943_v13 = vpop.eup %1444  ;;  %v371_v49 = vadd.f32 7.5, %v1883_v32  ;;  %vm1986_vm6 = vmor %vm309_vm5, %vm310_vm4 }
  0xb8   :  { %v240_v2 = vadd.f32 %v1433_v42, %v239_v59  ;;  %v273_v3 = vmul.f32 %v1437_v47, %v272_v60  ;;  %v306_v7 = vsub.f32 1.0, %v305_v0  ;;  %v339_v28 = vmul.f32 %v1943_v13, %v1913_v44 }
  0xb9   :  { %v257_v6 = vadd.f32 %v1435_v45, %v256_v62  ;;  %v290_v12 = vmul.f32 %v1922_v54, %v289_v5  ;;  %v323_v21 = vsub.f32 1.0, %v322_v8  ;;  %v330_v56 = vand.u32 2147483647, %v1906_v39 }
  0xba   :  { %v244_v9 = vsel %vm243_vm8, %v1433_v42, %v240_v2  ;;  %v274_v11 = vadd.f32 %v1437_v47, %v273_v3  ;;  %v307_v24 = vmul.f32 %v1925_v58, %v306_v7  ;;  %v340_v42 = vsub.f32 1.0, %v339_v28 }
  0xbb   :  { %v249_v14 = vsel %vm1917_vm3, %v248_v55, %v244_v9  ;;  %v261_v15 = vsel %vm260_vm10, %v1435_v45, %v257_v6  ;;  %v291_v23 = vadd.f32 %v1922_v54, %v290_v12  ;;  %vm297_vm3 = vcmp.eq.f32.partialorder %v296_v20, 8.507059e+37 }
  0xbc   :  { %v250_v17 = vmul.f32 676.5204, %v249_v14  ;;  %v266_v18 = vsel %vm1929_vm7, %v265_v10, %v261_v15  ;;  %v278_v22 = vsel %vm1952_vm12, %v1437_v47, %v274_v11  ;;  %v324_v34 = vmul.f32 %v1935_v1, %v323_v21 }
  0xbd   :  { %v267_v30 = vmul.f32 -1259.1392, %v266_v18  ;;  %v283_v31 = vsel %vm280_vm14, %v282_v26, %v278_v22  ;;  %v295_v36 = vsel %vm1966_vm2, %v1922_v54, %v291_v23  ;;  %v308_v41 = vadd.f32 %v1925_v58, %v307_v24  ;;  %v213_v23 = vld [vmem:[%s4211_s6 + $0x8] sm:$0xff]  ;;  %v212_v24 = vld [vmem:[%s4211_s6] sm:$0xff] }
  0xbe   :  { %v251_v25 = vadd.f32 1.0, %v250_v17  ;;  %v1979_v45 = vadd.f32 8.0, %v1883_v32  ;;  %v284_v46 = vmul.f32 771.3234, %v283_v31  ;;  %v313_v47 = vand.u32 2147483647, %v1902_v38  ;;  %1360 = vmatpush.msrb.mxu0 %v213_v23 }
  0xbf   :  { %v300_v50 = vsel %vm297_vm3, %v299_v43, %v295_v36  ;;  %v325_v52 = vadd.f32 %v1935_v1, %v324_v34  ;;  %vm327_vm7 = vweird.f32 %v1935_v1  ;;  %v312_v38 = vsel %vm1986_vm6, %v1925_v58, %v308_v41  ;;  %v2031_v31 = vld [vmem:[%s4212_s5 + $0x8] sm:$0xff]  ;;  %v2041_v34 = vld [vmem:[%s4212_s5 + $0x18] sm:$0xff]  ;;  %v2046_v36 = vld [vmem:[%s4212_s5 + $0x20] sm:$0xff] }
  0xc0   :  { %v268_v35 = vadd.f32 %v267_v30, %v251_v25  ;;  %1446 = vrcp.f32 %v1979_v45  ;;  %v341_v54 = vmul.f32 %v1943_v13, %v340_v42  ;;  %v316_v55 = vor.u32 1.1754944e-38, %v315_v37  ;;  %1361 = vmatpush.msrb.mxu0 %v212_v24  ;;  %v2026_v30 = vld [vmem:[%s4212_s5] sm:$0xff]  ;;  %v2051_v41 = vld [vmem:[%s4212_s5 + $0x28] sm:$0xff]  ;;  %v2056_v42 = vld [vmem:[%s4212_s5 + $0x30] sm:$0x3] }
  0xc1   :  { %1448 = vlog2.f32 %v371_v49  ;;  %vm326_vm8 = vweird.f32 %v1906_v39  ;;  %v301_v57 = vmul.f32 -176.61504, %v300_v50  ;;  %vm314_vm9 = vcmp.eq.f32.partialorder %v313_v47, 8.507059e+37  ;;  %v2061_v37 = vld [vmem:[%s4212_s5 + $0x38] sm:$0xff]  ;;  %v2206_v23 = vld [vmem:[%s4212_s5 + $0x100] sm:$0xff]  ;;  %v2211_v24 = vld [vmem:[%s4212_s5 + $0x108] sm:$0xff] }
  0xc2   :  { %v285_v53 = vadd.f32 %v284_v46, %v268_v35  ;;  %vm328_vm10 = vmor %vm326_vm8, %vm327_vm7  ;;  %v228_v59 = vmul.f32 1.442695, %v227_v29  ;;  %v317_v60 = vsel %vm314_vm9, %v316_v55, %v312_v38  ;;  %v342_v0 = vadd.f32 %v1943_v13, %v341_v54  ;;  %v2071_v46 = vld [vmem:[%s4212_s5 + $0x48] sm:$0xff]  ;;  %v2082_v50 = vld [vmem:[%s4212_s5 + $0x58] sm:$0xff] }
  0xc3   :  { %v329_v61 = vsel %vm328_vm10, %v1935_v1, %v325_v52  ;;  %vm344_vm11 = vweird.f32 %v1943_v13  ;;  %vm331_vm12 = vcmp.eq.f32.partialorder %v330_v56, 8.507059e+37  ;;  %vm343_vm13 = vweird.f32 %v1913_v44  ;;  %v2095_v55 = vld [vmem:[%s4212_s5 + $0x68] sm:$0x3]  ;;  %v2100_v56 = vld [vmem:[%s4212_s5 + $0x70] sm:$0xff] }
  0xc4   :  { %v302_v62 = vadd.f32 %v301_v57, %v285_v53  ;;  %v349_v2 = vand.u32 2147483648, %v1913_v44  ;;  %v318_v3 = vmul.f32 12.507343, %v317_v60  ;;  %v334_v4 = vsel %vm331_vm12, %v333_v63, %v329_v61  ;;  %vm2006_vm14 = vmor %vm343_vm13, %vm344_vm11  ;;  %v2105_v57 = vld [vmem:[%s4212_s5 + $0x78] sm:$0xff]  ;;  %v2117_v63 = vld [vmem:[%s4212_s5 + $0x88] sm:$0xff] }
  0xc5   :  { %v347_v5 = vand.u32 2147483647, %v1913_v44  ;;  %v372_v7 = vadd.f32 0.5, %v1883_v32  ;;  %1450 = vpow2.f32 %v228_v59  ;;  %v346_v10 = vsel %vm2006_vm14, %v1943_v13, %v342_v0  ;;  %v2122_v0 = vld [vmem:[%s4212_s5 + $0x90] sm:$0xff] }
  0xc6   :  { %v1447_v58 = vpop.eup %1446  ;;  %v319_v9 = vadd.f32 %v318_v3, %v302_v62  ;;  %v335_v12 = vmul.f32 -0.1385711, %v334_v4  ;;  %v350_v14 = vor.u32 1.1754944e-38, %v349_v2  ;;  %v366_v44 = vand.u32 2147483648, %v1979_v45  ;;  %v2112_v62 = vld [vmem:[%s4212_s5 + $0x80] sm:$0xff]  ;;  %v2138_v3 = vld [vmem:[%s4212_s5 + $0xa8] sm:$0xff] }
  0xc7   :  { %v1449_v39 = vpop.eup %1448  ;;  %v356_v6 = vmul.f32 %v1447_v58, %v1979_v45  ;;  %vm348_vm15 = vcmp.eq.f32.partialorder %v347_v5, 8.507059e+37  ;;  %vm361_vm2 = vweird.f32 %v1447_v58  ;;  %v364_v17 = vand.u32 2147483647, %v1979_v45  ;;  %v2143_v4 = vld [vmem:[%s4212_s5 + $0xb0] sm:$0xff] }
  0xc8   :  { %v374_v8 = vmul.f32 0.6931472, %v1449_v39  ;;  %v351_v18 = vsel %vm348_vm15, %v350_v14, %v346_v10  ;;  %v336_v20 = vadd.f32 %v335_v12, %v319_v9  ;;  %vm360_vm3 = vweird.f32 %v1979_v45  ;;  %v2066_v45 = vld [vmem:[%s4212_s5 + $0x40] sm:$0xff]  ;;  %v2163_v10 = vld [vmem:[%s4212_s5 + $0xc8] sm:$0xff]  ;;  %v2170_v14 = vld [vmem:[%s4212_s5 + $0xd0] sm:$0xff] }
  0xc9   :  { %v357_v11 = vsub.f32 1.0, %v356_v6  ;;  %vm362_vm4 = vmor %vm360_vm3, %vm361_vm2  ;;  %v367_v22 = vor.u32 1.1754944e-38, %v366_v44  ;;  %v352_v26 = vmul.f32 9.984369e-06, %v351_v18  ;;  %vm365_vm5 = vcmp.eq.f32.partialorder %v364_v17, 8.507059e+37  ;;  %v2158_v9 = vld [vmem:[%s4212_s5 + $0xc0] sm:$0xff] }
  0xca   :  { %v375_v15 = vmul.f32 %v374_v8, %v372_v7  ;;  %v398_v47 = vsub.f32 1.0, %v2026_v30  ;;  %v399_v52 = vsub.f32 1.0, %v2031_v31  ;;  %v400_v53 = vsub.f32 1.0, %v2036_v33  ;;  %v2133_v39 = vld [vmem:[%s4212_s5 + $0xa0] sm:$0x3]  ;;  %v2153_v8 = vld [vmem:[%s4212_s5 + $0xb8] sm:$0xff] }
  0xcb   :  { %v358_v16 = vmul.f32 %v1447_v58, %v357_v11  ;;  %v1451_v25 = vpop.eup %1450  ;;  %v353_v29 = vadd.f32 %v352_v26, %v336_v20  ;;  %v401_v38 = vsub.f32 1.0, %v2041_v34  ;;  %v402_v59 = vsub.f32 1.0, %v2046_v36  ;;  %v2175_v44 = vld [vmem:[%s4212_s5 + $0xd8] sm:$0x3]  ;;  %v2188_v18 = vld [vmem:[%s4212_s5 + $0xe8] sm:$0xff]  ;;  %v2237_v31 = vld [vmem:[%s4212_s5 + $0x120] sm:$0xff] }
  0xcc   :  { %v376_v19 = vsub.f32 %v375_v15, %v371_v49  ;;  %v230_v43 = vadd.f32 1.0, %v1451_v25  ;;  %v2077_v49 = vld [vmem:[%s4212_s5 + $0x50] sm:$0xff]  ;;  %v403_v60 = vsub.f32 1.0, %v2051_v41  ;;  %v404_v2 = vsub.f32 1.0, %v2056_v42  ;;  %v2180_v15 = vld [vmem:[%s4212_s5 + $0xe0] sm:$0xff]  ;;  %v2198_v20 = vld [vmem:[%s4212_s5 + $0xf8] sm:$0xff] }
  0xcd   :  { %v359_v21 = vadd.f32 %v1447_v58, %v358_v16  ;;  %v405_v5 = vsub.f32 1.0, %v2061_v37  ;;  %v406_v6 = vsub.f32 1.0, %v2066_v45  ;;  %v225_v1 = vmax.f32 %v1908_v40, 0.0  ;;  %v2263_v33 = vld [vmem:[%s4212_s5 + $0x130] sm:$0xff]  ;;  %v2272_v36 = vld [vmem:[%s4212_s5 + $0x138] sm:$0xff]  ;;  %v2294_v45 = vld [vmem:[%s4212_s5 + $0x140] sm:$0xff] }
  0xce   :  { %v377_v13 = vmul.f32 1.442695, %v376_v19  ;;  %v407_v11 = vsub.f32 1.0, %v2071_v46  ;;  %v408_v12 = vsub.f32 1.0, %v2077_v49  ;;  %v409_v16 = vsub.f32 1.0, %v2082_v50  ;;  %v2193_v19 = vld [vmem:[%s4212_s5 + $0xf0] sm:$0xff] }
  0xcf   :  { %v363_v27 = vsel %vm362_vm4, %v1447_v58, %v359_v21  ;;  %v2127_v58 = vld [vmem:[%s4212_s5 + $0x98] sm:$0xff]  ;;  %v410_v17 = vsub.f32 1.0, %v2087_v51  ;;  %v454_v26 = vmax.f32 %v398_v47, 1e-30  ;;  %v455_v25 = vmax.f32 %v399_v52, 1e-30 }
  0xd0   :  { %v368_v28 = vsel %vm365_vm5, %v367_v22, %v363_v27  ;;  %1452 = vpow2.f32 %v377_v13  ;;  %v456_v13 = vmax.f32 %v400_v53, 1e-30  ;;  %v457_v30 = vmax.f32 %v401_v38, 1e-30  ;;  %v2313_v49 = vld [vmem:[%s4212_s5 + $0x150] sm:$0xff]  ;;  %v2323_v50 = vld [vmem:[%s4212_s5 + $0x160] sm:$0xff] }
  0xd1   :  { %v369_v35 = vmul.f32 1.5056327e-07, %v368_v28  ;;  %1454 = vlog2.f32 %v230_v43  ;;  %v458_v47 = vmax.f32 %v402_v59, 1e-30  ;;  %v459_v34 = vmax.f32 %v403_v60, 1e-30 }
  0xd2   :  { %v460_v59 = vmax.f32 %v404_v2, 1e-30  ;;  %v462_v60 = vmax.f32 %v406_v6, 1e-30  ;;  %v463_v2 = vmax.f32 %v407_v11, 1e-30 }
  0xd3   :  { %v370_v48 = vadd.f32 %v369_v35, %v353_v29  ;;  %v2220_v29 = vld [vmem:[%s4212_s5 + $0x110] sm:$0x3]  ;;  %v2299_v6 = vld [vmem:[%s4212_s5 + $0x148] sm:$0x3]  ;;  %v464_v46 = vmax.f32 %v408_v12, 1e-30 }
  0xd4   :  { %v2318_v12 = vld [vmem:[%s4212_s5 + $0x158] sm:$0xff]  ;;  %v2406_v51 = vld [vmem:[%s4212_s5 + $0x1b0] sm:$0xff]  ;;  %v4345_v27 = vsub.f32 1.0, %v2122_v0  ;;  %v4347_v0 = vsub.f32 1.0, %v2133_v39 }
  0xd5   :  { %v2417_v37 = vld [vmem:[%s4212_s5 + $0x1b8] sm:$0x3] }
  0xd6   :  { %v1453_v54 = vpop.eup %1452 }
  0xd7   :  { %v379_v61 = vmul.f32 2.5066283, %v1453_v54  ;;  %v2229_v54 = vld [vmem:[%s4212_s5 + $0x118] sm:$0xff] }
  0xd9   :  { %v2148_v7 = vmul.f32 %v379_v61, %v370_v48  ;;  %v1455_v48 = vpop.eup %1454  ;;  %v2245_v61 = vld [vmem:[%s4212_s5 + $0x128] sm:$0xff] }
  0xda   :  { %v232_v22 = vmul.f32 0.6931472, %v1455_v48 }
  0xdb   :  { %1456 = vrcp.f32 %v2148_v7  ;;  %v392_v41 = vand.u32 2147483648, %v2148_v7  ;;  %vm386_vm7 = vweird.f32 %v2148_v7 }
  0xdc   :  { %1458 = vlog2.f32 %v454_v26  ;;  %v461_v26 = vmax.f32 %v405_v5, 1e-30  ;;  %v233_v48 = vadd.f32 %v232_v22, %v225_v1  ;;  %v465_v22 = vmax.f32 %v409_v16, 1e-30 }
  0xdd   :  { %1460 = vlog2.f32 %v455_v25  ;;  %v390_v25 = vand.u32 2147483647, %v2148_v7  ;;  %v466_v16 = vmax.f32 %v410_v17, 1e-30  ;;  %v4339_v17 = vsub.f32 1.0, %v2095_v55 }
  0xde   :  { %1462 = vlog2.f32 %v456_v13  ;;  %v234_v11 = vmax.f32 %v233_v48, 1e-30  ;;  %v2332_v48 = vld [vmem:[%s4212_s5 + $0x168] sm:$0xff]  ;;  %v4341_v55 = vsub.f32 1.0, %v2100_v56  ;;  %v4342_v56 = vsub.f32 1.0, %v2105_v57 }
  0xdf   :  { %1464 = vlog2.f32 %v457_v30  ;;  %vm391_vm9 = vcmp.eq.f32.partialorder %v390_v25, 8.507059e+37  ;;  %v4343_v57 = vsub.f32 1.0, %v2112_v62  ;;  %v2401_v25 = vld [vmem:[%s4212_s5 + $0x1a8] sm:$0xff]  ;;  %v4344_v62 = vsub.f32 1.0, %v2117_v63 }
  0xe0   :  { %1466 = vlog2.f32 %v458_v47  ;;  %v451_v53 = vsub.f32 1.0, %v2401_v25  ;;  %v4350_v25 = vsub.f32 1.0, %v2153_v8  ;;  %v4355_v8 = vsub.f32 1.0, %v2180_v15 }
  0xe1   :  { %v1457_v43 = vpop.eup %1456  ;;  %1468 = vlog2.f32 %v459_v34  ;;  %v2337_v34 = vld [vmem:[%s4212_s5 + $0x170] sm:$0xff] }
  0xe2   :  { %v382_v21 = vmul.f32 %v1457_v43, %v2148_v7  ;;  %vm387_vm6 = vweird.f32 %v1457_v43  ;;  %v2288_v40 = vpop.eup %1458  ;;  %1470 = vlog2.f32 %v460_v59  ;;  %v393_v7 = vor.u32 1.1754944e-38, %v392_v41 }
  0xe3   :  { %v2303_v1 = vpop.eup %1460  ;;  %vm388_vm8 = vmor %vm386_vm7, %vm387_vm6  ;;  %1472 = vlog2.f32 %v461_v26  ;;  %v467_v59 = vmax.f32 %v4339_v17, 1e-30  ;;  %v469_v17 = vmax.f32 %v4342_v56, 1e-30  ;;  %v477_v39 = vmax.f32 %v4350_v25, 1e-30 }
  0xe4   :  { %v383_v38 = vsub.f32 1.0, %v382_v21  ;;  %v2308_v13 = vpop.eup %1462  ;;  %1474 = vlog2.f32 %v462_v60  ;;  %v2354_v60 = vld [vmem:[%s4212_s5 + $0x180] sm:$0x3]  ;;  %v4357_v25 = vsub.f32 1.0, %v2193_v19  ;;  %v4362_v19 = vsub.f32 1.0, %v2229_v54 }
  0xe5   :  { %1476 = vlog2.f32 %v463_v2  ;;  %v446_v42 = vsub.f32 1.0, %v2354_v60 }
  0xe6   :  { %v384_v21 = vmul.f32 %v1457_v43, %v383_v38  ;;  %v2342_v38 = vld [vmem:[%s4212_s5 + $0x178] sm:$0xff]  ;;  %1478 = vlog2.f32 %v464_v46 }
  0xe7   :  { %1480 = vlog2.f32 %v465_v22  ;;  %v470_v22 = vmax.f32 %v4343_v57, 1e-30  ;;  %v471_v57 = vmax.f32 %v4344_v62, 1e-30  ;;  %v4346_v62 = vsub.f32 1.0, %v2127_v58 }
  0xe8   :  { %v385_v5 = vadd.f32 %v1457_v43, %v384_v21  ;;  %v2359_v21 = vld [vmem:[%s4212_s5 + $0x188] sm:$0xff]  ;;  %1482 = vlog2.f32 %v466_v16  ;;  %v4348_v58 = vsub.f32 1.0, %v2138_v3  ;;  %v4353_v3 = vsub.f32 1.0, %v2170_v14 }
  0xe9   :  { %1484 = vlog2.f32 %v467_v59  ;;  %v473_v52 = vmax.f32 %v4346_v62, 1e-30  ;;  %v4358_v14 = vsub.f32 1.0, %v2198_v20 }
  0xea   :  { %v389_v30 = vsel %vm388_vm8, %v1457_v43, %v385_v5  ;;  %v2327_v43 = vpop.eup %1464  ;;  %v468_v5 = vmax.f32 %v4341_v55, 1e-30  ;;  %v2390_v55 = vld [vmem:[%s4212_s5 + $0x1a0] sm:$0xff]  ;;  %v475_v62 = vmax.f32 %v4348_v58, 1e-30  ;;  %v4354_v58 = vsub.f32 1.0, %v2175_v44 }
  0xeb   :  { %v394_v47 = vsel %vm391_vm9, %v393_v7, %v389_v30  ;;  %v2347_v26 = vpop.eup %1466  ;;  %v2374_v7 = vld [vmem:[%s4212_s5 + $0x198] sm:$0xff]  ;;  %v472_v30 = vmax.f32 %v4345_v27, 1e-30  ;;  %v450_v60 = vsub.f32 1.0, %v2390_v55  ;;  %v474_v27 = vmax.f32 %v4347_v0, 1e-30 }
  0xec   :  { %v2349_v41 = vmul.f32 %v394_v47, %v234_v11  ;;  %v2364_v2 = vpop.eup %1468  ;;  %v2369_v11 = vld [vmem:[%s4212_s5 + $0x190] sm:$0xff]  ;;  %1486 = vlog2.f32 %v468_v5  ;;  %v449_v59 = vsub.f32 1.0, %v2374_v7  ;;  %v453_v7 = vsub.f32 1.0, %v2417_v37 }
  0xed   :  { %v2380_v46 = vpop.eup %1470  ;;  %v448_v63 = vsub.f32 1.0, %v2369_v11  ;;  %1488 = vlog2.f32 %v469_v17  ;;  %v452_v11 = vsub.f32 1.0, %v2406_v51  ;;  %v4349_v55 = vsub.f32 1.0, %v2143_v4 }
  0xee   :  { %4340 = vst [vmem:[#allocation3_spill] sm:$0xff] %v2349_v41  ;;  %v2396_v56 = vpop.eup %1472  ;;  %1490 = vlog2.f32 %v470_v22  ;;  %v4351_v22 = vsub.f32 1.0, %v2158_v9  ;;  %v4352_v37 = vsub.f32 1.0, %v2163_v10  ;;  %v481_v32 = vmax.f32 %v4354_v58, 1e-30 }
  0xef   :  { %397 = vst.msk [vmem:[%s4213_s8] sm:$0xff] %vm4282_vm0, %v2349_v41  ;;  %v2412_v16 = vpop.eup %1474  ;;  %1492 = vlog2.f32 %v471_v57  ;;  %v476_v28 = vmax.f32 %v4349_v55, 1e-30  ;;  %v480_v57 = vmax.f32 %v4353_v3, 1e-30  ;;  %v4356_v9 = vsub.f32 1.0, %v2188_v18 }
  0xf0   :  { %v2423_v47 = vpop.eup %1476  ;;  %v478_v0 = vmax.f32 %v4351_v22, 1e-30  ;;  %1494 = vlog2.f32 %v472_v30  ;;  %v479_v51 = vmax.f32 %v4352_v37, 1e-30  ;;  %v482_v55 = vmax.f32 %v4355_v8, 1e-30 }
  0xf1   :  { %v2429_v35 = vpop.eup %1478  ;;  %1496 = vlog2.f32 %v473_v52  ;;  %v483_v30 = vmax.f32 %v4356_v9, 1e-30  ;;  %v484_v22 = vmax.f32 %v4357_v25, 1e-30  ;;  %v485_v37 = vmax.f32 %v4358_v14, 1e-30 }
  0xf2   :  { %v2435_v5 = vpop.eup %1480  ;;  %1498 = vlog2.f32 %v474_v27  ;;  %v4359_v44 = vsub.f32 1.0, %v2206_v23  ;;  %v4360_v3 = vsub.f32 1.0, %v2211_v24  ;;  %v4361_v18 = vsub.f32 1.0, %v2220_v29 }
  0xf3   :  { %v2441_v17 = vpop.eup %1482  ;;  %1500 = vlog2.f32 %v475_v62  ;;  %v2477_v9 = vmax.f32 %v4362_v19, 1e-30  ;;  %v4363_v27 = vsub.f32 1.0, %v2237_v31  ;;  %v4364_v23 = vsub.f32 1.0, %v2245_v61 }
  0xf4   :  { %v2449_v41 = vpop.eup %1484  ;;  %v486_v52 = vmax.f32 %v4359_v44, 1e-30  ;;  %v487_v58 = vmax.f32 %v4360_v3, 1e-30  ;;  %v488_v8 = vmax.f32 %v4361_v18, 1e-30  ;;  %1502 = vlog2.f32 %v476_v28 }
  0xf5   :  { %v2457_v4 = vpop.eup %1486  ;;  %v2481_v25 = vmax.f32 %v4363_v27, 1e-30  ;;  %v2485_v14 = vmax.f32 %v4364_v23, 1e-30  ;;  %v4365_v24 = vsub.f32 1.0, %v2263_v33  ;;  %v4366_v29 = vsub.f32 1.0, %v2272_v36 }
  0xf6   :  { %v2465_v10 = vpop.eup %1488  ;;  %1504 = vlog2.f32 %v477_v39  ;;  %v4367_v31 = vsub.f32 1.0, %v2294_v45  ;;  %v4368_v28 = vsub.f32 1.0, %v2299_v6  ;;  %v4369_v61 = vsub.f32 1.0, %v2313_v49 }
  0xf7   :  { %v1491_v15 = vpop.eup %1490  ;;  %v2489_v62 = vmax.f32 %v4365_v24, 1e-30  ;;  %v2493_v44 = vmax.f32 %v4366_v29, 1e-30  ;;  %1506 = vlog2.f32 %v478_v0  ;;  %v4370_v36 = vsub.f32 1.0, %v2318_v12 }
  0xf8   :  { %v1493_v20 = vpop.eup %1492  ;;  %v2497_v3 = vmax.f32 %v4367_v31, 1e-30  ;;  %v2501_v18 = vmax.f32 %v4368_v28, 1e-30  ;;  %v2505_v19 = vmax.f32 %v4369_v61, 1e-30  ;;  %1508 = vlog2.f32 %v479_v51 }
  0xf9   :  { %v1495_v54 = vpop.eup %1494  ;;  %v2509_v27 = vmax.f32 %v4370_v36, 1e-30  ;;  %v4371_v39 = vsub.f32 1.0, %v2323_v50  ;;  %v4372_v45 = vsub.f32 1.0, %v2332_v48  ;;  %v4373_v49 = vsub.f32 1.0, %v2337_v34 }
  0xfa   :  { %v1497_v33 = vpop.eup %1496  ;;  %v4374_v0 = vsub.f32 1.0, %v2342_v38  ;;  %v2527_v12 = vmax.f32 %v446_v42, 1e-30  ;;  %1510 = vlog2.f32 %v480_v57  ;;  %v4375_v28 = vsub.f32 1.0, %v2359_v21 }
  0xfb   :  { %v2513_v23 = vmax.f32 %v4371_v39, 1e-30  ;;  %v2517_v24 = vmax.f32 %v4372_v45, 1e-30  ;;  %v1499_v6 = vpop.eup %1498  ;;  %v2521_v29 = vmax.f32 %v4373_v49, 1e-30  ;;  %1512 = vlog2.f32 %v481_v32 }
  0xfc   :  { %v2525_v31 = vmax.f32 %v4374_v0, 1e-30  ;;  %v1501_v50 = vpop.eup %1500  ;;  %v2531_v61 = vmax.f32 %v4375_v28, 1e-30  ;;  %v2533_v48 = vmax.f32 %v448_v63, 1e-30  ;;  %1514 = vlog2.f32 %v482_v55 }
  0xfd   :  { %v2535_v51 = vmax.f32 %v449_v59, 1e-30  ;;  %v1503_v34 = vpop.eup %1502  ;;  %v2537_v36 = vmax.f32 %v450_v60, 1e-30  ;;  %v2539_v39 = vmax.f32 %v451_v53, 1e-30  ;;  %1516 = vlog2.f32 %v483_v30 }
  0xfe   :  { %v2541_v38 = vmax.f32 %v452_v11, 1e-30  ;;  %v1505_v42 = vpop.eup %1504  ;;  %v2543_v57 = vmax.f32 %v453_v7, 1e-30  ;;  %v2546_v21 = vmul.f32 0.6931472, %v2288_v40  ;;  %1518 = vlog2.f32 %v484_v22 }
  0xff   :  { %v2549_v63 = vmul.f32 0.6931472, %v2303_v1  ;;  %v1507_v59 = vpop.eup %1506  ;;  %v2552_v32 = vmul.f32 0.6931472, %v2308_v13  ;;  %v2555_v53 = vmul.f32 0.6931472, %v2327_v43  ;;  %1520 = vlog2.f32 %v485_v37 }
 0x100   :  { %4376 = vst [vmem:[#allocation4_spill] sm:$0xff] %v2546_v21  ;;  %v2558_v60 = vmul.f32 0.6931472, %v2347_v26  ;;  %v1509_v11 = vpop.eup %1508  ;;  %v2561_v7 = vmul.f32 0.6931472, %v2364_v2  ;;  %1522 = vlog2.f32 %v486_v52 }
 0x101   :  { %4377 = vst [vmem:[#allocation5_spill] sm:$0xff] %v2549_v63  ;;  %v2564_v40 = vmul.f32 0.6931472, %v2380_v46  ;;  %v2567_v1 = vmul.f32 0.6931472, %v2396_v56  ;;  %v1511_v13 = vpop.eup %1510  ;;  %1524 = vlog2.f32 %v487_v58 }
 0x102   :  { %4378 = vst [vmem:[#allocation6_spill] sm:$0xff] %v2552_v32  ;;  %v2570_v55 = vmul.f32 0.6931472, %v2412_v16  ;;  %v2573_v43 = vmul.f32 0.6931472, %v2423_v47  ;;  %v1513_v2 = vpop.eup %1512  ;;  %1526 = vlog2.f32 %v488_v8  ;;  %v4224_v8 = vsub.f32 0.0, %v2546_v21 }
 0x103   :  { %4379 = vst [vmem:[#allocation7_spill] sm:$0xff] %v2555_v53  ;;  %v2576_v26 = vmul.f32 0.6931472, %v2429_v35  ;;  %v2579_v30 = vmul.f32 0.6931472, %v2435_v5  ;;  %v1515_v16 = vpop.eup %1514  ;;  %1528 = vlog2.f32 %v2477_v9 }
 0x104   :  { %4380 = vst [vmem:[#allocation8_spill] sm:$0xff] %v2558_v60  ;;  %v2582_v46 = vmul.f32 0.6931472, %v2441_v17  ;;  %v2585_v56 = vmul.f32 0.6931472, %v2449_v41  ;;  %v1517_v37 = vpop.eup %1516  ;;  %1530 = vlog2.f32 %v2481_v25 }
 0x105   :  { %4381 = vst [vmem:[#allocation9_spill] sm:$0xff] %v2561_v7  ;;  %v2588_v22 = vmul.f32 0.6931472, %v2457_v4  ;;  %v2591_v47 = vmul.f32 0.6931472, %v2465_v10  ;;  %v1519_v41 = vpop.eup %1518  ;;  %1532 = vlog2.f32 %v2485_v14 }
 0x106   :  { %4382 = vst [vmem:[#allocation10_spill] sm:$0xff] %v2564_v40  ;;  %v2593_v35 = vmul.f32 0.6931472, %v1491_v15  ;;  %v2595_v5 = vmul.f32 0.6931472, %v1493_v20  ;;  %v1521_v10 = vpop.eup %1520  ;;  %1534 = vlog2.f32 %v2489_v62  ;;  %v4429_v20 = vsub.f32 0.0, %v2555_v53 }
 0x107   :  { %4383 = vst [vmem:[#allocation11_spill] sm:$0xff] %v2567_v1  ;;  %v2597_v52 = vmul.f32 0.6931472, %v1495_v54  ;;  %v2599_v17 = vmul.f32 0.6931472, %v1497_v33  ;;  %v1523_v54 = vpop.eup %1522  ;;  %1536 = vlog2.f32 %v2493_v44 }
 0x108   :  { %4384 = vst [vmem:[#allocation12_spill] sm:$0xff] %v2570_v55  ;;  %v2602_v58 = vmul.f32 0.6931472, %v1499_v6  ;;  %v2604_v4 = vmul.f32 0.6931472, %v1501_v50  ;;  %v1525_v49 = vpop.eup %1524  ;;  %1538 = vlog2.f32 %v2497_v3 }
 0x109   :  { %4385 = vst [vmem:[#allocation13_spill] sm:$0xff] %v2573_v43  ;;  %v2606_v45 = vmul.f32 0.6931472, %v1503_v34  ;;  %v2609_v15 = vmul.f32 0.6931472, %v1505_v42  ;;  %v1527_v50 = vpop.eup %1526  ;;  %1540 = vlog2.f32 %v2501_v18 }
 0x10a   :  { %4386 = vst [vmem:[#allocation14_spill] sm:$0xff] %v2576_v26  ;;  %v2614_v9 = vmul.f32 0.6931472, %v1507_v59  ;;  %v2619_v25 = vmul.f32 0.6931472, %v1509_v11  ;;  %v1529_v42 = vpop.eup %1528  ;;  %1542 = vlog2.f32 %v2505_v19 }
 0x10b   :  { %4387 = vst [vmem:[#allocation15_spill] sm:$0xff] %v2579_v30  ;;  %v2624_v28 = vmul.f32 0.6931472, %v1511_v13  ;;  %v2629_v59 = vmul.f32 0.6931472, %v1513_v2  ;;  %v1531_v14 = vpop.eup %1530  ;;  %1544 = vlog2.f32 %v2509_v27 }
 0x10c   :  { %4388 = vst [vmem:[#allocation16_spill] sm:$0xff] %v2582_v46  ;;  %v2634_v0 = vmul.f32 0.6931472, %v1515_v16  ;;  %v1533_v62 = vpop.eup %1532  ;;  %v2639_v34 = vmul.f32 0.6931472, %v1517_v37  ;;  %1546 = vlog2.f32 %v2513_v23 }
 0x10d   :  { %4389 = vst [vmem:[#allocation17_spill] sm:$0xff] %v2585_v56  ;;  %v1535_v44 = vpop.eup %1534  ;;  %v2644_v11 = vmul.f32 0.6931472, %v1519_v41  ;;  %v2649_v13 = vmul.f32 0.6931472, %v1521_v10  ;;  %1548 = vlog2.f32 %v2517_v24 }
 0x10e   :  { %4390 = vst [vmem:[#allocation18_spill] sm:$0xff] %v2588_v22  ;;  %v1537_v3 = vpop.eup %1536  ;;  %v2654_v2 = vmul.f32 0.6931472, %v1523_v54  ;;  %1550 = vlog2.f32 %v2521_v29  ;;  %v2659_v16 = vmul.f32 0.6931472, %v1525_v49 }
 0x10f   :  { %4391 = vst [vmem:[#allocation19_spill] sm:$0xff] %v2591_v47  ;;  %v1539_v18 = vpop.eup %1538  ;;  %1552 = vlog2.f32 %v2525_v31  ;;  %v2664_v37 = vmul.f32 0.6931472, %v1527_v50  ;;  %v2669_v41 = vmul.f32 0.6931472, %v1529_v42 }
 0x110   :  { %4392 = vst [vmem:[#allocation20_spill] sm:$0xff] %v2593_v35  ;;  %v1541_v19 = vpop.eup %1540  ;;  %1554 = vlog2.f32 %v2527_v12  ;;  %v2674_v10 = vmul.f32 0.6931472, %v1531_v14  ;;  %v2679_v54 = vmul.f32 0.6931472, %v1533_v62 }
 0x111   :  { %4393 = vst [vmem:[#allocation21_spill] sm:$0xff] %v2595_v5  ;;  %v1543_v27 = vpop.eup %1542  ;;  %1556 = vlog2.f32 %v2531_v61  ;;  %v2684_v49 = vmul.f32 0.6931472, %v1535_v44  ;;  %v2689_v50 = vmul.f32 0.6931472, %v1537_v3 }
 0x112   :  { %4394 = vst [vmem:[#allocation22_spill] sm:$0xff] %v2597_v52  ;;  %v1545_v23 = vpop.eup %1544  ;;  %1558 = vlog2.f32 %v2533_v48  ;;  %v2694_v42 = vmul.f32 0.6931472, %v1539_v18  ;;  %v2696_v44 = vmul.f32 0.6931472, %v1541_v19  ;;  %v4427_v18 = vsub.f32 0.0, %v2552_v32 }
 0x113   :  { %4395 = vst [vmem:[#allocation23_spill] sm:$0xff] %v2599_v17  ;;  %v1547_v24 = vpop.eup %1546  ;;  %1560 = vlog2.f32 %v2535_v51  ;;  %v2698_v6 = vmul.f32 0.6931472, %v1543_v27  ;;  %v2701_v14 = vmul.f32 0.6931472, %v1545_v23 }
 0x114   :  { %4396 = vst [vmem:[#allocation24_spill] sm:$0xff] %v2602_v58  ;;  %v1549_v29 = vpop.eup %1548  ;;  %1562 = vlog2.f32 %v2537_v36  ;;  %v2703_v3 = vmul.f32 0.6931472, %v1547_v24  ;;  %v742_v19 = vmax.f32 %v4224_v8, 1e-38  ;;  %v4424_v24 = vsub.f32 0.0, %v2549_v63 }
 0x115   :  { %4397 = vst [vmem:[#allocation25_spill] sm:$0xff] %v2604_v4  ;;  %v1551_v31 = vpop.eup %1550  ;;  %1564 = vlog2.f32 %v2539_v39  ;;  %v2705_v48 = vmul.f32 0.6931472, %v1549_v29  ;;  %v744_v62 = vmax.f32 %v4427_v18, 1e-38 }
 0x116   :  { %4398 = vst [vmem:[#allocation26_spill] sm:$0xff] %v2606_v45  ;;  %v1553_v12 = vpop.eup %1552  ;;  %1566 = vlog2.f32 %v2541_v38  ;;  %v2712_v38 = vmul.f32 0.6931472, %v1551_v31  ;;  %v743_v29 = vmax.f32 %v4424_v24, 1e-38 }
 0x117   :  { %4399 = vst [vmem:[#allocation27_spill] sm:$0xff] %v2609_v15  ;;  %v1555_v61 = vpop.eup %1554  ;;  %1568 = vlog2.f32 %v2543_v57  ;;  %v2714_v23 = vmul.f32 0.6931472, %v1553_v12 }
 0x118   :  { %4400 = vst [vmem:[#allocation28_spill] sm:$0xff] %v2614_v9  ;;  %v1557_v36 = vpop.eup %1556  ;;  %1570 = vlog2.f32 %v742_v19 }
 0x119   :  { %4401 = vst [vmem:[#allocation29_spill] sm:$0xff] %v2619_v25  ;;  %v1559_v39 = vpop.eup %1558  ;;  %v2730_v57 = vmul.f32 0.6931472, %v1557_v36  ;;  %1572 = vlog2.f32 %v743_v29  ;;  %v4442_v29 = vsub.f32 0.0, %v2576_v26  ;;  %v4444_v26 = vsub.f32 0.0, %v2582_v46 }
 0x11a   :  { %4402 = vst [vmem:[#allocation30_spill] sm:$0xff] %v2624_v28  ;;  %v1561_v51 = vpop.eup %1560  ;;  %v2734_v8 = vmul.f32 0.6931472, %v1559_v39  ;;  %v4435_v39 = vsub.f32 0.0, %v2561_v7  ;;  %1574 = vlog2.f32 %v744_v62  ;;  %v4449_v62 = vsub.f32 0.0, %v2595_v5 }
 0x11b   :  { %4403 = vst [vmem:[#allocation31_spill] sm:$0xff] %v2629_v59  ;;  %v1563_v33 = vpop.eup %1562  ;;  %v2740_v63 = vmul.f32 0.6931472, %v1561_v51  ;;  %v4437_v51 = vsub.f32 0.0, %v2564_v40 }
 0x11c   :  { %4404 = vst [vmem:[#allocation32_spill] sm:$0xff] %v2634_v0  ;;  %v1565_v27 = vpop.eup %1564  ;;  %v2742_v24 = vmul.f32 0.6931472, %v1563_v33  ;;  %v747_v31 = vmax.f32 %v4435_v39, 1e-38 }
 0x11d   :  { %4405 = vst [vmem:[#allocation33_spill] sm:$0xff] %v2639_v34  ;;  %v2746_v32 = vmul.f32 0.6931472, %v1565_v27  ;;  %v748_v33 = vmax.f32 %v4437_v51, 1e-38  ;;  %v4438_v27 = vsub.f32 0.0, %v2567_v1 }
 0x11e   :  { %4406 = vst [vmem:[#allocation34_spill] sm:$0xff] %v2644_v11  ;;  %v4440_v51 = vsub.f32 0.0, %v2573_v43  ;;  %v752_v1 = vmax.f32 %v4442_v29, 1e-38  ;;  %v754_v29 = vmax.f32 %v4444_v26, 1e-38 }
 0x11f   :  { %4407 = vst [vmem:[#allocation35_spill] sm:$0xff] %v2649_v13  ;;  %v4448_v26 = vsub.f32 0.0, %v2593_v35  ;;  %v4454_v35 = vsub.f32 0.0, %v2606_v45  ;;  %v4459_v45 = vsub.f32 0.0, %v2629_v59 }
 0x120   :  { %4408 = vst [vmem:[#allocation36_spill] sm:$0xff] %v2654_v2 }
 0x121   :  { %4409 = vst [vmem:[#allocation37_spill] sm:$0xff] %v2659_v16 }
 0x122   :  { %4410 = vst [vmem:[#allocation38_spill] sm:$0xff] %v2664_v37 }
 0x123   :  { %4411 = vst [vmem:[#allocation39_spill] sm:$0xff] %v2669_v41 }
 0x124   :  { %4412 = vst [vmem:[#allocation40_spill] sm:$0xff] %v2674_v10 }
 0x125   :  { %4413 = vst [vmem:[#allocation41_spill] sm:$0xff] %v2679_v54 }
 0x126   :  { %4414 = vst [vmem:[#allocation42_spill] sm:$0xff] %v2684_v49  ;;  %v2728_v49 = vmul.f32 0.6931472, %v1555_v61  ;;  %v4432_v61 = vsub.f32 0.0, %v2558_v60  ;;  %v751_v60 = vmax.f32 %v4440_v51, 1e-38 }
 0x127   :  { %4415 = vst [vmem:[#allocation43_spill] sm:$0xff] %v2689_v50  ;;  %v1567_v50 = vpop.eup %1566 }
 0x128   :  { %4416 = vst [vmem:[#allocation44_spill] sm:$0xff] %v2694_v42  ;;  %v1569_v21 = vpop.eup %1568  ;;  %v746_v36 = vmax.f32 %v4432_v61, 1e-38  ;;  %v2748_v18 = vmul.f32 0.6931472, %v1567_v50  ;;  %v4447_v61 = vsub.f32 0.0, %v2591_v47 }
 0x129   :  { %4417 = vst [vmem:[#allocation45_spill] sm:$0xff] %v2696_v44  ;;  %v2752_v12 = vmul.f32 0.6931472, %v1569_v21  ;;  %v749_v50 = vmax.f32 %v4438_v27, 1e-38  ;;  %v4439_v21 = vsub.f32 0.0, %v2570_v55  ;;  %v2769_v19 = vpop.eup %1570 }
 0x12a   :  { %4418 = vst [vmem:[#allocation46_spill] sm:$0xff] %v2698_v6  ;;  %v4441_v27 = vld [vmem:[#allocation2_spill] sm:$0xff]  ;;  %v757_v46 = vmax.f32 %v4447_v61, 1e-38  ;;  %v4452_v61 = vsub.f32 0.0, %v2602_v58 }
 0x12b   :  { %4419 = vst [vmem:[#allocation47_spill] sm:$0xff] %v2701_v14  ;;  %v750_v39 = vmax.f32 %v4439_v21, 1e-38  ;;  %v2775_v21 = vpop.eup %1572 }
 0x12c   :  { %4420 = vst [vmem:[#allocation48_spill] sm:$0xff] %v2703_v3  ;;  %v762_v47 = vmax.f32 %v4452_v61, 1e-38 }
 0x12d   :  { %4421 = vst [vmem:[#allocation49_spill] sm:$0xff] %v2705_v48  ;;  %v745_v48 = vmax.f32 %v4429_v20, 1e-38  ;;  %v4443_v20 = vsub.f32 0.0, %v2579_v30  ;;  %v4445_v30 = vsub.f32 0.0, %v2585_v56  ;;  %v4451_v56 = vsub.f32 0.0, %v2599_v17 }
 0x12e   :  { %4422 = vst [vmem:[#allocation50_spill] sm:$0xff] %v2712_v38  ;;  %v4457_v17 = vsub.f32 0.0, %v2619_v25 }
 0x12f   :  { %4423 = vst [vmem:[#allocation51_spill] sm:$0xff] %v2714_v23  ;;  %1576 = vlog2.f32 %v745_v48  ;;  %v753_v51 = vmax.f32 %v4443_v20, 1e-38  ;;  %v755_v20 = vmax.f32 %v4445_v30, 1e-38  ;;  %v4446_v48 = vsub.f32 0.0, %v2588_v22 }
 0x130   :  { %4425 = vst [vmem:[#allocation52_spill] sm:$0xff] %v2728_v49  ;;  %1578 = vlog2.f32 %v746_v36  ;;  %v759_v36 = vmax.f32 %v4449_v62, 1e-38  ;;  %v4450_v30 = vsub.f32 0.0, %v2597_v52  ;;  %v761_v40 = vmax.f32 %v4451_v56, 1e-38 }
 0x131   :  { %4426 = vst [vmem:[#allocation53_spill] sm:$0xff] %v2730_v57  ;;  %1580 = vlog2.f32 %v747_v31  ;;  %v2781_v31 = vpop.eup %1574  ;;  %v756_v43 = vmax.f32 %v4446_v48, 1e-38  ;;  %v764_v22 = vmax.f32 %v4454_v35, 1e-38  ;;  %v4456_v56 = vsub.f32 0.0, %v2614_v9 }
 0x132   :  { %4428 = vst [vmem:[#allocation54_spill] sm:$0xff] %v2734_v8  ;;  %1582 = vlog2.f32 %v748_v33  ;;  %v767_v5 = vmax.f32 %v4457_v17, 1e-38  ;;  %v2829_v35 = vmax.f32 %v4459_v45, 1e-38  ;;  %v4462_v17 = vsub.f32 0.0, %v2644_v11 }
 0x133   :  { %4430 = vst [vmem:[#allocation55_spill] sm:$0xff] %v2740_v63  ;;  %1584 = vlog2.f32 %v749_v50 }
 0x134   :  { %4431 = vst [vmem:[#allocation56_spill] sm:$0xff] %v2742_v24  ;;  %1586 = vlog2.f32 %v750_v39  ;;  %v758_v39 = vmax.f32 %v4448_v26, 1e-38  ;;  %v4453_v26 = vsub.f32 0.0, %v2604_v4  ;;  %v4458_v4 = vsub.f32 0.0, %v2624_v28 }
 0x135   :  { %4433 = vst [vmem:[#allocation57_spill] sm:$0xff] %v2746_v32  ;;  %v2787_v33 = vpop.eup %1576  ;;  %1588 = vlog2.f32 %v751_v60  ;;  %v760_v60 = vmax.f32 %v4450_v30, 1e-38  ;;  %v4455_v30 = vsub.f32 0.0, %v2609_v15 }
 0x136   :  { %4434 = vst [vmem:[#allocation58_spill] sm:$0xff] %v2748_v18  ;;  %v2793_v50 = vpop.eup %1578  ;;  %1590 = vlog2.f32 %v752_v1  ;;  %v763_v1 = vmax.f32 %v4453_v26, 1e-38  ;;  %v768_v26 = vmax.f32 %v4458_v4, 1e-38  ;;  %v4463_v4 = vsub.f32 0.0, %v2649_v13 }
 0x137   :  { %4436 = vst [vmem:[#allocation59_spill] sm:$0xff] %v2752_v12  ;;  %v2801_v55 = vpop.eup %1580  ;;  %1592 = vlog2.f32 %v753_v51  ;;  %v765_v52 = vmax.f32 %v4455_v30, 1e-38  ;;  %v766_v51 = vmax.f32 %v4456_v56, 1e-38  ;;  %v4461_v56 = vsub.f32 0.0, %v2639_v34 }
 0x138   :  { %v2809_v48 = vpop.eup %1582  ;;  %1594 = vlog2.f32 %v754_v29  ;;  %v4460_v29 = vsub.f32 0.0, %v2634_v0  ;;  %v2845_v28 = vmax.f32 %v4463_v4, 1e-38  ;;  %v4464_v0 = vsub.f32 0.0, %v2654_v2 }
 0x139   :  { %v2817_v62 = vpop.eup %1584  ;;  %1596 = vlog2.f32 %v755_v20  ;;  %v2837_v9 = vmax.f32 %v4461_v56, 1e-38  ;;  %v2841_v20 = vmax.f32 %v4462_v17, 1e-38  ;;  %v4466_v56 = vsub.f32 0.0, %v2664_v37 }
 0x13a   :  { %v1587_v61 = vpop.eup %1586  ;;  %v2833_v58 = vmax.f32 %v4460_v29, 1e-38  ;;  %1598 = vlog2.f32 %v756_v43  ;;  %v2849_v29 = vmax.f32 %v4464_v0, 1e-38  ;;  %v4465_v43 = vsub.f32 0.0, %v2659_v16  ;;  %v4470_v16 = vld [vmem:[#allocation42_spill] sm:$0xff] }
 0x13b   :  { %v1589_v30 = vpop.eup %1588  ;;  %1600 = vlog2.f32 %v757_v46  ;;  %v2857_v34 = vmax.f32 %v4466_v56, 1e-38  ;;  %v4467_v13 = vsub.f32 0.0, %v2669_v41  ;;  %v4468_v46 = vsub.f32 0.0, %v2674_v10 }
 0x13c   :  { %v1591_v45 = vpop.eup %1590  ;;  %v2853_v59 = vmax.f32 %v4465_v43, 1e-38  ;;  %1602 = vlog2.f32 %v758_v39  ;;  %v4469_v0 = vsub.f32 0.0, %v2679_v54  ;;  %v4471_v37 = vsub.f32 0.0, %v4470_v16  ;;  %v4472_v39 = vld [vmem:[#allocation43_spill] sm:$0xff] }
 0x13d   :  { %v1593_v17 = vpop.eup %1592  ;;  %v2861_v4 = vmax.f32 %v4467_v13, 1e-38  ;;  %v2865_v11 = vmax.f32 %v4468_v46, 1e-38  ;;  %1604 = vlog2.f32 %v759_v36  ;;  %v4473_v25 = vsub.f32 0.0, %v4472_v39 }
 0x13e   :  { %v2869_v2 = vmax.f32 %v4469_v0, 1e-38  ;;  %v1595_v43 = vpop.eup %1594  ;;  %v2873_v56 = vmax.f32 %v4471_v37, 1e-38  ;;  %v4474_v13 = vsub.f32 0.0, %v2694_v42  ;;  %1606 = vlog2.f32 %v760_v60  ;;  %v4479_v60 = vld [vmem:[#allocation49_spill] sm:$0xff] }
 0x13f   :  { %v2877_v15 = vmax.f32 %v4473_v25, 1e-38  ;;  %v1597_v46 = vpop.eup %1596  ;;  %v4475_v54 = vsub.f32 0.0, %v2696_v44  ;;  %v4476_v36 = vsub.f32 0.0, %v2698_v6  ;;  %v4477_v37 = vsub.f32 0.0, %v2701_v14 }
 0x140   :  { %v2881_v41 = vmax.f32 %v4474_v13, 1e-38  ;;  %1608 = vlog2.f32 %v761_v40  ;;  %v1599_v25 = vpop.eup %1598  ;;  %v4478_v42 = vsub.f32 0.0, %v2703_v3  ;;  %v4480_v39 = vsub.f32 0.0, %v4479_v60 }
 0x141   :  { %v2885_v0 = vmax.f32 %v4475_v54, 1e-38  ;;  %v2889_v10 = vmax.f32 %v4476_v36, 1e-38  ;;  %v2893_v16 = vmax.f32 %v4477_v37, 1e-38  ;;  %1610 = vlog2.f32 %v762_v47  ;;  %v1601_v36 = vpop.eup %1600 }
 0x142   :  { %v2897_v13 = vmax.f32 %v4478_v42, 1e-38  ;;  %v2901_v7 = vmax.f32 %v4480_v39, 1e-38  ;;  %v4481_v54 = vsub.f32 0.0, %v2712_v38  ;;  %v4482_v14 = vsub.f32 0.0, %v2714_v23  ;;  %v1603_v39 = vpop.eup %1602 }
 0x143   :  { %v4483_v40 = vsub.f32 0.0, %v2728_v49  ;;  %v4484_v42 = vsub.f32 0.0, %v2730_v57  ;;  %1612 = vlog2.f32 %v763_v1  ;;  %v4485_v38 = vsub.f32 0.0, %v2734_v8 }
 0x144   :  { %v2905_v44 = vmax.f32 %v4481_v54, 1e-38  ;;  %v2909_v37 = vmax.f32 %v4482_v14, 1e-38  ;;  %v4486_v47 = vsub.f32 0.0, %v2740_v63  ;;  %v4487_v14 = vsub.f32 0.0, %v2742_v24 }
 0x145   :  { %v2913_v6 = vmax.f32 %v4483_v40, 1e-38  ;;  %v2917_v3 = vmax.f32 %v4484_v42, 1e-38  ;;  %v2921_v54 = vmax.f32 %v4485_v38, 1e-38  ;;  %1614 = vlog2.f32 %v764_v22  ;;  %v1605_v40 = vpop.eup %1604 }
 0x146   :  { %v2925_v60 = vmax.f32 %v4486_v47, 1e-38  ;;  %v2929_v23 = vmax.f32 %v4487_v14, 1e-38  ;;  %v4488_v57 = vsub.f32 0.0, %v2746_v32  ;;  %v4490_v1 = vsub.f32 0.0, %v2748_v18  ;;  %v1607_v47 = vpop.eup %1606 }
 0x147   :  { %v4492_v38 = vsub.f32 0.0, %v2752_v12  ;;  %1616 = vlog2.f32 %v765_v52  ;;  %v799_v24 = vmul.f32 0.6931472, %v2769_v19  ;;  %v801_v14 = vmul.f32 0.6931472, %v2775_v21  ;;  %v1609_v32 = vpop.eup %1608 }
 0x148   :  { %v2933_v42 = vmax.f32 %v4488_v57, 1e-38  ;;  %v2937_v49 = vmax.f32 %v4490_v1, 1e-38  ;;  %v803_v22 = vmul.f32 0.6931472, %v2781_v31  ;;  %1618 = vlog2.f32 %v766_v51 }
 0x149   :  { %v2941_v8 = vmax.f32 %v4492_v38, 1e-38  ;;  %v805_v57 = vmul.f32 0.6931472, %v2787_v33  ;;  %v807_v18 = vmul.f32 0.6931472, %v2793_v50  ;;  %1620 = vlog2.f32 %v767_v5  ;;  %v1611_v38 = vpop.eup %1610 }
 0x14a   :  { %4489 = vst [vmem:[#allocation2_spill] sm:$0xff] %v2933_v42  ;;  %v2949_v1 = vmul.f32 0.6931472, %v2801_v55  ;;  %v2952_v52 = vmul.f32 0.6931472, %v2809_v48  ;;  %1622 = vlog2.f32 %v768_v26  ;;  %v1613_v31 = vpop.eup %1612 }
 0x14b   :  { %4491 = vst [vmem:[#allocation60_spill] sm:$0xff] %v2937_v49  ;;  %v2955_v19 = vmul.f32 0.6931472, %v2817_v62  ;;  %v2957_v21 = vmul.f32 0.6931472, %v1587_v61  ;;  %1624 = vlog2.f32 %v2829_v35  ;;  %v1615_v55 = vpop.eup %1614 }
 0x14c   :  { %4493 = vst [vmem:[#allocation61_spill] sm:$0xff] %v2941_v8  ;;  %v2959_v51 = vmul.f32 0.6931472, %v1589_v30  ;;  %v2961_v33 = vmul.f32 0.6931472, %v1591_v45  ;;  %1626 = vlog2.f32 %v2833_v58 }
 0x14d   :  { %v2963_v50 = vmul.f32 0.6931472, %v1593_v17  ;;  %v2966_v5 = vmul.f32 0.6931472, %v1595_v43  ;;  %v2968_v48 = vmul.f32 0.6931472, %v1597_v46  ;;  %v1617_v62 = vpop.eup %1616  ;;  %1628 = vlog2.f32 %v2837_v9 }
 0x14e   :  { %v2970_v12 = vmul.f32 0.6931472, %v1599_v25  ;;  %v2973_v61 = vmul.f32 0.6931472, %v1601_v36  ;;  %v2975_v26 = vmul.f32 0.6931472, %v1603_v39  ;;  %v1619_v45 = vpop.eup %1618  ;;  %1630 = vlog2.f32 %v2841_v20 }
 0x14f   :  { %v2977_v30 = vmul.f32 0.6931472, %v1605_v40  ;;  %v2980_v35 = vmul.f32 0.6931472, %v1607_v47  ;;  %v2982_v17 = vmul.f32 0.6931472, %v1609_v32  ;;  %v1621_v46 = vpop.eup %1620  ;;  %1632 = vlog2.f32 %v2845_v28 }
 0x150   :  { %v2984_v43 = vmul.f32 0.6931472, %v1611_v38  ;;  %v2987_v58 = vmul.f32 0.6931472, %v1613_v31  ;;  %v2989_v25 = vmul.f32 0.6931472, %v1615_v55  ;;  %v1623_v39 = vpop.eup %1622  ;;  %1634 = vlog2.f32 %v2849_v29 }
 0x151   :  { %v910_v36 = vperm.slane %v4441_v27, 0  ;;  %v2993_v9 = vmul.f32 0.6931472, %v1617_v62  ;;  %v4494_v32 = vrot.slane %v4441_v27, 1  ;;  %v4495_v47 = vrot.slane %v4441_v27, 2  ;;  %v1625_v38 = vpop.eup %1624 }
 0x152   :  { %v3002_v31 = vmul.f32 0.6931472, %v1619_v45  ;;  %1636 = vlog2.f32 %v2853_v59  ;;  %v4496_v28 = vrot.slane %v4441_v27, 3  ;;  %v4497_v62 = vrot.slane %v4441_v27, 4  ;;  %v1627_v29 = vpop.eup %1626 }
 0x153   :  { %v911_v40 = vperm.slane %v4494_v32, 0  ;;  %v3000_v20 = vperm.slane %v4495_v47, 0  ;;  %v3013_v53 = vmul.f32 0.6931472, %v1621_v46  ;;  %1638 = vlog2.f32 %v2857_v34  ;;  %v1629_v8 = vpop.eup %1628 }
 0x154   :  { %v3007_v55 = vperm.slane %v4496_v28, 0  ;;  %v3011_v63 = vperm.slane %v4497_v62, 0  ;;  %v4498_v32 = vrot.slane %v4441_v27, 5  ;;  %v4499_v45 = vrot.slane %v4441_v27, 6  ;;  %v1631_v34 = vpop.eup %1630 }
 0x155   :  { %v3024_v28 = vmul.f32 0.6931472, %v1623_v39  ;;  %1640 = vlog2.f32 %v2861_v4  ;;  %v4501_v62 = vrot.slane %v4441_v27, 7  ;;  %v3031_v46 = vmul.f32 %v910_v36, %v799_v24 }
 0x156   :  { %v3018_v47 = vperm.slane %v4498_v32, 0  ;;  %v3022_v59 = vperm.slane %v4499_v45, 0  ;;  %v3033_v42 = vmul.f32 0.6931472, %v1625_v38  ;;  %1642 = vlog2.f32 %v2865_v11 }
 0x157   :  { %v3029_v49 = vperm.slane %v4501_v62, 0  ;;  %v3036_v32 = vmul.f32 %v910_v36, %v801_v14  ;;  %v3038_v45 = vmul.f32 %v910_v36, %v803_v22  ;;  %v3040_v39 = vmul.f32 0.6931472, %v1627_v29 }
 0x158   :  { %4500 = vst [vmem:[#allocation62_spill] sm:$0xff] %v3022_v59  ;;  %v1633_v59 = vpop.eup %1632  ;;  %1644 = vlog2.f32 %v2869_v2  ;;  %v3043_v4 = vmul.f32 %v910_v36, %v805_v57  ;;  %v3045_v27 = vmul.f32 %v910_v36, %v807_v18  ;;  %v857_v62 = vmul.f32 0.6931472, %v1629_v8 }
 0x159   :  { %v1635_v24 = vpop.eup %1634  ;;  %1646 = vlog2.f32 %v2873_v56  ;;  %v3049_v38 = vmul.f32 %v910_v36, %v2949_v1  ;;  %v3052_v11 = vmul.f32 %v910_v36, %v2952_v52  ;;  %v859_v22 = vmul.f32 0.6931472, %v1631_v34 }
 0x15a   :  { %v1637_v14 = vpop.eup %1636  ;;  %1648 = vlog2.f32 %v2877_v15  ;;  %v3056_v2 = vmul.f32 %v911_v40, %v2955_v19  ;;  %v3059_v18 = vmul.f32 %v911_v40, %v2957_v21  ;;  %v861_v8 = vmul.f32 0.6931472, %v1633_v59 }
 0x15b   :  { %v1639_v57 = vpop.eup %1638  ;;  %1650 = vlog2.f32 %v2881_v41  ;;  %v3063_v56 = vmul.f32 %v911_v40, %v2959_v51  ;;  %v3066_v1 = vmul.f32 %v911_v40, %v2961_v33  ;;  %v863_v36 = vmul.f32 0.6931472, %v1635_v24 }
 0x15c   :  { %v1641_v52 = vpop.eup %1640  ;;  %1652 = vlog2.f32 %v2885_v0  ;;  %v3070_v15 = vmul.f32 %v911_v40, %v2963_v50  ;;  %v3073_v19 = vmul.f32 %v911_v40, %v2966_v5  ;;  %v865_v29 = vmul.f32 0.6931472, %v1637_v14 }
 0x15d   :  { %v1643_v21 = vpop.eup %1642  ;;  %1654 = vlog2.f32 %v2889_v10  ;;  %v3077_v41 = vmul.f32 %v911_v40, %v2968_v48  ;;  %v3081_v51 = vmul.f32 %v3000_v20, %v2970_v12  ;;  %v867_v59 = vmul.f32 0.6931472, %v1639_v57 }
 0x15e   :  { %v1645_v33 = vpop.eup %1644  ;;  %1656 = vlog2.f32 %v2893_v16  ;;  %v3086_v0 = vmul.f32 %v3000_v20, %v2973_v61  ;;  %v3090_v50 = vmul.f32 %v3000_v20, %v2975_v26  ;;  %v869_v5 = vmul.f32 0.6931472, %v1641_v52 }
 0x15f   :  { %v1647_v10 = vpop.eup %1646  ;;  %1658 = vlog2.f32 %v2897_v13  ;;  %v3095_v12 = vmul.f32 %v3000_v20, %v2977_v30  ;;  %v3099_v48 = vmul.f32 %v3000_v20, %v2980_v35  ;;  %v871_v40 = vmul.f32 0.6931472, %v1643_v21 }
 0x160   :  { %v1649_v16 = vpop.eup %1648  ;;  %1660 = vlog2.f32 %v2901_v7  ;;  %v3104_v61 = vmul.f32 %v3000_v20, %v2982_v17  ;;  %v3108_v26 = vmul.f32 %v3000_v20, %v2984_v43  ;;  %v873_v34 = vmul.f32 0.6931472, %v1645_v33 }
 0x161   :  { %v1651_v13 = vpop.eup %1650  ;;  %1662 = vlog2.f32 %v2905_v44  ;;  %v3113_v30 = vmul.f32 %v3007_v55, %v2987_v58  ;;  %v3117_v35 = vmul.f32 %v3007_v55, %v2989_v25  ;;  %v875_v24 = vmul.f32 0.6931472, %v1647_v10  ;;  %v4502_v10 = vld [vmem:[#allocation2_spill] sm:$0xff] }
 0x162   :  { %v1653_v7 = vpop.eup %1652  ;;  %1664 = vlog2.f32 %v2909_v37  ;;  %v3122_v17 = vmul.f32 %v3007_v55, %v2993_v9  ;;  %v3126_v43 = vmul.f32 %v3007_v55, %v3002_v31  ;;  %v877_v20 = vmul.f32 0.6931472, %v1649_v16 }
 0x163   :  { %v1655_v44 = vpop.eup %1654  ;;  %1666 = vlog2.f32 %v2913_v6  ;;  %v3131_v58 = vmul.f32 %v3007_v55, %v3013_v53  ;;  %v3135_v25 = vmul.f32 %v3007_v55, %v3024_v28  ;;  %v879_v14 = vmul.f32 0.6931472, %v1651_v13  ;;  %v4503_v13 = vld [vmem:[#allocation60_spill] sm:$0xff] }
 0x164   :  { %v1657_v37 = vpop.eup %1656  ;;  %1668 = vlog2.f32 %v2917_v3  ;;  %v3140_v9 = vmul.f32 %v3007_v55, %v3033_v42  ;;  %v3144_v31 = vmul.f32 %v3011_v63, %v3040_v39  ;;  %v881_v57 = vmul.f32 0.6931472, %v1653_v7 }
 0x165   :  { %v1659_v6 = vpop.eup %1658  ;;  %1670 = vlog2.f32 %v2921_v54  ;;  %v3148_v53 = vmul.f32 %v3011_v63, %v857_v62  ;;  %v3151_v28 = vmul.f32 %v3011_v63, %v859_v22  ;;  %v883_v3 = vmul.f32 0.6931472, %v1655_v44 }
 0x166   :  { %v1661_v52 = vpop.eup %1660  ;;  %1672 = vlog2.f32 %v2925_v60  ;;  %v3155_v42 = vmul.f32 %v3011_v63, %v861_v8  ;;  %v3158_v55 = vmul.f32 %v3011_v63, %v863_v36  ;;  %v885_v21 = vmul.f32 0.6931472, %v1657_v37 }
 0x167   :  { %v1663_v39 = vpop.eup %1662  ;;  %1674 = vlog2.f32 %v2929_v23  ;;  %v3162_v54 = vmul.f32 %v3011_v63, %v865_v29  ;;  %v3165_v62 = vmul.f32 %v3011_v63, %v867_v59  ;;  %v887_v33 = vmul.f32 0.6931472, %v1659_v6  ;;  %v4504_v59 = vld [vmem:[#allocation61_spill] sm:$0xff] }
 0x168   :  { %v1665_v22 = vpop.eup %1664  ;;  %1676 = vlog2.f32 %v4502_v10  ;;  %v3169_v60 = vmul.f32 %v3018_v47, %v869_v5  ;;  %v982_v8 = vmul.f32 1.442695, %v3031_v46  ;;  %v889_v16 = vmul.f32 0.6931472, %v1661_v52 }
 0x169   :  { %v1667_v36 = vpop.eup %1666  ;;  %1678 = vlog2.f32 %v4503_v13  ;;  %v3174_v23 = vmul.f32 %v3018_v47, %v871_v40  ;;  %v984_v29 = vmul.f32 1.442695, %v3036_v32  ;;  %v3179_v7 = vmul.f32 %v3018_v47, %v873_v34 }
 0x16a   :  { %v1669_v63 = vpop.eup %1668  ;;  %1680 = vlog2.f32 %v4504_v59  ;;  %v3182_v5 = vmul.f32 %v3018_v47, %v875_v24  ;;  %v986_v46 = vmul.f32 1.442695, %v3038_v45  ;;  %v891_v37 = vmul.f32 0.6931472, %v1663_v39  ;;  %v4506_v59 = vld [vmem:[#allocation62_spill] sm:$0xff] }
 0x16b   :  { %v1671_v44 = vpop.eup %1670  ;;  %v3186_v6 = vmul.f32 %v3018_v47, %v877_v20  ;;  %v3189_v40 = vmul.f32 %v3018_v47, %v879_v14  ;;  %v988_v32 = vmul.f32 1.442695, %v3043_v4  ;;  %v893_v10 = vmul.f32 0.6931472, %v1665_v22 }
 0x16c   :  { %v1673_v52 = vpop.eup %1672  ;;  %v3193_v34 = vmul.f32 %v3018_v47, %v881_v57  ;;  %1682 = vpow2.f32 %v982_v8  ;;  %v990_v24 = vmul.f32 1.442695, %v3045_v27  ;;  %v895_v45 = vmul.f32 0.6931472, %v1667_v36 }
 0x16d   :  { %4505 = vst [vmem:[#allocation2_spill] sm:$0xff] %v3189_v40  ;;  %v1675_v13 = vpop.eup %1674  ;;  %v3197_v39 = vmul.f32 %v4506_v59, %v883_v3  ;;  %1684 = vpow2.f32 %v984_v29  ;;  %v992_v20 = vmul.f32 1.442695, %v3049_v38  ;;  %v3201_v40 = vmul.f32 %v4506_v59, %v885_v21 }
 0x16e   :  { %v1677_v14 = vpop.eup %1676  ;;  %v3204_v4 = vmul.f32 %v4506_v59, %v887_v33  ;;  %1686 = vpow2.f32 %v986_v46  ;;  %v994_v47 = vmul.f32 1.442695, %v3052_v11  ;;  %v897_v27 = vmul.f32 0.6931472, %v1669_v63 }
 0x16f   :  { %v1679_v57 = vpop.eup %1678  ;;  %v3208_v22 = vmul.f32 %v4506_v59, %v889_v16  ;;  %1688 = vpow2.f32 %v988_v32  ;;  %v996_v3 = vmul.f32 1.442695, %v3056_v2  ;;  %v3212_v38 = vmul.f32 %v4506_v59, %v891_v37 }
 0x170   :  { %v1681_v8 = vpop.eup %1680  ;;  %v3215_v21 = vmul.f32 %v4506_v59, %v893_v10  ;;  %1690 = vpow2.f32 %v990_v24  ;;  %v998_v33 = vmul.f32 1.442695, %v3059_v18  ;;  %v899_v36 = vmul.f32 0.6931472, %v1671_v44 }
 0x171   :  { %v901_v11 = vmul.f32 0.6931472, %v1673_v52  ;;  %1692 = vpow2.f32 %v992_v20  ;;  %v1000_v29 = vmul.f32 1.442695, %v3063_v56  ;;  %v903_v63 = vmul.f32 0.6931472, %v1675_v13 }
 0x172   :  { %v3219_v16 = vpop.eup %1682  ;;  %v905_v46 = vmul.f32 0.6931472, %v1677_v14  ;;  %1694 = vpow2.f32 %v994_v47  ;;  %v1002_v2 = vmul.f32 1.442695, %v3066_v1  ;;  %v907_v32 = vmul.f32 0.6931472, %v1679_v57 }
 0x173   :  { %v3222_v37 = vpop.eup %1684  ;;  %v909_v10 = vmul.f32 0.6931472, %v1681_v8  ;;  %1696 = vpow2.f32 %v996_v3  ;;  %v1004_v24 = vmul.f32 1.442695, %v3070_v15  ;;  %v3228_v44 = vmul.f32 %v4506_v59, %v895_v45 }
 0x174   :  { %v3225_v18 = vpop.eup %1686  ;;  %v3231_v56 = vmul.f32 %v3029_v49, %v897_v27  ;;  %1698 = vpow2.f32 %v998_v33  ;;  %v1006_v52 = vmul.f32 1.442695, %v3073_v19  ;;  %v3237_v1 = vmul.f32 %v3029_v49, %v899_v36 }
 0x175   :  { %v3234_v13 = vpop.eup %1688  ;;  %v3240_v20 = vmul.f32 %v3029_v49, %v901_v11  ;;  %1700 = vpow2.f32 %v1000_v29  ;;  %v1008_v15 = vmul.f32 1.442695, %v3077_v41  ;;  %v3246_v45 = vmul.f32 %v3029_v49, %v903_v63 }
 0x176   :  { %v3243_v14 = vpop.eup %1690  ;;  %v3249_v59 = vmul.f32 %v3029_v49, %v905_v46  ;;  %1702 = vpow2.f32 %v1002_v2  ;;  %v1010_v19 = vmul.f32 1.442695, %v3081_v51  ;;  %v3255_v57 = vmul.f32 %v3029_v49, %v907_v32 }
 0x177   :  { %v3252_v47 = vpop.eup %1692  ;;  %v3258_v27 = vmul.f32 %v3029_v49, %v909_v10  ;;  %1704 = vpow2.f32 %v1004_v24  ;;  %v1012_v41 = vmul.f32 1.442695, %v3086_v0  ;;  %v1014_v8 = vmul.f32 1.442695, %v3090_v50  ;;  %v4507_v0 = vld [vmem:[#allocation4_spill] sm:$0xff]  ;;  %v4511_v50 = vld [vmem:[#allocation5_spill] sm:$0xff] }
 0x178   :  { %v3261_v3 = vpop.eup %1694  ;;  %1706 = vpow2.f32 %v1006_v52  ;;  %v1016_v33 = vmul.f32 1.442695, %v3095_v12  ;;  %v1018_v51 = vmul.f32 1.442695, %v3099_v48  ;;  %v1020_v11 = vmul.f32 1.442695, %v3104_v61 }
 0x179   :  { %v3266_v36 = vpop.eup %1696  ;;  %1708 = vpow2.f32 %v1008_v15  ;;  %v1022_v49 = vmul.f32 1.442695, %v3108_v26  ;;  %v1024_v29 = vmul.f32 1.442695, %v3113_v30  ;;  %v4508_v46 = vsub.f32 0.0, %v4507_v0  ;;  %v4516_v10 = vld [vmem:[#allocation6_spill] sm:$0xff] }
 0x17a   :  { %v3271_v63 = vpop.eup %1698  ;;  %v4512_v12 = vsub.f32 0.0, %v4511_v50  ;;  %1710 = vpow2.f32 %v1010_v19  ;;  %v1026_v61 = vmul.f32 1.442695, %v3117_v35  ;;  %v1028_v26 = vmul.f32 1.442695, %v3122_v17  ;;  %v4520_v15 = vld [vmem:[#allocation7_spill] sm:$0xff] }
 0x17b   :  { %vm3275_vm10 = vcmp.gt.f32.partialorder %v4508_v46, 0.0  ;;  %v3288_v30 = vmul.f32 1.442695, %v3126_v43  ;;  %v3290_v32 = vpop.eup %1700  ;;  %v4517_v24 = vsub.f32 0.0, %v4516_v10  ;;  %v4521_v0 = vsub.f32 0.0, %v4520_v15  ;;  %v4524_v35 = vld [vmem:[#allocation8_spill] sm:$0xff] }
 0x17c   :  { %vm3281_vm11 = vcmp.gt.f32.partialorder %v4512_v12, 0.0  ;;  %4515 = vst [vmem:[#allocation60_spill] sm:$0xff] %v3290_v32  ;;  %v4525_v19 = vsub.f32 0.0, %v4524_v35  ;;  %1712 = vpow2.f32 %v1012_v41  ;;  %v3311_v43 = vmul.f32 1.442695, %v3131_v58  ;;  %v3319_v10 = vpop.eup %1702  ;;  %v4533_v35 = vld [vmem:[#allocation10_spill] sm:$0xff] }
 0x17d   :  { %vm3294_vm12 = vcmp.gt.f32.partialorder %v4517_v24, 0.0  ;;  %vm3300_vm13 = vcmp.gt.f32.partialorder %v4521_v0, 0.0  ;;  %v3314_v50 = vmul.f32 1.442695, %v3135_v25  ;;  %v3317_v12 = vmul.f32 1.442695, %v3140_v9 }
 0x17e   :  { %vm3306_vm14 = vcmp.gt.f32.partialorder %v4525_v19, 0.0  ;;  %4528 = vst [vmem:[#allocation61_spill] sm:$0xff] %v3319_v10  ;;  %v4529_v24 = vld [vmem:[#allocation9_spill] sm:$0xff]  ;;  %v4534_v19 = vsub.f32 0.0, %v4533_v35  ;;  %v4537_v58 = vld [vmem:[#allocation11_spill] sm:$0xff]  ;;  %1714 = vpow2.f32 %v1014_v8  ;;  %v3348_v35 = vpop.eup %1704  ;;  %v4623_v46 = vld [vmem:[#allocation26_spill] sm:$0xff] }
 0x17f   :  { %v4530_v15 = vsub.f32 0.0, %v4529_v24  ;;  %v4538_v25 = vsub.f32 0.0, %v4537_v58  ;;  %v3340_v9 = vmul.f32 1.442695, %v3144_v31  ;;  %v3343_v24 = vmul.f32 1.442695, %v3148_v53 }
 0x180   :  { %vm3329_vm2 = vcmp.gt.f32.partialorder %v4534_v19, 0.0  ;;  %4542 = vst [vmem:[#allocation4_spill] sm:$0xff] %v3348_v35  ;;  %v4543_v19 = vld [vmem:[#allocation12_spill] sm:$0xff]  ;;  %1716 = vpow2.f32 %v1016_v33  ;;  %v3357_v8 = vmul.f32 1.442695, %v3155_v42  ;;  %v4618_v48 = vld [vmem:[#allocation25_spill] sm:$0xff] }
 0x181   :  { %vm3323_vm15 = vcmp.gt.f32.partialorder %v4530_v15, 0.0  ;;  %vm3335_vm3 = vcmp.gt.f32.partialorder %v4538_v25, 0.0  ;;  %v3346_v15 = vmul.f32 1.442695, %v3151_v28  ;;  %v4544_v10 = vsub.f32 0.0, %v4543_v19  ;;  %v3365_v28 = vpop.eup %1706  ;;  %v4549_v25 = vld [vmem:[#allocation13_spill] sm:$0xff] }
 0x182   :  { %v3360_v31 = vmul.f32 1.442695, %v3158_v55  ;;  %v3363_v53 = vmul.f32 1.442695, %v3162_v54  ;;  %v4550_v35 = vsub.f32 0.0, %v4549_v25  ;;  %1718 = vpow2.f32 %v1018_v51  ;;  %v4559_v25 = vld [vmem:[#allocation15_spill] sm:$0xff] }
 0x183   :  { %4541 = vst [vmem:[#allocation62_spill] sm:$0xff] %v3346_v15  ;;  %vm3352_vm4 = vcmp.gt.f32.partialorder %v4544_v10, 0.0  ;;  %v4553_v10 = vld [vmem:[#allocation14_spill] sm:$0xff]  ;;  %v3380_v42 = vmul.f32 1.442695, %v3165_v62  ;;  %1720 = vpow2.f32 %v1020_v11  ;;  %v4575_v11 = vmov 0 }
 0x184   :  { %4547 = vst [vmem:[#allocation5_spill] sm:$0xff] %v3360_v31  ;;  %vm3369_vm5 = vcmp.gt.f32.partialorder %v4550_v35, 0.0  ;;  %v4554_v15 = vsub.f32 0.0, %v4553_v10  ;;  %v3383_v55 = vmul.f32 1.442695, %v3169_v60  ;;  %v3388_v35 = vpop.eup %1708  ;;  %1722 = vpow2.f32 %v1022_v49  ;;  %v4644_v33 = vld [vmem:[#allocation29_spill] sm:$0xff] }
 0x185   :  { %4548 = vst [vmem:[#allocation6_spill] sm:$0xff] %v3363_v53  ;;  %v3386_v54 = vmul.f32 1.442695, %v3174_v23  ;;  %v4560_v53 = vsub.f32 0.0, %v4559_v25  ;;  %v3403_v62 = vmul.f32 1.442695, %v3179_v7  ;;  %1724 = vpow2.f32 %v1024_v29 }
 0x186   :  { %vm3375_vm6 = vcmp.gt.f32.partialorder %v4554_v15, 0.0  ;;  %4557 = vst [vmem:[#allocation7_spill] sm:$0xff] %v3383_v55  ;;  %v4563_v15 = vld [vmem:[#allocation16_spill] sm:$0xff]  ;;  %v3406_v60 = vmul.f32 1.442695, %v3182_v5  ;;  %v4569_v25 = vld [vmem:[#allocation17_spill] sm:$0xff]  ;;  %1726 = vpow2.f32 %v1026_v61 }
 0x187   :  { %4558 = vst [vmem:[#allocation8_spill] sm:$0xff] %v3386_v54  ;;  %vm3392_vm7 = vcmp.gt.f32.partialorder %v4560_v53, 0.0  ;;  %v4564_v31 = vsub.f32 0.0, %v4563_v15  ;;  %v3409_v23 = vmul.f32 1.442695, %v3186_v6  ;;  %v3411_v53 = vpop.eup %1710  ;;  %v4570_v54 = vsub.f32 0.0, %v4569_v25 }
 0x188   :  { %4567 = vst [vmem:[#allocation9_spill] sm:$0xff] %v3406_v60  ;;  %v4571_v15 = vmov 0  ;;  %v4577_v7 = vld [vmem:[#allocation2_spill] sm:$0xff]  ;;  %v3429_v6 = vmul.f32 1.442695, %v3193_v34  ;;  %v4580_v25 = vld [vmem:[#allocation19_spill] sm:$0xff]  ;;  %1728 = vpow2.f32 %v1028_v26 }
 0x189   :  { %vm3398_vm8 = vcmp.gt.f32.partialorder %v4564_v31, 0.0  ;;  %4568 = vst [vmem:[#allocation10_spill] sm:$0xff] %v3409_v23  ;;  %vm3415_vm9 = vcmp.gt.f32.partialorder %v4570_v54, 0.0  ;;  %v4573_v31 = vld [vmem:[#allocation18_spill] sm:$0xff]  ;;  %v3426_v5 = vmul.f32 1.442695, %v4577_v7  ;;  %v3434_v54 = vpop.eup %1712  ;;  %1730 = vpow2.f32 %v3288_v30 }
 0x18a   :  { %v4572_v15 = vsel %vm3415_vm9, 4294967295, %v4571_v15  ;;  %v4574_v55 = vsub.f32 0.0, %v4573_v31  ;;  %4578 = vst [vmem:[#allocation11_spill] sm:$0xff] %v3429_v6  ;;  %v3432_v23 = vmul.f32 1.442695, %v3197_v39  ;;  %v4581_v60 = vsub.f32 0.0, %v4580_v25  ;;  %v3451_v39 = vpop.eup %1714 }
 0x18b   :  { %v4582_v31 = vmov 0  ;;  %v3443_v49 = vmul.f32 1.442695, %v3201_v40  ;;  %v3449_v34 = vmul.f32 1.442695, %v3208_v22  ;;  %v4585_v7 = vld [vmem:[#allocation20_spill] sm:$0xff]  ;;  %1732 = vpow2.f32 %v3311_v43 }
 0x18c   :  { %vm3421_vm1 = vcmp.gt.f32.partialorder %v4574_v55, 0.0  ;;  %4579 = vst [vmem:[#allocation12_spill] sm:$0xff] %v3432_v23  ;;  %vm3438_vm0 = vcmp.gt.f32.partialorder %v4581_v60, 0.0  ;;  %v3446_v55 = vmul.f32 1.442695, %v3204_v4  ;;  %v4586_v23 = vsub.f32 0.0, %v4585_v7 }
 0x18d   :  { %v4576_v11 = vsel %vm3421_vm1, 4294967295, %v4575_v11  ;;  %v4583_v31 = vsel %vm3438_vm0, 4294967295, %v4582_v31  ;;  %4584 = vst [vmem:[#allocation13_spill] sm:$0xff] %v3449_v34  ;;  %v4587_v25 = vmov 0  ;;  %v4589_v60 = vld [vmem:[#allocation21_spill] sm:$0xff]  ;;  %v4591_v29 = vmov 0 }
 0x18e   :  { %vm3455_vm1 = vcmp.gt.f32.partialorder %v4586_v23, 0.0  ;;  %v4590_v6 = vsub.f32 0.0, %v4589_v60  ;;  %v3466_v40 = vmul.f32 1.442695, %v3212_v38  ;;  %v3469_v4 = vmul.f32 1.442695, %v3215_v21  ;;  %v3474_v23 = vpop.eup %1716 }
 0x18f   :  { %v4588_v25 = vsel %vm3455_vm1, 4294967295, %v4587_v25  ;;  %v3472_v22 = vmul.f32 1.442695, %v3228_v44  ;;  %v4593_v7 = vld [vmem:[#allocation22_spill] sm:$0xff]  ;;  %v4595_v60 = vmov 0  ;;  %v3491_v44 = vpop.eup %1718  ;;  %1734 = vpow2.f32 %v3314_v50 }
 0x190   :  { %vm3461_vm0 = vcmp.gt.f32.partialorder %v4590_v6, 0.0  ;;  %v4594_v34 = vsub.f32 0.0, %v4593_v7  ;;  %v3483_v61 = vmul.f32 1.442695, %v3231_v56  ;;  %v3486_v38 = vmul.f32 1.442695, %v3237_v1  ;;  %v3503_v56 = vpop.eup %1720 }
 0x191   :  { %v4592_v29 = vsel %vm3461_vm0, 4294967295, %v4591_v29  ;;  %v3489_v21 = vmul.f32 1.442695, %v3240_v20  ;;  %4600 = vst [vmem:[#allocation17_spill] sm:$0xff] %v3491_v44  ;;  %v3495_v6 = vmul.f32 1.442695, %v3246_v45  ;;  %1736 = vpow2.f32 %v3317_v12 }
 0x192   :  { %vm3478_vm1 = vcmp.gt.f32.partialorder %v4594_v34, 0.0  ;;  %4597 = vst [vmem:[#allocation14_spill] sm:$0xff] %v3483_v61  ;;  %v3498_v34 = vmul.f32 1.442695, %v3249_v59  ;;  %v3501_v26 = vmul.f32 1.442695, %v3255_v57  ;;  %v3521_v57 = vpop.eup %1722  ;;  %1738 = vpow2.f32 %v3340_v9 }
 0x193   :  { %v4596_v60 = vsel %vm3478_vm1, 4294967295, %v4595_v60  ;;  %4598 = vst [vmem:[#allocation15_spill] sm:$0xff] %v3486_v38  ;;  %v4605_v1 = vld [vmem:[#allocation23_spill] sm:$0xff]  ;;  %v4607_v20 = vmov 0  ;;  %v3513_v30 = vmul.f32 1.442695, %v3258_v27  ;;  %v3539_v2 = vpop.eup %1724  ;;  %1740 = vpow2.f32 %v3343_v24 }
 0x194   :  { %4599 = vst [vmem:[#allocation16_spill] sm:$0xff] %v3489_v21  ;;  %v4606_v7 = vsub.f32 0.0, %v4605_v1  ;;  %v1094_v45 = vsel %vm3275_vm10, %v3219_v16, 0.0  ;;  %v1095_v59 = vsel %vm3281_vm11, %v3222_v37, 0.0  ;;  %v4612_v1 = vld [vmem:[#allocation24_spill] sm:$0xff]  ;;  %v1096_v27 = vsel %vm3294_vm12, %v3225_v18, 0.0  ;;  %v3557_v52 = vpop.eup %1726 }
 0x195   :  { %4601 = vst [vmem:[#allocation18_spill] sm:$0xff] %v3495_v6  ;;  %v1097_v16 = vsel %vm3300_vm13, %v3234_v13, 0.0  ;;  %v1098_v37 = vsel %vm3306_vm14, %v3243_v14, 0.0  ;;  %v4619_v43 = vsub.f32 0.0, %v4618_v48  ;;  %v1099_v18 = vsel %vm3323_vm15, %v3252_v47, 0.0  ;;  %v3571_v32 = vpop.eup %1728  ;;  %v4631_v48 = vld [vmem:[#allocation61_spill] sm:$0xff] }
 0x196   :  { %4602 = vst [vmem:[#allocation2_spill] sm:$0xff] %v3498_v34  ;;  %vm3507_vm1 = vcmp.gt.f32.partialorder %v4606_v7, 0.0  ;;  %v4613_v7 = vsub.f32 0.0, %v4612_v1  ;;  %v4620_v1 = vmov 0  ;;  %v1101_v14 = vsel %vm3335_vm3, %v3266_v36, 0.0  ;;  %v4630_v36 = vld [vmem:[#allocation60_spill] sm:$0xff] }
 0x197   :  { %4603 = vst [vmem:[#allocation19_spill] sm:$0xff] %v3501_v26  ;;  %v4608_v20 = vsel %vm3507_vm1, 4294967295, %v4607_v20  ;;  %v4614_v26 = vmov 0  ;;  %vm3543_vm10 = vcmp.gt.f32.partialorder %v4619_v43, 0.0  ;;  %v4624_v17 = vsub.f32 0.0, %v4623_v46  ;;  %v3580_v46 = vpop.eup %1730  ;;  %v4637_v24 = vld [vmem:[#allocation4_spill] sm:$0xff] }
 0x198   :  { %4604 = vst [vmem:[#allocation20_spill] sm:$0xff] %v3503_v56  ;;  %vm3525_vm0 = vcmp.gt.f32.partialorder %v4613_v7, 0.0  ;;  %v4621_v1 = vsel %vm3543_vm10, 4294967295, %v4620_v1  ;;  %v4625_v50 = vmov 0  ;;  %v1102_v47 = vsel %vm3352_vm4, %v3271_v63, 0.0  ;;  %v4632_v63 = vld [vmem:[#allocation27_spill] sm:$0xff] }
 0x199   :  { %4609 = vst [vmem:[#allocation21_spill] sm:$0xff] %v4608_v20  ;;  %v4615_v26 = vsel %vm3525_vm0, 4294967295, %v4614_v26  ;;  %vm3561_vm11 = vcmp.gt.f32.partialorder %v4624_v17, 0.0  ;;  %vm4628_vm12 = vcmask 130048   ;;  %v1103_v7 = vsel %vm3369_vm5, %v4630_v36, 0.0  ;;  %v4698_v20 = vld [vmem:[#allocation39_spill] sm:$0xff] }
 0x19a   :  { %4610 = vst [vmem:[#allocation22_spill] sm:$0xff] %v3513_v30  ;;  %v4626_v50 = vsel %vm3561_vm11, 4294967295, %v4625_v50  ;;  %v1150_v12 = vsel %vm4628_vm12, %v1094_v45, 0.0  ;;  %vm4629_vm13 = vmmov %vm4628_vm12  ;;  %v1104_v9 = vsel %vm3375_vm6, %v4631_v48, 0.0  ;;  %v4633_v58 = vsub.f32 0.0, %v4632_v63 }
 0x19b   :  { %4611 = vst [vmem:[#allocation23_spill] sm:$0xff] %v3521_v57  ;;  %v1151_v0 = vsel %vm4629_vm13, %v1095_v59, 0.0  ;;  %v4636_v59 = vld [vmem:[#allocation62_spill] sm:$0xff]  ;;  %vm4638_vm15 = vmmov %vm4628_vm12  ;;  %v4641_v48 = vmov 0  ;;  %vm4643_vm4 = vnez %v4576_v11  ;;  %v4645_v19 = vsub.f32 0.0, %v4644_v33 }
 0x19c   :  { %4616 = vst [vmem:[#allocation24_spill] sm:$0xff] %v4615_v26  ;;  %v1152_v43 = vadd.f32 %v1151_v0, %v1150_v12  ;;  %vm3584_vm14 = vcmp.gt.f32.partialorder %v4633_v58, 0.0  ;;  %1742 = vpow2.f32 %v4636_v59  ;;  %v1153_v17 = vsel %vm4638_vm15, %v1096_v27, 0.0  ;;  %v3596_v12 = vpop.eup %1732  ;;  %v4639_v0 = vld [vmem:[#allocation28_spill] sm:$0xff]  ;;  %vm4650_vm13 = vmmov %vm4628_vm12 }
 0x19d   :  { %4617 = vst [vmem:[#allocation63_spill] sm:$0xff] %v3539_v2  ;;  %v4640_v36 = vsub.f32 0.0, %v4639_v0  ;;  %1744 = vpow2.f32 %v3357_v8  ;;  %v1108_v58 = vsel %vm4643_vm4, %v3411_v53, 0.0  ;;  %v3611_v27 = vpop.eup %1734  ;;  %vm3615_vm5 = vcmp.gt.f32.partialorder %v4645_v19, 0.0  ;;  %v4655_v19 = vld [vmem:[#allocation31_spill] sm:$0xff] }
 0x19e   :  { %4622 = vst [vmem:[#allocation25_spill] sm:$0xff] %v3557_v52  ;;  %v1154_v59 = vadd.f32 %v1153_v17, %v1152_v43  ;;  %v4646_v0 = vmov 0  ;;  %vm4649_vm6 = vnez %v4583_v31  ;;  %v1155_v63 = vsel %vm4628_vm12, %v1097_v16, 0.0  ;;  %v3625_v53 = vpop.eup %1736  ;;  %v4651_v43 = vld [vmem:[#allocation30_spill] sm:$0xff]  ;;  %v4659_v31 = vld [vmem:[#allocation32_spill] sm:$0xff] }
 0x19f   :  { %4627 = vst [vmem:[#allocation26_spill] sm:$0xff] %v4626_v50  ;;  %vm3600_vm3 = vcmp.gt.f32.partialorder %v4640_v36, 0.0  ;;  %v4647_v0 = vsel %vm3615_vm5, 4294967295, %v4646_v0  ;;  %v4648_v36 = vld [vmem:[#allocation5_spill] sm:$0xff]  ;;  %v1109_v8 = vsel %vm4649_vm6, %v3434_v54, 0.0  ;;  %v1170_v11 = vsel %vm4650_vm13, %v1101_v14, 0.0 }
 0x1a0   :  { %v4642_v48 = vsel %vm3600_vm3, 4294967295, %v4641_v48  ;;  %1746 = vpow2.f32 %v4648_v36  ;;  %v4652_v17 = vsub.f32 0.0, %v4651_v43  ;;  %v4653_v33 = vmov 0  ;;  %v4663_v14 = vld [vmem:[#allocation6_spill] sm:$0xff]  ;;  %v4669_v43 = vld [vmem:[#allocation33_spill] sm:$0xff] }
 0x1a1   :  { %v4656_v13 = vsub.f32 0.0, %v4655_v19  ;;  %v4657_v36 = vmov 0  ;;  %v4660_v54 = vsub.f32 0.0, %v4659_v31  ;;  %v4661_v16 = vmov 0  ;;  %v3652_v19 = vpop.eup %1738  ;;  %v4674_v31 = vld [vmem:[#allocation34_spill] sm:$0xff] }
 0x1a2   :  { %vm3629_vm15 = vcmp.gt.f32.partialorder %v4652_v17, 0.0  ;;  %1748 = vpow2.f32 %v4663_v14  ;;  %vm4664_vm12 = vnez %v4588_v25  ;;  %v3660_v30 = vpop.eup %1740  ;;  %v4670_v34 = vsub.f32 0.0, %v4669_v43  ;;  %v4682_v43 = vld [vmem:[#allocation36_spill] sm:$0xff] }
 0x1a3   :  { %v4654_v33 = vsel %vm3629_vm15, 4294967295, %v4653_v33  ;;  %vm3635_vm4 = vcmp.gt.f32.partialorder %v4656_v13, 0.0  ;;  %vm3641_vm6 = vcmp.gt.f32.partialorder %v4660_v54, 0.0  ;;  %v1156_v13 = vadd.f32 %v1155_v63, %v1154_v59  ;;  %v4673_v63 = vld [vmem:[#allocation7_spill] sm:$0xff]  ;;  %v3669_v17 = vpop.eup %1742 }
 0x1a4   :  { %v4658_v36 = vsel %vm3635_vm4, 4294967295, %v4657_v36  ;;  %v4662_v16 = vsel %vm3641_vm6, 4294967295, %v4661_v16  ;;  %1750 = vpow2.f32 %v3380_v42  ;;  %vm4667_vm6 = vcmask 130048  }
 0x1a5   :  { %v1157_v54 = vsel %vm4667_vm6, %v1098_v37, 0.0  ;;  %vm4668_vm4 = vmmov %vm4667_vm6  ;;  %vm3664_vm15 = vcmp.gt.f32.partialorder %v4670_v34, 0.0  ;;  %1752 = vpow2.f32 %v4673_v63  ;;  %v4675_v21 = vsub.f32 0.0, %v4674_v31 }
 0x1a6   :  { %v1171_v14 = vsel %vm4668_vm4, %v1102_v47, 0.0  ;;  %v1158_v59 = vadd.f32 %v1157_v54, %v1156_v13  ;;  %v4676_v37 = vmov 0  ;;  %v4678_v47 = vld [vmem:[#allocation35_spill] sm:$0xff]  ;;  %v4680_v34 = vmov 0 }
 0x1a7   :  { %v1172_v42 = vadd.f32 %v1171_v14, %v1170_v11  ;;  %vm3673_vm6 = vcmp.gt.f32.partialorder %v4675_v21, 0.0  ;;  %v4679_v38 = vsub.f32 0.0, %v4678_v47  ;;  %v4683_v61 = vsub.f32 0.0, %v4682_v43  ;;  %v4686_v11 = vld [vmem:[#allocation8_spill] sm:$0xff]  ;;  %v4689_v14 = vld [vmem:[#allocation37_spill] sm:$0xff] }
 0x1a8   :  { %v4677_v37 = vsel %vm3673_vm6, 4294967295, %v4676_v37  ;;  %v4684_v13 = vmov 0  ;;  %1754 = vpow2.f32 %v4686_v11  ;;  %vm4687_vm13 = vcmask 130048  }
 0x1a9   :  { %vm3679_vm4 = vcmp.gt.f32.partialorder %v4679_v38, 0.0  ;;  %vm3685_vm9 = vcmp.gt.f32.partialorder %v4683_v61, 0.0  ;;  %v1159_v31 = vsel %vm4687_vm13, %v1099_v18, 0.0  ;;  %vm4688_vm6 = vmmov %vm4687_vm13  ;;  %v3695_v38 = vpop.eup %1744  ;;  %v4690_v63 = vsub.f32 0.0, %v4689_v14  ;;  %v4693_v61 = vld [vmem:[#allocation38_spill] sm:$0xff] }
 0x1aa   :  { %v4681_v34 = vsel %vm3679_vm4, 4294967295, %v4680_v34  ;;  %v4685_v13 = vsel %vm3685_vm9, 4294967295, %v4684_v13  ;;  %v1173_v54 = vsel %vm4688_vm6, %v1103_v7, 0.0  ;;  %v4691_v47 = vmov 0  ;;  %v3719_v56 = vpop.eup %1746 }
 0x1ab   :  { %vm3699_vm4 = vcmp.gt.f32.partialorder %v4690_v63, 0.0  ;;  %v4694_v43 = vsub.f32 0.0, %v4693_v61  ;;  %v4695_v11 = vmov 0  ;;  %v4699_v21 = vsub.f32 0.0, %v4698_v20  ;;  %v4702_v61 = vld [vmem:[#allocation40_spill] sm:$0xff]  ;;  %v4706_v20 = vld [vmem:[#allocation9_spill] sm:$0xff] }
 0x1ac   :  { %v4692_v47 = vsel %vm3699_vm4, 4294967295, %v4691_v47  ;;  %v4700_v18 = vmov 0  ;;  %1756 = vpow2.f32 %v3403_v62  ;;  %v1160_v14 = vadd.f32 %v1159_v31, %v1158_v59  ;;  %v3737_v31 = vpop.eup %1748 }
 0x1ad   :  { %vm3705_vm9 = vcmp.gt.f32.partialorder %v4694_v43, 0.0  ;;  %vm3711_vm1 = vcmp.gt.f32.partialorder %v4699_v21, 0.0  ;;  %v1174_v63 = vadd.f32 %v1173_v54, %v1172_v42  ;;  %v4703_v43 = vsub.f32 0.0, %v4702_v61  ;;  %v4710_v54 = vld [vmem:[#allocation41_spill] sm:$0xff]  ;;  %v3749_v62 = vpop.eup %1750 }
 0x1ae   :  { %v4696_v11 = vsel %vm3705_vm9, 4294967295, %v4695_v11  ;;  %v4701_v18 = vsel %vm3711_vm1, 4294967295, %v4700_v18  ;;  %v4704_v44 = vmov 0  ;;  %1758 = vpow2.f32 %v4706_v20  ;;  %v4714_v20 = vld [vmem:[#allocation10_spill] sm:$0xff]  ;;  %4715 = vst [vmem:[#allocation61_spill] sm:$0xff] %v3749_v62 }
 0x1af   :  { %4697 = vst [vmem:[#allocation60_spill] sm:$0xff] %v4696_v11  ;;  %vm3723_vm13 = vcmp.gt.f32.partialorder %v4703_v43, 0.0  ;;  %v4707_v21 = vsel %vm3329_vm2, %v3261_v3, 0.0  ;;  %vm4708_vm6 = vcmask 123904   ;;  %vm4709_vm0 = vcmask 130048   ;;  %v4830_v62 = vld [vmem:[#allocation18_spill] sm:$0xff] }
 0x1b0   :  { %v4705_v44 = vsel %vm3723_vm13, 4294967295, %v4704_v44  ;;  %v1162_v59 = vsel %vm4708_vm6, %v4707_v21, 0.0  ;;  %v1175_v42 = vsel %vm4709_vm0, %v1104_v9, 0.0  ;;  %v4711_v61 = vsub.f32 0.0, %v4710_v54  ;;  %v4716_v21 = vld [vmem:[#allocation42_spill] sm:$0xff]  ;;  %v4720_v54 = vld [vmem:[#allocation43_spill] sm:$0xff] }
 0x1b1   :  { %v4712_v43 = vmov 0  ;;  %1760 = vpow2.f32 %v4714_v20  ;;  %v1163_v7 = vadd.f32 %v1162_v59, %v1160_v14  ;;  %v1176_v3 = vadd.f32 %v1175_v42, %v1174_v63  ;;  %v4725_v20 = vld [vmem:[#allocation44_spill] sm:$0xff] }
 0x1b2   :  { %vm3741_vm1 = vcmp.gt.f32.partialorder %v4711_v61, 0.0  ;;  %v4717_v9 = vsub.f32 0.0, %v4716_v21  ;;  %v4718_v57 = vmov 0  ;;  %v4721_v61 = vsub.f32 0.0, %v4720_v54  ;;  %v3777_v21 = vpop.eup %1752 }
 0x1b3   :  { %v4713_v43 = vsel %vm3741_vm1, 4294967295, %v4712_v43  ;;  %v4722_v26 = vmov 0  ;;  %v4726_v2 = vsub.f32 0.0, %v4725_v20  ;;  %v4727_v41 = vmov 0  ;;  %v3801_v52 = vpop.eup %1754 }
 0x1b4   :  { %vm3753_vm0 = vcmp.gt.f32.partialorder %v4717_v9, 0.0  ;;  %vm3759_vm2 = vcmp.gt.f32.partialorder %v4721_v61, 0.0  ;;  %1762 = vpow2.f32 %v3426_v5  ;;  %v4730_v14 = vsel %vm3392_vm7, %v4637_v24, 0.0  ;;  %v4734_v9 = vld [vmem:[#allocation45_spill] sm:$0xff]  ;;  %v4739_v61 = vld [vmem:[#allocation46_spill] sm:$0xff]  ;;  %v4743_v24 = vld [vmem:[#allocation47_spill] sm:$0xff]  ;;  %v3812_v50 = vpop.eup %1756 }
 0x1b5   :  { %v4719_v57 = vsel %vm3753_vm0, 4294967295, %v4718_v57  ;;  %v4723_v26 = vsel %vm3759_vm2, 4294967295, %v4722_v26  ;;  %vm3765_vm6 = vcmp.gt.f32.partialorder %v4726_v2, 0.0  ;;  %vm4731_vm11 = vcmask 130048  }
 0x1b6   :  { %4724 = vst [vmem:[#allocation27_spill] sm:$0xff] %v4723_v26  ;;  %v4728_v41 = vsel %vm3765_vm6, 4294967295, %v4727_v41  ;;  %v1177_v63 = vsel %vm4731_vm11, %v4730_v14, 0.0  ;;  %vm4732_vm10 = vmmov %vm4731_vm11  ;;  %v4735_v54 = vsub.f32 0.0, %v4734_v9  ;;  %v4736_v2 = vmov 0 }
 0x1b7   :  { %4729 = vst [vmem:[#allocation62_spill] sm:$0xff] %v4728_v41  ;;  %v1189_v59 = vsel %vm4732_vm10, %v1108_v58, 0.0  ;;  %vm4733_vm0 = vmmov %vm4732_vm10  ;;  %v4740_v5 = vsub.f32 0.0, %v4739_v61  ;;  %v4744_v20 = vsub.f32 0.0, %v4743_v24  ;;  %v4745_v58 = vmov 0  ;;  %v4748_v61 = vld [vmem:[#allocation12_spill] sm:$0xff] }
 0x1b8   :  { %v1190_v42 = vsel %vm4733_vm0, %v1109_v8, 0.0  ;;  %vm3781_vm2 = vcmp.gt.f32.partialorder %v4735_v54, 0.0  ;;  %v4747_v8 = vld [vmem:[#allocation11_spill] sm:$0xff]  ;;  %v1164_v9 = vrot.slane %v1163_v7, 4  ;;  %v1178_v54 = vadd.f32 %v1177_v63, %v1176_v3  ;;  %vm4750_vm10 = vmmov %vm4733_vm0 }
 0x1b9   :  { %v4737_v2 = vsel %vm3781_vm2, 4294967295, %v4736_v2  ;;  %vm3787_vm6 = vcmp.gt.f32.partialorder %v4740_v5, 0.0  ;;  %vm3793_vm7 = vcmp.gt.f32.partialorder %v4744_v20, 0.0  ;;  %1764 = vpow2.f32 %v4747_v8  ;;  %vm4752_vm11 = vmmov %vm4733_vm0  ;;  %v3823_v5 = vpop.eup %1758 }
 0x1ba   :  { %4738 = vst [vmem:[#allocation4_spill] sm:$0xff] %v4737_v2  ;;  %v4746_v58 = vsel %vm3793_vm7, 4294967295, %v4745_v58  ;;  %1766 = vpow2.f32 %v4748_v61  ;;  %v4749_v24 = vsel %vm3398_vm8, %v3365_v28, 0.0  ;;  %v1191_v8 = vadd.f32 %v1190_v42, %v1189_v59  ;;  %v4753_v28 = vld [vmem:[#allocation48_spill] sm:$0xff]  ;;  %v4820_v2 = vld [vmem:[#allocation21_spill] sm:$0xff]  ;;  %v4838_v59 = vld [vmem:[#allocation23_spill] sm:$0xff] }
 0x1bb   :  { %v1179_v20 = vsel %vm4750_vm10, %v4749_v24, 0.0  ;;  %1768 = vpow2.f32 %v3443_v49  ;;  %v4751_v61 = vsel %vm4664_vm12, %v3451_v39, 0.0  ;;  %v4754_v24 = vsub.f32 0.0, %v4753_v28  ;;  %v4757_v49 = vld [vmem:[#allocation49_spill] sm:$0xff]  ;;  %v4765_v28 = vld [vmem:[#allocation50_spill] sm:$0xff] }
 0x1bc   :  { %v1180_v63 = vadd.f32 %v1179_v20, %v1178_v54  ;;  %v1192_v51 = vsel %vm4752_vm11, %v4751_v61, 0.0  ;;  %v4758_v42 = vsub.f32 0.0, %v4757_v49  ;;  %v3846_v61 = vpop.eup %1760  ;;  %v4767_v49 = vmov 0 }
 0x1bd   :  { %vm3827_vm8 = vcmp.gt.f32.partialorder %v4754_v24, 0.0  ;;  %v1193_v20 = vadd.f32 %v1192_v51, %v1191_v8  ;;  %4764 = vst [vmem:[#allocation28_spill] sm:$0xff] %v3846_v61  ;;  %v4766_v24 = vsub.f32 0.0, %v4765_v28  ;;  %1770 = vpow2.f32 %v3446_v55  ;;  %v3865_v28 = vpop.eup %1762  ;;  %v4780_v55 = vld [vmem:[#allocation13_spill] sm:$0xff]  ;;  %v4825_v61 = vld [vmem:[#allocation26_spill] sm:$0xff] }
 0x1be   :  { %vm3833_vm0 = vcmp.gt.f32.partialorder %v4758_v42, 0.0  ;;  %v1165_v42 = vadd.f32 %v1164_v9, %v1163_v7  ;;  %vm4769_vm10 = vnez %v4572_v15  ;;  %vm4771_vm12 = vcmask 123904   ;;  %4775 = vst [vmem:[#allocation29_spill] sm:$0xff] %v3865_v28  ;;  %v4815_v28 = vld [vmem:[#allocation56_spill] sm:$0xff] }
 0x1bf   :  { %vm3850_vm5 = vcmp.gt.f32.partialorder %v4766_v24, 0.0  ;;  %v4770_v25 = vsel %vm4769_vm10, %v3388_v35, 0.0  ;;  %vm4772_vm11 = vnez %v4592_v29  ;;  %vm4774_vm3 = vcmask 130048   ;;  %v4776_v24 = vld [vmem:[#allocation51_spill] sm:$0xff]  ;;  %v3877_v7 = vpop.eup %1764 }
 0x1c0   :  { %v4768_v49 = vsel %vm3850_vm5, 4294967295, %v4767_v49  ;;  %v1181_v39 = vsel %vm4771_vm12, %v4770_v25, 0.0  ;;  %v4773_v8 = vsel %vm4772_vm11, %v3474_v23, 0.0  ;;  %v4777_v3 = vsub.f32 0.0, %v4776_v24  ;;  %4781 = vst [vmem:[#allocation5_spill] sm:$0xff] %v3877_v7  ;;  %v3889_v6 = vpop.eup %1766  ;;  %v4803_v23 = vld [vmem:[#allocation15_spill] sm:$0xff] }
 0x1c1   :  { %v1194_v51 = vsel %vm4774_vm3, %v4773_v8, 0.0  ;;  %1772 = vpow2.f32 %v4780_v55  ;;  %v1123_v35 = vsel %vm3664_vm15, %v3660_v30, 0.0  ;;  %v1182_v15 = vadd.f32 %v1181_v39, %v1180_v63  ;;  %v4785_v30 = vld [vmem:[#allocation52_spill] sm:$0xff]  ;;  %v3907_v8 = vpop.eup %1768 }
 0x1c2   :  { %vm3869_vm5 = vcmp.gt.f32.partialorder %v4777_v3, 0.0  ;;  %v1195_v29 = vadd.f32 %v1194_v51, %v1193_v20  ;;  %1774 = vpow2.f32 %v3466_v40  ;;  %vm4782_vm3 = vnez %v4677_v37  ;;  %v4790_v51 = vld [vmem:[#allocation53_spill] sm:$0xff]  ;;  %v4802_v20 = vld [vmem:[#allocation14_spill] sm:$0xff]  ;;  %v4819_v7 = vld [vmem:[#allocation16_spill] sm:$0xff] }
 0x1c3   :  { %v4786_v63 = vsub.f32 0.0, %v4785_v30  ;;  %1776 = vpow2.f32 %v3469_v4  ;;  %vm4789_vm11 = vnez %v4701_v18  ;;  %v4791_v24 = vsub.f32 0.0, %v4790_v51  ;;  %v4794_v4 = vld [vmem:[#allocation54_spill] sm:$0xff]  ;;  %v4799_v51 = vld [vmem:[#allocation17_spill] sm:$0xff] }
 0x1c4   :  { %v4795_v30 = vsub.f32 0.0, %v4794_v4  ;;  %1778 = vpow2.f32 %v3472_v22  ;;  %v1166_v40 = vrot.slane %v1165_v42, 2  ;;  %vm4798_vm9 = vnez %v4596_v60  ;;  %v3934_v22 = vpop.eup %1770  ;;  %v4807_v4 = vld [vmem:[#allocation55_spill] sm:$0xff] }
 0x1c5   :  { %vm3893_vm15 = vcmp.gt.f32.partialorder %v4786_v63, 0.0  ;;  %vm3911_vm12 = vcmp.gt.f32.partialorder %v4791_v24, 0.0  ;;  %v4800_v24 = vsel %vm4798_vm9, %v4799_v51, 0.0  ;;  %vm4801_vm4 = vcmask 130048   ;;  %v4812_v60 = vld [vmem:[#allocation63_spill] sm:$0xff] }
 0x1c6   :  { %vm3917_vm10 = vcmp.gt.f32.partialorder %v4795_v30, 0.0  ;;  %v1196_v3 = vsel %vm4801_vm4, %v4800_v24, 0.0  ;;  %1780 = vpow2.f32 %v4802_v20  ;;  %v1183_v30 = vrot.slane %v1182_v15, 4  ;;  %v4822_v20 = vld [vmem:[#allocation20_spill] sm:$0xff] }
 0x1c7   :  { %v1197_v9 = vadd.f32 %v1196_v3, %v1195_v29  ;;  %1782 = vpow2.f32 %v4803_v23  ;;  %v3946_v24 = vpop.eup %1772  ;;  %v4808_v29 = vsub.f32 0.0, %v4807_v4  ;;  %vm4811_vm4 = vnez %v4621_v1  ;;  %v4881_v3 = vld [vmem:[#allocation59_spill] sm:$0xff] }
 0x1c8   :  { %v4813_v4 = vsel %vm4811_vm4, %v4812_v60, 0.0  ;;  %vm4814_vm9 = vcmask 130048   ;;  %v3968_v25 = vpop.eup %1774  ;;  %v4816_v41 = vsub.f32 0.0, %v4815_v28  ;;  %1784 = vpow2.f32 %v4819_v7 }
 0x1c9   :  { %vm3950_vm1 = vcmp.gt.f32.partialorder %v4808_v29, 0.0  ;;  %v1208_v29 = vsel %vm4814_vm9, %v4813_v4, 0.0  ;;  %v3977_v51 = vadd.f32 %v1166_v40, %v1165_v42  ;;  %vm4821_vm2 = vnez %v4820_v2  ;;  %vm4824_vm7 = vmmov %vm4814_vm9  ;;  %v4827_v4 = vld [vmem:[#allocation25_spill] sm:$0xff]  ;;  %v4831_v2 = vld [vmem:[#allocation2_spill] sm:$0xff] }
 0x1ca   :  { %vm3972_vm13 = vcmp.gt.f32.partialorder %v4816_v41, 0.0  ;;  %v4823_v1 = vsel %vm4821_vm2, %v4822_v20, 0.0  ;;  %vm4826_vm9 = vnez %v4825_v61  ;;  %vm4829_vm4 = vmmov %vm4824_vm7  ;;  %v3989_v41 = vpop.eup %1776  ;;  %1786 = vpow2.f32 %v4830_v62 }
 0x1cb   :  { %v1198_v60 = vsel %vm4824_vm7, %v4823_v1, 0.0  ;;  %v4828_v26 = vsel %vm4826_vm9, %v4827_v4, 0.0  ;;  %v3992_v11 = vadd.f32 %v1183_v30, %v1182_v15  ;;  %v3994_v40 = vpop.eup %1778  ;;  %1788 = vpow2.f32 %v4831_v2  ;;  %vm4833_vm2 = vmmov %vm4829_vm4  ;;  %v4834_v30 = vld [vmem:[#allocation19_spill] sm:$0xff] }
 0x1cc   :  { %v1209_v28 = vsel %vm4829_vm4, %v4828_v26, 0.0  ;;  %v1199_v42 = vadd.f32 %v1198_v60, %v1197_v9  ;;  %v1138_v61 = vsel %vm3827_vm8, %v3934_v22, 0.0  ;;  %v1139_v26 = vsel %vm3833_vm0, %v3946_v24, 0.0  ;;  %v1781_v9 = vpop.eup %1780  ;;  %vm4843_vm4 = vmmov %vm4833_vm2 }
 0x1cd   :  { %v1210_v7 = vadd.f32 %v1209_v28, %v1208_v29  ;;  %v4832_v62 = vsel %vm3584_vm14, %v3571_v32, 0.0  ;;  %1790 = vpow2.f32 %v4834_v30  ;;  %vm4835_vm7 = vnez %v4768_v49  ;;  %v4836_v29 = vld [vmem:[#allocation24_spill] sm:$0xff]  ;;  %v1783_v4 = vpop.eup %1782  ;;  %v4852_v32 = vld [vmem:[#allocation22_spill] sm:$0xff] }
 0x1ce   :  { %v1211_v15 = vsel %vm4833_vm2, %v4832_v62, 0.0  ;;  %v1140_v20 = vsel %vm4835_vm7, %v3968_v25, 0.0  ;;  %vm4837_vm9 = vnez %v4836_v29  ;;  %vm4840_vm8 = vcmask 123904   ;;  %vm4846_vm7 = vmmov %vm4843_vm4  ;;  %v4916_v29 = vld [vmem:[#allocation5_spill] sm:$0xff] }
 0x1cf   :  { %v4839_v22 = vsel %vm4837_vm9, %v4838_v59, 0.0  ;;  %v1212_v60 = vadd.f32 %v1211_v15, %v1210_v7  ;;  %vm4841_vm14 = vnez %v4642_v48  ;;  %vm4844_vm2 = vnez %v4662_v16  ;;  %vm4847_vm9 = vmmov %vm4843_vm4  ;;  %v4848_v7 = vld [vmem:[#allocation57_spill] sm:$0xff] }
 0x1d0   :  { %v1200_v1 = vsel %vm4840_vm8, %v4839_v22, 0.0  ;;  %v4842_v45 = vsel %vm4841_vm14, %v3580_v46, 0.0  ;;  %v4845_v2 = vsel %vm4844_vm2, %v3652_v19, 0.0  ;;  %v1228_v30 = vsel %vm4847_vm9, %v1123_v35, 0.0  ;;  %vm4855_vm14 = vmmov %vm4843_vm4 }
 0x1d1   :  { %v1213_v28 = vsel %vm4843_vm4, %v4842_v45, 0.0  ;;  %v1227_v62 = vsel %vm4846_vm7, %v4845_v2, 0.0  ;;  %v4849_v15 = vsub.f32 0.0, %v4848_v7  ;;  %v1185_v48 = vrot.slane %v3992_v11, 2  ;;  %v1785_v45 = vpop.eup %1784  ;;  %vm4859_vm9 = vmmov %vm4843_vm4 }
 0x1d2   :  { %v1201_v59 = vadd.f32 %v1200_v1, %v1199_v42  ;;  %v1214_v46 = vadd.f32 %v1213_v28, %v1212_v60  ;;  %v1229_v22 = vadd.f32 %v1228_v30, %v1227_v62  ;;  %1792 = vpow2.f32 %v4852_v32  ;;  %v4052_v1 = vpop.eup %1786 }
 0x1d3   :  { %vm4033_vm8 = vcmp.gt.f32.partialorder %v4849_v15, 0.0  ;;  %v1142_v16 = vsel %vm3893_vm15, %v3994_v40, 0.0  ;;  %vm4853_vm7 = vnez %v4647_v0  ;;  %v4856_v2 = vsel %vm4782_vm3, %v3669_v17, 0.0  ;;  %v4058_v62 = vpop.eup %1788  ;;  %v4868_v15 = vld [vmem:[#allocation58_spill] sm:$0xff] }
 0x1d4   :  { %v4854_v19 = vsel %vm4853_vm7, %v3596_v12, 0.0  ;;  %v1230_v42 = vsel %vm4843_vm4, %v4856_v2, 0.0  ;;  %v1143_v60 = vsel %vm3911_vm12, %v1781_v9, 0.0  ;;  %v1144_v32 = vsel %vm3917_vm10, %v1783_v4, 0.0  ;;  %vm4862_vm7 = vmmov %vm4843_vm4  ;;  %v4080_v4 = vpop.eup %1790 }
 0x1d5   :  { %v1215_v35 = vsel %vm4855_vm14, %v4854_v19, 0.0  ;;  %v1231_v0 = vadd.f32 %v1230_v42, %v1229_v22  ;;  %vm4857_vm2 = vnez %v4654_v33  ;;  %vm4860_vm3 = vnez %v4681_v34  ;;  %vm4864_vm10 = vmmov %vm4843_vm4 }
 0x1d6   :  { %v1216_v28 = vadd.f32 %v1215_v35, %v1214_v46  ;;  %v4858_v12 = vsel %vm4857_vm2, %v3611_v27, 0.0  ;;  %v4861_v37 = vsel %vm4860_vm3, %v3695_v38, 0.0  ;;  %v4863_v63 = vsel %vm4789_vm11, %v3777_v21, 0.0  ;;  %vm4867_vm14 = vmmov %vm4843_vm4 }
 0x1d7   :  { %v1217_v17 = vsel %vm4859_vm9, %v4858_v12, 0.0  ;;  %v1232_v55 = vsel %vm4862_vm7, %v4861_v37, 0.0  ;;  %v1246_v9 = vsel %vm4864_vm10, %v4863_v63, 0.0  ;;  %vm4865_vm12 = vnez %v4705_v44  ;;  %vm4877_vm3 = vmmov %vm4862_vm7 }
 0x1d8   :  { %v4866_v33 = vsel %vm4865_vm12, %v3801_v52, 0.0  ;;  %v1202_v30 = vrot.slane %v1201_v59, 4  ;;  %v1218_v34 = vadd.f32 %v1217_v17, %v1216_v28  ;;  %v1233_v7 = vadd.f32 %v1232_v55, %v1231_v0  ;;  %vm4880_vm10 = vmmov %vm4877_vm3  ;;  %v1793_v28 = vpop.eup %1792 }
 0x1d9   :  { %v1247_v27 = vsel %vm4867_vm14, %v4866_v33, 0.0  ;;  %v4869_v46 = vsub.f32 0.0, %v4868_v15  ;;  %v1145_v21 = vsel %vm3950_vm1, %v1785_v45, 0.0  ;;  %vm4872_vm11 = vnez %v4658_v36  ;;  %vm4887_vm14 = vmmov %vm4877_vm3 }
 0x1da   :  { %v1248_v38 = vadd.f32 %v1247_v27, %v1246_v9  ;;  %v4873_v44 = vsel %vm4872_vm11, %v3625_v53, 0.0  ;;  %vm4874_vm2 = vcmask 123904   ;;  %vm4875_vm9 = vnez %v4685_v13  ;;  %v4898_v9 = vld [vmem:[#allocation61_spill] sm:$0xff]  ;;  %v4903_v27 = vld [vmem:[#allocation28_spill] sm:$0xff] }
 0x1db   :  { %vm4084_vm4 = vcmp.gt.f32.partialorder %v4869_v46, 0.0  ;;  %v1219_v52 = vsel %vm4874_vm2, %v4873_v44, 0.0  ;;  %v4876_v22 = vsel %vm4875_vm9, %v3719_v56, 0.0  ;;  %vm4878_vm7 = vnez %v4713_v43  ;;  %vm4890_vm2 = vmmov %vm4877_vm3  ;;  %v4908_v46 = vld [vmem:[#allocation62_spill] sm:$0xff]  ;;  %v4910_v44 = vld [vmem:[#allocation29_spill] sm:$0xff] }
 0x1dc   :  { %v1234_v19 = vsel %vm4877_vm3, %v4876_v22, 0.0  ;;  %v4879_v35 = vsel %vm4878_vm7, %v3812_v50, 0.0  ;;  %v4882_v45 = vsub.f32 0.0, %v4881_v3  ;;  %v1146_v53 = vsel %vm3972_vm13, %v4052_v1, 0.0  ;;  %vm4892_vm13 = vmmov %vm4890_vm2 }
 0x1dd   :  { %v1249_v2 = vsel %vm4880_vm10, %v4879_v35, 0.0  ;;  %v1220_v13 = vadd.f32 %v1219_v52, %v1218_v34  ;;  %v1235_v56 = vadd.f32 %v1234_v19, %v1233_v7  ;;  %vm4885_vm12 = vnez %v4692_v47  ;;  %vm4895_vm3 = vmmov %vm4890_vm2 }
 0x1de   :  { %vm4107_vm1 = vcmp.gt.f32.partialorder %v4882_v45, 0.0  ;;  %v1250_v42 = vadd.f32 %v1249_v2, %v1248_v38  ;;  %v4886_v50 = vsel %vm4885_vm12, %v3737_v31, 0.0  ;;  %vm4888_vm11 = vnez %v4719_v57  ;;  %vm4905_vm12 = vmmov %vm4890_vm2  ;;  %v4914_v2 = vld [vmem:[#allocation4_spill] sm:$0xff] }
 0x1df   :  { %v1236_v43 = vsel %vm4887_vm14, %v4886_v50, 0.0  ;;  %v4889_v0 = vsel %vm4888_vm11, %v3823_v5, 0.0  ;;  %v4891_v23 = vsel %vm3787_vm6, %v3889_v6, 0.0  ;;  %vm4893_vm9 = vnez %v4746_v58  ;;  %v4896_v5 = vld [vmem:[#allocation60_spill] sm:$0xff]  ;;  %v4901_v6 = vld [vmem:[#allocation27_spill] sm:$0xff]  ;;  %vm4906_vm14 = vmmov %vm4890_vm2 }
 0x1e0   :  { %v1251_v12 = vsel %vm4890_vm2, %v4889_v0, 0.0  ;;  %v1265_v1 = vsel %vm4892_vm13, %v4891_v23, 0.0  ;;  %v4894_v47 = vsel %vm4893_vm9, %v3907_v8, 0.0  ;;  %v1203_v17 = vadd.f32 %v1202_v30, %v1201_v59  ;;  %vm4907_vm11 = vmmov %vm4890_vm2 }
 0x1e1   :  { %v1266_v31 = vsel %vm4895_vm3, %v4894_v47, 0.0  ;;  %v1237_v37 = vadd.f32 %v1236_v43, %v1235_v56  ;;  %v1252_v55 = vadd.f32 %v1251_v12, %v1250_v42  ;;  %v1221_v63 = vrot.slane %v1220_v13, 4  ;;  %vm4912_vm13 = vmmov %vm4895_vm3 }
 0x1e2   :  { %v1267_v57 = vadd.f32 %v1266_v31, %v1265_v1  ;;  %vm4897_vm7 = vnez %v4896_v5  ;;  %vm4900_vm10 = vcmask 123904   ;;  %vm4902_vm6 = vnez %v4901_v6  ;;  %vm4913_vm9 = vmmov %vm4895_vm3 }
 0x1e3   :  { %v4899_v33 = vsel %vm4897_vm7, %v4898_v9, 0.0  ;;  %v4904_v34 = vsel %vm4902_vm6, %v4903_v27, 0.0  ;;  %v1268_v8 = vsel %vm4906_vm14, %v1138_v61, 0.0  ;;  %v1284_v38 = vsel %vm4907_vm11, %v1143_v60, 0.0  ;;  %vm4920_vm6 = vmmov %vm4895_vm3 }
 0x1e4   :  { %v1238_v10 = vsel %vm4900_vm10, %v4899_v33, 0.0  ;;  %v1253_v58 = vsel %vm4905_vm12, %v4904_v34, 0.0  ;;  %v1269_v30 = vadd.f32 %v1268_v8, %v1267_v57  ;;  %v1147_v15 = vsel %vm4033_vm8, %v4058_v62, 0.0  ;;  %vm4918_vm8 = vmmov %vm4900_vm10 }
 0x1e5   :  { %v1239_v7 = vadd.f32 %v1238_v10, %v1237_v37  ;;  %v1254_v59 = vadd.f32 %v1253_v58, %v1252_v55  ;;  %vm4909_vm2 = vnez %v4908_v46  ;;  %v1270_v61 = vsel %vm4913_vm9, %v1139_v26, 0.0  ;;  %vm4921_vm0 = vmmov %vm4895_vm3 }
 0x1e6   :  { %v4911_v52 = vsel %vm4909_vm2, %v4910_v44, 0.0  ;;  %v1285_v19 = vsel %vm4895_vm3, %v1144_v32, 0.0  ;;  %vm4915_vm7 = vnez %v4914_v2  ;;  %v1271_v45 = vadd.f32 %v1270_v61, %v1269_v30  ;;  %vm4923_vm12 = vmmov %vm4921_vm0 }
 0x1e7   :  { %v1255_v22 = vsel %vm4912_vm13, %v4911_v52, 0.0  ;;  %v1240_v35 = vrot.slane %v1239_v7, 4  ;;  %v4917_v62 = vsel %vm4915_vm7, %v4916_v29, 0.0  ;;  %v1222_v56 = vadd.f32 %v1221_v63, %v1220_v13  ;;  %vm4924_vm14 = vmmov %vm4921_vm0 }
 0x1e8   :  { %v1256_v60 = vadd.f32 %v1255_v22, %v1254_v59  ;;  %v1257_v3 = vsel %vm4918_vm8, %v4917_v62, 0.0  ;;  %v1272_v14 = vsel %vm4920_vm6, %v1140_v20, 0.0  ;;  %v1286_v24 = vadd.f32 %v1285_v19, %v1284_v38  ;;  %vm4926_vm11 = vmmov %vm4921_vm0 }
 0x1e9   :  { %v1241_v26 = vadd.f32 %v1240_v35, %v1239_v7  ;;  %v1273_v32 = vadd.f32 %v1272_v14, %v1271_v45  ;;  %v1287_v50 = vsel %vm4921_vm0, %v1145_v21, 0.0  ;;  %v1204_v43 = vrot.slane %v1203_v17, 2  ;;  %vm4930_vm6 = vmmov %vm4921_vm0 }
 0x1ea   :  { %v1258_v42 = vadd.f32 %v1257_v3, %v1256_v60  ;;  %v4922_v0 = vsel %vm3869_vm5, %v3989_v41, 0.0  ;;  %v1288_v13 = vadd.f32 %v1287_v50, %v1286_v24  ;;  %v1796_v23 = vmov 50.0   ;;  %vm4925_vm5 = vmmov %vm4918_vm8 }
 0x1eb   :  { %v1274_v12 = vsel %vm4923_vm12, %v4922_v0, 0.0  ;;  %1794 = vrcp.f32 %v1796_v23  ;;  %v1148_v49 = vsel %vm4084_vm4, %v4080_v4, 0.0  ;;  %v1289_v1 = vsel %vm4924_vm14, %v1146_v53, 0.0  ;;  %vm4927_vm4 = vmmov %vm4921_vm0 }
 0x1ec   :  { %v1259_v25 = vrot.slane %v1258_v42, 4  ;;  %v1275_v20 = vadd.f32 %v1274_v12, %v1273_v32  ;;  %v1149_v21 = vsel %vm4107_vm1, %v1793_v28, 0.0  ;;  %v1223_v47 = vrot.slane %v1222_v56, 2  ;;  %vm4928_vm15 = vmmov %vm4925_vm5 }
 0x1ed   :  { %v1276_v54 = vsel %vm4925_vm5, %v1142_v16, 0.0  ;;  %v1290_v41 = vadd.f32 %v1289_v1, %v1288_v13  ;;  %v1242_v31 = vrot.slane %v1241_v26, 2  ;;  %v1291_v4 = vsel %vm4926_vm11, %v1147_v15, 0.0 }
 0x1ee   :  { %v1260_v37 = vadd.f32 %v1259_v25, %v1258_v42  ;;  %v1277_v55 = vadd.f32 %v1276_v54, %v1275_v20  ;;  %v1186_v18 = vadd.f32 %v1185_v48, %v3992_v11  ;;  %v1205_v53 = vadd.f32 %v1204_v43, %v1203_v17 }
 0x1ef   :  { %v1292_v36 = vadd.f32 %v1291_v4, %v1290_v41  ;;  %v1293_v39 = vsel %vm4927_vm4, %v1148_v49, 0.0  ;;  %v1168_v40 = vrot.slane %v3977_v51, 1  ;;  %v1224_v16 = vadd.f32 %v1223_v47, %v1222_v56 }
 0x1f0   :  { %v1261_v28 = vrot.slane %v1260_v37, 2  ;;  %v1278_v57 = vrot.slane %v1277_v55, 4  ;;  %v1295_v9 = vsel %vm4928_vm15, %v1149_v21, 0.0  ;;  %v1243_v33 = vadd.f32 %v1242_v31, %v1241_v26  ;;  %v4929_v21 = vld [vmem:[#allocation3_spill] sm:$0xff] }
 0x1f1   :  { %v1795_v63 = vpop.eup %1794  ;;  %v1294_v5 = vadd.f32 %v1293_v39, %v1292_v36  ;;  %v1187_v34 = vrot.slane %v1186_v18, 1  ;;  %v1206_v58 = vrot.slane %v1205_v53, 1  ;;  %v1169_v8 = vadd.f32 %v1168_v40, %v3977_v51 }
 0x1f2   :  { %v1262_v10 = vadd.f32 %v1261_v28, %v1260_v37  ;;  %v1279_v6 = vadd.f32 %v1278_v57, %v1277_v55  ;;  %v1304_v27 = vmul.f32 50.0, %v1795_v63  ;;  %v1225_v7 = vrot.slane %v1224_v16, 1 }
 0x1f3   :  { %v1296_v11 = vadd.f32 %v1295_v9, %v1294_v5  ;;  %v1244_v30 = vrot.slane %v1243_v33, 1  ;;  %v1188_v44 = vadd.f32 %v1187_v34, %v1186_v18  ;;  %v1207_v52 = vadd.f32 %v1206_v58, %v1205_v53 }
 0x1f4   :  { %v1280_v48 = vrot.slane %v1279_v6, 2  ;;  %v1305_v17 = vsub.f32 1.0, %v1304_v27  ;;  %v1263_v38 = vrot.slane %v1262_v10, 1  ;;  %vm1308_vm1 = vweird.f32 %v1795_v63 }
 0x1f5   :  { %v1297_v59 = vrot.slane %v1296_v11, 4  ;;  %v1226_v35 = vadd.f32 %v1225_v7, %v1224_v16  ;;  %vm1326_vm2 = vcmask 1041409   ;;  %v1245_v2 = vadd.f32 %v1244_v30, %v1243_v33 }
 0x1f6   :  { %v1281_v15 = vadd.f32 %v1280_v48, %v1279_v6  ;;  %v1306_v46 = vmul.f32 %v1795_v63, %v1305_v17  ;;  %v1264_v29 = vadd.f32 %v1263_v38, %v1262_v10  ;;  %vm1328_vm13 = vcmask 1042434  }
 0x1f7   :  { %v1298_v22 = vadd.f32 %v1297_v59, %v1296_v11  ;;  %vm1330_vm9 = vcmask 1043459   ;;  %vm1332_vm3 = vcmask 1044484   ;;  %vm1334_vm7 = vcmask 1045509  }
 0x1f8   :  { %v1282_v61 = vrot.slane %v1281_v15, 1  ;;  %v1307_v19 = vadd.f32 %v1795_v63, %v1306_v46  ;;  %vm1336_vm8 = vcmask 1046534   ;;  %vm1338_vm10 = vcmask 1047559  }
 0x1f9   :  { %v1299_v60 = vrot.slane %v1298_v22, 2  ;;  %vm4931_vm12 = vcmask 261120  }
 0x1fa   :  { %v1309_v62 = vsel %vm1308_vm1, %v1795_v63, %v1307_v19  ;;  %v1283_v14 = vadd.f32 %v1282_v61, %v1281_v15 }
 0x1fb   :  { %v1300_v51 = vadd.f32 %v1299_v60, %v1298_v22  ;;  %v1310_v3 = vmul.f32 %v1309_v62, %v1169_v8  ;;  %v1311_v45 = vmul.f32 %v1309_v62, %v1188_v44  ;;  %v1312_v56 = vmul.f32 %v1309_v62, %v1207_v52 }
 0x1fc   :  { %v1313_v26 = vmul.f32 %v1309_v62, %v1226_v35  ;;  %v1314_v32 = vmul.f32 %v1309_v62, %v1245_v2  ;;  %v1315_v0 = vmul.f32 %v1309_v62, %v1264_v29  ;;  %v1316_v13 = vmul.f32 %v1309_v62, %v1283_v14 }
 0x1fd   :  { %v1301_v24 = vrot.slane %v1300_v51, 1  ;;  %v1327_v42 = vsel %vm1326_vm2, %v1311_v45, %v1310_v3 }
 0x1fe   :  { %v1329_v50 = vsel %vm1328_vm13, %v1312_v56, %v1327_v42 }
 0x1ff   :  { %v1302_v43 = vadd.f32 %v1301_v24, %v1300_v51  ;;  %v1331_v12 = vsel %vm1330_vm9, %v1313_v26, %v1329_v50 }
 0x200   :  { %v1333_v23 = vsel %vm1332_vm3, %v1314_v32, %v1331_v12 }
 0x201   :  { %v1317_v49 = vmul.f32 %v1309_v62, %v1302_v43  ;;  %v1335_v25 = vsel %vm1334_vm7, %v1315_v0, %v1333_v23 }
 0x202   :  { %v1337_v20 = vsel %vm1336_vm8, %v1316_v13, %v1335_v25 }
 0x203   :  { %v1339_v1 = vsel %vm1338_vm10, %v1317_v49, %v1337_v20 }
 0x204   :  { %v1341_v47 = vmul.f32 %v1339_v1, %v4929_v21 }
 0x206   :  { %1342 = vst.msk [vmem:[%s4214_s9] sm:$0xff] %vm4930_vm6, %v1341_v47  ;;  %1418 = vmatmul.msk.f32.vlgmr.msrb.gmra.mxu0 %vm4921_vm0, %v1341_v47 }
 0x283   :  { %v1363_v54 = vpop.f32.mrf.mxu0 }
 0x284   :  { %1366 = vst.msk [vmem:[%s4215_s10] sm:$0xff] %vm4931_vm12, %v1363_v54 }

</bundles_post_ra>
